<compile_context>
chip_gen: v5e
topology: v5e:2x2
jax: 0.10.0
libtpu: 0.0.40
codegen_flags: <defaults>
</compile_context>

<pallas_src>
import functools
import math

import jax
import jax.numpy as jnp
from jax.experimental import pallas as pl
from jax.experimental.pallas import tpu as pltpu


# ----------------------------- in-kernel math --------------------------------
def _mish(x, exact=False):
    # mish(x) = x * tanh(softplus(x)) = x * (t - 1) / (t + 1),  t = (1 + e^x)^2
    # -> one transcendental (exp) + one reciprocal instead of exp+log1p+tanh.
    e = jnp.exp(jnp.minimum(x, 20.0))      # for x > 20 the ratio is 1.0 in f32
    t = (1.0 + e) * (1.0 + e)
    num = x * (t - 1.0)
    den = t + 1.0
    if exact:
        return num / den
    return num * pl.reciprocal(den, approx=True)


def _sigmoid(x):
    # exact reciprocal: the gate multiplies every output channel (review).
    e = jnp.exp(-jnp.abs(x))               # never overflows
    s = 1.0 / (1.0 + e)
    return jnp.where(x >= 0.0, s, 1.0 - s)


# ------------------------------ fused kernel ----------------------------------
def _resnet_block_kernel(*refs, stride, ho, wo, cin, cout, row_tile, inv_hw,
                         has_proj):
    if has_proj:
        (xph_ref, w1_ref, s1_ref, b1_ref, w2_ref, s2_ref, b2_ref,
         sew1_ref, sew2_ref, wsc_ref, ssc_ref, bsc_ref,
         out_ref, y1p_ref, op1_ref, op2_ref) = refs
    else:
        (xph_ref, w1_ref, s1_ref, b1_ref, w2_ref, s2_ref, b2_ref,
         sew1_ref, sew2_ref,
         out_ref, y1p_ref, op1_ref, op2_ref) = refs

    s = stride
    n_rt = ho // row_tile
    m = row_tile * wo

    def conv3x3(tap, op_ref, w_ref, kdim):
        # kw taps are packed into the matmul K dim via a VMEM staging buffer:
        # 3 MXU matmuls with K = 3*kdim (instead of 9 with K = kdim) per tile.
        acc = jnp.zeros((m, cout), jnp.float32)
        for kh in range(3):
            for kw in range(3):
                op_ref[:, :, kw * kdim:(kw + 1) * kdim] = tap(kh, kw)
            acc = acc + jnp.dot(op_ref[...].reshape(m, 3 * kdim), w_ref[kh],
                                preferred_element_type=jnp.float32)
        return acc

    # ---- conv1 (stride s) + BN1 + Mish -> zero-padded y1 (bf16, VMEM only) ---
    y1p_ref[...] = jnp.zeros_like(y1p_ref)       # 1-px halo (interior overwritten)
    for t in range(n_rt):
        row0 = t * row_tile

        def tap1(kh, kw, row0=row0):
            return xph_ref[(kh % s) * s + (kw % s),
                           pl.ds(row0 + kh // s, row_tile),
                           pl.ds(kw // s, wo), :]

        y1 = _mish(conv3x3(tap1, op1_ref, w1_ref, cin) * s1_ref[...] + b1_ref[...])
        y1p_ref[pl.ds(row0 + 1, row_tile), pl.ds(1, wo), :] = (
            y1.reshape(row_tile, wo, cout).astype(y1p_ref.dtype))

    # ---- conv2 (stride 1) + BN2 -> y2 staged in the output VMEM block --------
    for t in range(n_rt):
        row0 = t * row_tile

        def tap2(kh, kw, row0=row0):
            return y1p_ref[pl.ds(row0 + kh, row_tile), pl.ds(kw, wo), :]

        y2 = conv3x3(tap2, op2_ref, w2_ref, cout) * s2_ref[...] + b2_ref[...]
        out_ref[pl.ds(row0 * wo, m), :] = y2

    # ---- SE gate: global-avg-pool -> FC -> Mish -> FC -> sigmoid -------------
    pool = jnp.sum(out_ref[...], axis=0, keepdims=True) * inv_hw        # (1, C)
    hid = _mish(jnp.dot(pool, sew1_ref[...], preferred_element_type=jnp.float32),
                exact=True)
    gate = _sigmoid(jnp.dot(hid, sew2_ref[...], preferred_element_type=jnp.float32))

    # ---- gate * y2 + shortcut -> Mish -----------------------------------------
    for t in range(n_rt):
        row0 = t * row_tile
        y2 = out_ref[pl.ds(row0 * wo, m), :]
        if has_proj:
            # 1x1 / stride-s shortcut samples x_pad[1 + R*s, 1 + C*s]: only one
            # phase plane of the already-resident xph is read (no 4x over-read).
            ph = (1 % s) * s + (1 % s)
            off = 1 // s
            idp = xph_ref[ph, pl.ds(row0 + off, row_tile), pl.ds(off, wo), :]
            idn = jnp.dot(idp.reshape(m, cin), wsc_ref[...],
                          preferred_element_type=jnp.float32)
            idn = idn * ssc_ref[...] + bsc_ref[...]
        else:
            # identity shortcut (stride 1): interior of the single padded phase == x
            idp = xph_ref[0, pl.ds(row0 + 1, row_tile), pl.ds(1, wo), :]
            idn = idp.reshape(m, cin).astype(jnp.float32)
        out_ref[pl.ds(row0 * wo, m), :] = _mish(y2 * gate + idn, exact=True)


# --------------------------------- host glue ----------------------------------
def _to_phases(x_nhwc, stride):
    """Zero-pad (pad=1) and phase-pack:
       (N,H,W,C) -> (N, s*s, ceil((H+2)/s), ceil((W+2)/s), C)
    phases[n, ph*s+pw, i, j, c] == x_pad[n, i*s+ph, j*s+pw, c], so every 3x3 tap
    of a stride-s conv becomes a *contiguous* slice of one phase plane."""
    n, h, w, c = x_nhwc.shape
    s = stride
    hp, wp = h + 2, w + 2
    hpr = -(-hp // s) * s
    wpr = -(-wp // s) * s
    xp = jnp.pad(x_nhwc, ((0, 0), (1, hpr - hp + 1), (1, wpr - wp + 1), (0, 0)))
    xp = xp.reshape(n, hpr // s, s, wpr // s, s, c)
    xp = jnp.transpose(xp, (0, 2, 4, 1, 3, 5))
    return xp.reshape(n, s * s, hpr // s, wpr // s, c)


def _bn_fold(p, eps=1e-5):
    scale = p["gamma"] / jnp.sqrt(p["var"] + eps)
    bias = p["beta"] - p["mean"] * scale
    return (scale.reshape(1, -1).astype(jnp.float32),
            bias.reshape(1, -1).astype(jnp.float32))


def _pick_row_tile(ho, wo, cout, requested=None):
    if requested is not None:
        assert ho % requested == 0, (ho, requested)
        return requested
    max_m = 256 if cout <= 128 else 128     # cap f32 accumulator footprint
    target = max(1, max_m // max(wo, 1))
    tile = 1
    for t in range(1, ho + 1):
        if ho % t == 0 and t <= target:
            tile = t
    return tile


def _vmem_limit_bytes():
    # ~75% of the running chip's physical VMEM: ~96 MiB on v5e/v6e, ~48 MiB on v7x.
    try:
        cap = int(pltpu.get_tpu_info().vmem_capacity_bytes)
        return max(32 * 1024 * 1024, min(cap * 3 // 4, 96 * 1024 * 1024))
    except Exception:
        return 48 * 1024 * 1024


def _cparams(sem):
    return pltpu.CompilerParams(dimension_semantics=sem,
                                vmem_limit_bytes=_vmem_limit_bytes())


def init_params(key, cin, cout, stride, reduction=16):
    ks = jax.random.split(key, 8)

    def bn_init(k):
        k1, k2, k3, k4 = jax.random.split(k, 4)
        return dict(
            gamma=jax.random.uniform(k1, (cout,), minval=0.5, maxval=1.5),
            beta=jax.random.normal(k2, (cout,)) * 0.1,
            mean=jax.random.normal(k3, (cout,)) * 0.1,
            var=jax.random.uniform(k4, (cout,), minval=0.5, maxval=1.5),
        )

    r = max(1, cout // reduction)
    p = {
        "w1": jax.random.normal(ks[0], (3, 3, cin, cout)) / math.sqrt(9 * cin),
        "bn1": bn_init(ks[1]),
        "w2": jax.random.normal(ks[2], (3, 3, cout, cout)) / math.sqrt(9 * cout),
        "bn2": bn_init(ks[3]),
        "se_w1": jax.random.normal(ks[4], (r, cout)) / math.sqrt(cout),  # (out,in)
        "se_w2": jax.random.normal(ks[5], (cout, r)) / math.sqrt(r),     # (out,in)
    }
    if stride != 1 or cin != cout:
        p["w_sc"] = jax.random.normal(ks[6], (cin, cout)) / math.sqrt(cin)
        p["bn_sc"] = bn_init(ks[7])
    else:
        p["w_sc"] = None
    return p


# --------------------------------- forward ------------------------------------
def resnet_block_forward_nhwc(params, x_nhwc, stride, *, row_tile=None):
    """ResNetBlock forward, NHWC in / NHWC out (eval-mode BN, survival_prob=1)."""
    x = x_nhwc.astype(jnp.float32)
    n, h, w, cin = x.shape
    cout = params["w1"].shape[-1]
    ho = (h - 1) // stride + 1
    wo = (w - 1) // stride + 1
    tr = _pick_row_tile(ho, wo, cout, row_tile)

    s1, b1 = _bn_fold(params["bn1"])
    s2, b2 = _bn_fold(params["bn2"])
    # kw-folded weight layout: (3, 3*Cin, Cout), K index = kw*Cin + cin.
    w1 = params["w1"].reshape(3, 3 * cin, cout).astype(jnp.bfloat16)
    w2 = params["w2"].reshape(3, 3 * cout, cout).astype(jnp.bfloat16)
    w1t = jnp.transpose(params["se_w1"]).astype(jnp.float32)    # (cout, r)
    w2t = jnp.transpose(params["se_w2"]).astype(jnp.float32)    # (r, cout)

    # Phase-packed, zero-padded input; bf16 MXU operand, also feeds the shortcut.
    xph = _to_phases(x, stride).astype(jnp.bfloat16)
    xph_block = (None,) + tuple(xph.shape[1:])

    has_proj = params.get("w_sc") is not None
    args = [xph, w1, s1, b1, w2, s2, b2, w1t, w2t]
    in_specs = [
        pl.BlockSpec(xph_block, lambda i: (i, 0, 0, 0, 0)),
        pl.BlockSpec(w1.shape, lambda i: (0, 0, 0)),
        pl.BlockSpec(s1.shape, lambda i: (0, 0)),
        pl.BlockSpec(b1.shape, lambda i: (0, 0)),
        pl.BlockSpec(w2.shape, lambda i: (0, 0, 0)),
        pl.BlockSpec(s2.shape, lambda i: (0, 0)),
        pl.BlockSpec(b2.shape, lambda i: (0, 0)),
        pl.BlockSpec(w1t.shape, lambda i: (0, 0)),
        pl.BlockSpec(w2t.shape, lambda i: (0, 0)),
    ]
    if has_proj:
        ssc, bsc = _bn_fold(params["bn_sc"])
        wsc = params["w_sc"].astype(jnp.bfloat16)
        args += [wsc, ssc, bsc]
        in_specs += [
            pl.BlockSpec(wsc.shape, lambda i: (0, 0)),
            pl.BlockSpec(ssc.shape, lambda i: (0, 0)),
            pl.BlockSpec(bsc.shape, lambda i: (0, 0)),
        ]

    kernel = functools.partial(
        _resnet_block_kernel, stride=stride, ho=ho, wo=wo, cin=cin, cout=cout,
        row_tile=tr, inv_hw=1.0 / float(ho * wo), has_proj=has_proj)

    out2d = pl.pallas_call(
        kernel,
        grid=(n,),
        in_specs=in_specs,
        # Flat 2-D (ho*wo, Cout) output slab: lane/sublane-dense stores;
        # the NHWC reshape happens on the host for free.
        out_specs=pl.BlockSpec((None, ho * wo, cout), lambda i: (i, 0, 0)),
        out_shape=jax.ShapeDtypeStruct((n, ho * wo, cout), jnp.float32),
        scratch_shapes=[
            pltpu.VMEM((ho + 2, wo + 2, cout), jnp.bfloat16),  # padded y1 (VMEM only)
            pltpu.VMEM((tr, wo, 3 * cin), jnp.bfloat16),       # conv1 kw-folded operand
            pltpu.VMEM((tr, wo, 3 * cout), jnp.bfloat16),      # conv2 kw-folded operand
        ],
        compiler_params=_cparams(("parallel",)),   # batch-axis sharding across TCs
    )(*args)
    return out2d.reshape(n, ho, wo, cout)


def resnet_block_forward(params, x_nchw, stride, *, row_tile=None):
    """NCHW wrapper (layout plumbing only) for parity with the PyTorch module."""
    x = jnp.transpose(x_nchw, (0, 2, 3, 1))
    out = resnet_block_forward_nhwc(params, x, stride, row_tile=row_tile)
    return jnp.transpose(out, (0, 3, 1, 2))


# ------------------------ pure-JAX reference (sanity) --------------------------
def _ref_forward(params, x_nchw, stride, eps=1e-5):
    x = jnp.transpose(x_nchw, (0, 2, 3, 1)).astype(jnp.float32)

    def bn(y, p):
        sc = p["gamma"] / jnp.sqrt(p["var"] + eps)
        return y * sc + (p["beta"] - p["mean"] * sc)

    def conv3x3(y, wgt, s):
        # bf16 operands + f32 accumulation, matching the kernel's MXU precision.
        return jax.lax.conv_general_dilated(
            y.astype(jnp.bfloat16), wgt.astype(jnp.bfloat16),
            window_strides=(s, s), padding=((1, 1), (1, 1)),
            dimension_numbers=("NHWC", "HWIO", "NHWC"),
            preferred_element_type=jnp.float32)

    def mish(v):
        return v * jnp.tanh(jax.nn.softplus(v))

    out = mish(bn(conv3x3(x, params["w1"], stride), params["bn1"]))
    out = out.astype(jnp.bfloat16).astype(jnp.float32)      # kernel stores y1 in bf16
    out = bn(conv3x3(out, params["w2"], 1), params["bn2"])
    pool = jnp.mean(out, axis=(1, 2))
    hmid = mish(pool @ params["se_w1"].T)
    gate = jax.nn.sigmoid(hmid @ params["se_w2"].T)
    out = out * gate[:, None, None, :]
    if params.get("w_sc") is not None:
        cin, cout = params["w_sc"].shape
        idn = jax.lax.conv_general_dilated(
            x.astype(jnp.bfloat16),
            params["w_sc"].reshape(1, 1, cin, cout).astype(jnp.bfloat16),
            window_strides=(stride, stride), padding="VALID",
            dimension_numbers=("NHWC", "HWIO", "NHWC"),
            preferred_element_type=jnp.float32)
        idn = bn(idn, params["bn_sc"])
    else:
        # kernel reads the identity shortcut from the bf16 phase-packed input
        idn = x.astype(jnp.bfloat16).astype(jnp.float32)
    out = mish(out + idn)
    return jnp.transpose(out, (0, 3, 1, 2))


# ----------------------------------- main --------------------------------------
if __name__ == "__main__":
    key = jax.random.PRNGKey(0)
    k1, k2, k3, k4 = jax.random.split(key, 4)

    # Tolerance budget: bf16 MXU operands (shared with the reference) + the
    # approximate EUP reciprocal in the intermediate Mish.
    TOL = 2e-2

    # --- Config A: projection shortcut (stride 2, channel change), multi-tile.
    N, Cin, H, W, Cout, stride = 2, 16, 16, 16, 32, 2
    x = jax.random.normal(k1, (N, Cin, H, W), dtype=jnp.float32)
    params = init_params(k2, Cin, Cout, stride)
    out = jax.block_until_ready(resnet_block_forward(params, x, stride, row_tile=4))
    assert out.shape == (N, Cout, H // stride, W // stride), out.shape
    ref = _ref_forward(params, x, stride)
    diff = float(jnp.max(jnp.abs(out - ref)))
    assert diff < TOL, f"config A mismatch vs reference: max|diff|={diff}"

    # --- Config B: identity shortcut (stride 1, same channels).
    N2, C2, H2, W2 = 2, 32, 8, 8
    x2 = jax.random.normal(k3, (N2, C2, H2, W2), dtype=jnp.float32)
    params2 = init_params(k4, C2, C2, 1)
    out2 = jax.block_until_ready(resnet_block_forward(params2, x2, 1))
    assert out2.shape == (N2, C2, H2, W2), out2.shape
    ref2 = _ref_forward(params2, x2, 1)
    diff2 = float(jnp.max(jnp.abs(out2 - ref2)))
    assert diff2 < TOL, f"config B mismatch vs reference: max|diff|={diff2}"

    print("KERNEL_OK")
</pallas_src>

<mosaic_0001>
module attributes {stable_mosaic.version = 11 : i64} {
  func.func @_resnet_block_kernel(%arg0: i32, %arg1: memref<1x4x9x9x16xbf16, #tpu.memory_space<vmem>>, %arg2: memref<3x48x32xbf16, #tpu.memory_space<vmem>>, %arg3: memref<1x32xf32, #tpu.memory_space<vmem>>, %arg4: memref<1x32xf32, #tpu.memory_space<vmem>>, %arg5: memref<3x96x32xbf16, #tpu.memory_space<vmem>>, %arg6: memref<1x32xf32, #tpu.memory_space<vmem>>, %arg7: memref<1x32xf32, #tpu.memory_space<vmem>>, %arg8: memref<32x2xf32, #tpu.memory_space<vmem>>, %arg9: memref<2x32xf32, #tpu.memory_space<vmem>>, %arg10: memref<16x32xbf16, #tpu.memory_space<vmem>>, %arg11: memref<1x32xf32, #tpu.memory_space<vmem>>, %arg12: memref<1x32xf32, #tpu.memory_space<vmem>>, %arg13: memref<1x64x32xf32, #tpu.memory_space<vmem>>, %arg14: memref<10x10x32xbf16, #tpu.memory_space<vmem>>, %arg15: memref<4x8x48xbf16, #tpu.memory_space<vmem>>, %arg16: memref<4x8x96xbf16, #tpu.memory_space<vmem>>) attributes {dimension_semantics = [#tpu.dimension_semantics<parallel>], iteration_bounds = array<i64: 2>, scalar_prefetch = 0 : i64, scratch_operands = 3 : i64, tpu.core_type = #tpu.core_type<tc>, window_params = [{transform_indices = @transform_0, window_bounds = array<i64: 1, 4, 9, 9, 16>}, {pipeline_mode = #tpu.pipeline_mode<synchronous>, transform_indices = @transform_1, window_bounds = array<i64: 3, 48, 32>}, {pipeline_mode = #tpu.pipeline_mode<synchronous>, transform_indices = @transform_2, window_bounds = array<i64: 1, 32>}, {pipeline_mode = #tpu.pipeline_mode<synchronous>, transform_indices = @transform_3, window_bounds = array<i64: 1, 32>}, {pipeline_mode = #tpu.pipeline_mode<synchronous>, transform_indices = @transform_4, window_bounds = array<i64: 3, 96, 32>}, {pipeline_mode = #tpu.pipeline_mode<synchronous>, transform_indices = @transform_5, window_bounds = array<i64: 1, 32>}, {pipeline_mode = #tpu.pipeline_mode<synchronous>, transform_indices = @transform_6, window_bounds = array<i64: 1, 32>}, {pipeline_mode = #tpu.pipeline_mode<synchronous>, transform_indices = @transform_7, window_bounds = array<i64: 32, 2>}, {pipeline_mode = #tpu.pipeline_mode<synchronous>, transform_indices = @transform_8, window_bounds = array<i64: 2, 32>}, {pipeline_mode = #tpu.pipeline_mode<synchronous>, transform_indices = @transform_9, window_bounds = array<i64: 16, 32>}, {pipeline_mode = #tpu.pipeline_mode<synchronous>, transform_indices = @transform_10, window_bounds = array<i64: 1, 32>}, {pipeline_mode = #tpu.pipeline_mode<synchronous>, transform_indices = @transform_11, window_bounds = array<i64: 1, 32>}, {transform_indices = @transform_12, window_bounds = array<i64: 1, 64, 32>}]} {
    %cst = arith.constant 0.000000e+00 : bf16
    %0 = vector.broadcast %cst : bf16 to vector<10x10x32xbf16>
    %c0 = arith.constant 0 : index
    %c0_0 = arith.constant 0 : index
    %c0_1 = arith.constant 0 : index
    %1 = vector.load %arg14[%c0, %c0_0, %c0_1] : memref<10x10x32xbf16, #tpu.memory_space<vmem>>, vector<10x10x32xbf16>
    tpu.vector_store %arg14[%c0, %c0_0, %c0_1], %0 {strides = array<i32>} : memref<10x10x32xbf16, #tpu.memory_space<vmem>>, vector<10x10x32xbf16>,
    %cst_2 = arith.constant 0.000000e+00 : f32
    %2 = vector.broadcast %cst_2 : f32 to vector<32x32xf32>
    %c0_3 = arith.constant 0 : index
    %c0_4 = arith.constant 0 : index
    %c0_5 = arith.constant 0 : index
    %c0_6 = arith.constant 0 : index
    %c0_7 = arith.constant 0 : index
    %3 = vector.load %arg1[%c0_3, %c0_4, %c0_5, %c0_6, %c0_7] : memref<1x4x9x9x16xbf16, #tpu.memory_space<vmem>>, vector<1x1x4x8x16xbf16>
    %4 = vector.shape_cast %3 : vector<1x1x4x8x16xbf16> to vector<4x8x16xbf16>
    %c0_8 = arith.constant 0 : index
    %c0_9 = arith.constant 0 : index
    %c0_10 = arith.constant 0 : index
    %5 = vector.load %arg15[%c0_8, %c0_9, %c0_10] : memref<4x8x48xbf16, #tpu.memory_space<vmem>>, vector<4x8x16xbf16>
    tpu.vector_store %arg15[%c0_8, %c0_9, %c0_10], %4 {strides = array<i32>} : memref<4x8x48xbf16, #tpu.memory_space<vmem>>, vector<4x8x16xbf16>,
    %c0_11 = arith.constant 0 : index
    %c1 = arith.constant 1 : index
    %c0_12 = arith.constant 0 : index
    %c0_13 = arith.constant 0 : index
    %c0_14 = arith.constant 0 : index
    %6 = vector.load %arg1[%c0_11, %c1, %c0_12, %c0_13, %c0_14] : memref<1x4x9x9x16xbf16, #tpu.memory_space<vmem>>, vector<1x1x4x8x16xbf16>
    %7 = vector.shape_cast %6 : vector<1x1x4x8x16xbf16> to vector<4x8x16xbf16>
    %c0_15 = arith.constant 0 : index
    %c0_16 = arith.constant 0 : index
    %c16 = arith.constant 16 : index
    %8 = vector.load %arg15[%c0_15, %c0_16, %c16] : memref<4x8x48xbf16, #tpu.memory_space<vmem>>, vector<4x8x16xbf16>
    tpu.vector_store %arg15[%c0_15, %c0_16, %c16], %7 {strides = array<i32>} : memref<4x8x48xbf16, #tpu.memory_space<vmem>>, vector<4x8x16xbf16>,
    %c0_17 = arith.constant 0 : index
    %c0_18 = arith.constant 0 : index
    %c0_19 = arith.constant 0 : index
    %c1_20 = arith.constant 1 : index
    %c0_21 = arith.constant 0 : index
    %9 = vector.load %arg1[%c0_17, %c0_18, %c0_19, %c1_20, %c0_21] : memref<1x4x9x9x16xbf16, #tpu.memory_space<vmem>>, vector<1x1x4x8x16xbf16>
    %10 = vector.shape_cast %9 : vector<1x1x4x8x16xbf16> to vector<4x8x16xbf16>
    %c0_22 = arith.constant 0 : index
    %c0_23 = arith.constant 0 : index
    %c32 = arith.constant 32 : index
    %11 = vector.load %arg15[%c0_22, %c0_23, %c32] : memref<4x8x48xbf16, #tpu.memory_space<vmem>>, vector<4x8x16xbf16>
    tpu.vector_store %arg15[%c0_22, %c0_23, %c32], %10 {strides = array<i32>} : memref<4x8x48xbf16, #tpu.memory_space<vmem>>, vector<4x8x16xbf16>,
    %c0_24 = arith.constant 0 : index
    %c0_25 = arith.constant 0 : index
    %c0_26 = arith.constant 0 : index
    %12 = vector.load %arg15[%c0_24, %c0_25, %c0_26] : memref<4x8x48xbf16, #tpu.memory_space<vmem>>, vector<4x8x48xbf16>
    %13 = vector.shape_cast %12 : vector<4x8x48xbf16> to vector<32x48xbf16>
    %c0_27 = arith.constant 0 : index
    %c0_28 = arith.constant 0 : index
    %c0_29 = arith.constant 0 : index
    %14 = vector.load %arg2[%c0_27, %c0_28, %c0_29] : memref<3x48x32xbf16, #tpu.memory_space<vmem>>, vector<1x48x32xbf16>
    %15 = vector.shape_cast %14 : vector<1x48x32xbf16> to vector<48x32xbf16>
    %cst_30 = arith.constant dense<0.000000e+00> : vector<32x32xf32>
    %16 = tpu.matmul %13, %15, %cst_30 {dimension_numbers = #tpu.dot_dimension_numbers<[1], [0], [0], [1], [0, 0, 1, 1], [], []>} : vector<32x48xbf16>, vector<48x32xbf16>, vector<32x32xf32> -> vector<32x32xf32>
    %17 = arith.addf %2, %16 : vector<32x32xf32>
    %c0_31 = arith.constant 0 : index
    %c2 = arith.constant 2 : index
    %c0_32 = arith.constant 0 : index
    %c0_33 = arith.constant 0 : index
    %c0_34 = arith.constant 0 : index
    %18 = vector.load %arg1[%c0_31, %c2, %c0_32, %c0_33, %c0_34] : memref<1x4x9x9x16xbf16, #tpu.memory_space<vmem>>, vector<1x1x4x8x16xbf16>
    %19 = vector.shape_cast %18 : vector<1x1x4x8x16xbf16> to vector<4x8x16xbf16>
    %c0_35 = arith.constant 0 : index
    %c0_36 = arith.constant 0 : index
    %c0_37 = arith.constant 0 : index
    %20 = vector.load %arg15[%c0_35, %c0_36, %c0_37] : memref<4x8x48xbf16, #tpu.memory_space<vmem>>, vector<4x8x16xbf16>
    tpu.vector_store %arg15[%c0_35, %c0_36, %c0_37], %19 {strides = array<i32>} : memref<4x8x48xbf16, #tpu.memory_space<vmem>>, vector<4x8x16xbf16>,
    %c0_38 = arith.constant 0 : index
    %c3 = arith.constant 3 : index
    %c0_39 = arith.constant 0 : index
    %c0_40 = arith.constant 0 : index
    %c0_41 = arith.constant 0 : index
    %21 = vector.load %arg1[%c0_38, %c3, %c0_39, %c0_40, %c0_41] : memref<1x4x9x9x16xbf16, #tpu.memory_space<vmem>>, vector<1x1x4x8x16xbf16>
    %22 = vector.shape_cast %21 : vector<1x1x4x8x16xbf16> to vector<4x8x16xbf16>
    %c0_42 = arith.constant 0 : index
    %c0_43 = arith.constant 0 : index
    %c16_44 = arith.constant 16 : index
    %23 = vector.load %arg15[%c0_42, %c0_43, %c16_44] : memref<4x8x48xbf16, #tpu.memory_space<vmem>>, vector<4x8x16xbf16>
    tpu.vector_store %arg15[%c0_42, %c0_43, %c16_44], %22 {strides = array<i32>} : memref<4x8x48xbf16, #tpu.memory_space<vmem>>, vector<4x8x16xbf16>,
    %c0_45 = arith.constant 0 : index
    %c2_46 = arith.constant 2 : index
    %c0_47 = arith.constant 0 : index
    %c1_48 = arith.constant 1 : index
    %c0_49 = arith.constant 0 : index
    %24 = vector.load %arg1[%c0_45, %c2_46, %c0_47, %c1_48, %c0_49] : memref<1x4x9x9x16xbf16, #tpu.memory_space<vmem>>, vector<1x1x4x8x16xbf16>
    %25 = vector.shape_cast %24 : vector<1x1x4x8x16xbf16> to vector<4x8x16xbf16>
    %c0_50 = arith.constant 0 : index
    %c0_51 = arith.constant 0 : index
    %c32_52 = arith.constant 32 : index
    %26 = vector.load %arg15[%c0_50, %c0_51, %c32_52] : memref<4x8x48xbf16, #tpu.memory_space<vmem>>, vector<4x8x16xbf16>
    tpu.vector_store %arg15[%c0_50, %c0_51, %c32_52], %25 {strides = array<i32>} : memref<4x8x48xbf16, #tpu.memory_space<vmem>>, vector<4x8x16xbf16>,
    %c0_53 = arith.constant 0 : index
    %c0_54 = arith.constant 0 : index
    %c0_55 = arith.constant 0 : index
    %27 = vector.load %arg15[%c0_53, %c0_54, %c0_55] : memref<4x8x48xbf16, #tpu.memory_space<vmem>>, vector<4x8x48xbf16>
    %28 = vector.shape_cast %27 : vector<4x8x48xbf16> to vector<32x48xbf16>
    %c1_56 = arith.constant 1 : index
    %c0_57 = arith.constant 0 : index
    %c0_58 = arith.constant 0 : index
    %29 = vector.load %arg2[%c1_56, %c0_57, %c0_58] : memref<3x48x32xbf16, #tpu.memory_space<vmem>>, vector<1x48x32xbf16>
    %30 = vector.shape_cast %29 : vector<1x48x32xbf16> to vector<48x32xbf16>
    %cst_59 = arith.constant dense<0.000000e+00> : vector<32x32xf32>
    %31 = tpu.matmul %28, %30, %cst_59 {dimension_numbers = #tpu.dot_dimension_numbers<[1], [0], [0], [1], [0, 0, 1, 1], [], []>} : vector<32x48xbf16>, vector<48x32xbf16>, vector<32x32xf32> -> vector<32x32xf32>
    %32 = arith.addf %17, %31 : vector<32x32xf32>
    %c0_60 = arith.constant 0 : index
    %c0_61 = arith.constant 0 : index
    %c1_62 = arith.constant 1 : index
    %c0_63 = arith.constant 0 : index
    %c0_64 = arith.constant 0 : index
    %33 = vector.load %arg1[%c0_60, %c0_61, %c1_62, %c0_63, %c0_64] : memref<1x4x9x9x16xbf16, #tpu.memory_space<vmem>>, vector<1x1x4x8x16xbf16>
    %34 = vector.shape_cast %33 : vector<1x1x4x8x16xbf16> to vector<4x8x16xbf16>
    %c0_65 = arith.constant 0 : index
    %c0_66 = arith.constant 0 : index
    %c0_67 = arith.constant 0 : index
    %35 = vector.load %arg15[%c0_65, %c0_66, %c0_67] : memref<4x8x48xbf16, #tpu.memory_space<vmem>>, vector<4x8x16xbf16>
    tpu.vector_store %arg15[%c0_65, %c0_66, %c0_67], %34 {strides = array<i32>} : memref<4x8x48xbf16, #tpu.memory_space<vmem>>, vector<4x8x16xbf16>,
    %c0_68 = arith.constant 0 : index
    %c1_69 = arith.constant 1 : index
    %c1_70 = arith.constant 1 : index
    %c0_71 = arith.constant 0 : index
    %c0_72 = arith.constant 0 : index
    %36 = vector.load %arg1[%c0_68, %c1_69, %c1_70, %c0_71, %c0_72] : memref<1x4x9x9x16xbf16, #tpu.memory_space<vmem>>, vector<1x1x4x8x16xbf16>
    %37 = vector.shape_cast %36 : vector<1x1x4x8x16xbf16> to vector<4x8x16xbf16>
    %c0_73 = arith.constant 0 : index
    %c0_74 = arith.constant 0 : index
    %c16_75 = arith.constant 16 : index
    %38 = vector.load %arg15[%c0_73, %c0_74, %c16_75] : memref<4x8x48xbf16, #tpu.memory_space<vmem>>, vector<4x8x16xbf16>
    tpu.vector_store %arg15[%c0_73, %c0_74, %c16_75], %37 {strides = array<i32>} : memref<4x8x48xbf16, #tpu.memory_space<vmem>>, vector<4x8x16xbf16>,
    %c0_76 = arith.constant 0 : index
    %c0_77 = arith.constant 0 : index
    %c1_78 = arith.constant 1 : index
    %c1_79 = arith.constant 1 : index
    %c0_80 = arith.constant 0 : index
    %39 = vector.load %arg1[%c0_76, %c0_77, %c1_78, %c1_79, %c0_80] : memref<1x4x9x9x16xbf16, #tpu.memory_space<vmem>>, vector<1x1x4x8x16xbf16>
    %40 = vector.shape_cast %39 : vector<1x1x4x8x16xbf16> to vector<4x8x16xbf16>
    %c0_81 = arith.constant 0 : index
    %c0_82 = arith.constant 0 : index
    %c32_83 = arith.constant 32 : index
    %41 = vector.load %arg15[%c0_81, %c0_82, %c32_83] : memref<4x8x48xbf16, #tpu.memory_space<vmem>>, vector<4x8x16xbf16>
    tpu.vector_store %arg15[%c0_81, %c0_82, %c32_83], %40 {strides = array<i32>} : memref<4x8x48xbf16, #tpu.memory_space<vmem>>, vector<4x8x16xbf16>,
    %c0_84 = arith.constant 0 : index
    %c0_85 = arith.constant 0 : index
    %c0_86 = arith.constant 0 : index
    %42 = vector.load %arg15[%c0_84, %c0_85, %c0_86] : memref<4x8x48xbf16, #tpu.memory_space<vmem>>, vector<4x8x48xbf16>
    %43 = vector.shape_cast %42 : vector<4x8x48xbf16> to vector<32x48xbf16>
    %c2_87 = arith.constant 2 : index
    %c0_88 = arith.constant 0 : index
    %c0_89 = arith.constant 0 : index
    %44 = vector.load %arg2[%c2_87, %c0_88, %c0_89] : memref<3x48x32xbf16, #tpu.memory_space<vmem>>, vector<1x48x32xbf16>
    %45 = vector.shape_cast %44 : vector<1x48x32xbf16> to vector<48x32xbf16>
    %cst_90 = arith.constant dense<0.000000e+00> : vector<32x32xf32>
    %46 = tpu.matmul %43, %45, %cst_90 {dimension_numbers = #tpu.dot_dimension_numbers<[1], [0], [0], [1], [0, 0, 1, 1], [], []>} : vector<32x48xbf16>, vector<48x32xbf16>, vector<32x32xf32> -> vector<32x32xf32>
    %47 = arith.addf %32, %46 : vector<32x32xf32>
    %c0_91 = arith.constant 0 : index
    %c0_92 = arith.constant 0 : index
    %48 = vector.load %arg3[%c0_91, %c0_92] : memref<1x32xf32, #tpu.memory_space<vmem>>, vector<1x32xf32>
    %49 = vector.broadcast %48 : vector<1x32xf32> to vector<32x32xf32>
    %50 = arith.mulf %47, %49 : vector<32x32xf32>
    %c0_93 = arith.constant 0 : index
    %c0_94 = arith.constant 0 : index
    %51 = vector.load %arg4[%c0_93, %c0_94] : memref<1x32xf32, #tpu.memory_space<vmem>>, vector<1x32xf32>
    %52 = vector.broadcast %51 : vector<1x32xf32> to vector<32x32xf32>
    %53 = arith.addf %50, %52 : vector<32x32xf32>
    %cst_95 = arith.constant 2.000000e+01 : f32
    %54 = vector.broadcast %cst_95 : f32 to vector<32x32xf32>
    %55 = arith.minimumf %53, %54 : vector<32x32xf32>
    %56 = math.exp %55 : vector<32x32xf32>
    %cst_96 = arith.constant 1.000000e+00 : f32
    %57 = vector.broadcast %cst_96 : f32 to vector<32x32xf32>
    %58 = arith.addf %57, %56 : vector<32x32xf32>
    %cst_97 = arith.constant 1.000000e+00 : f32
    %59 = vector.broadcast %cst_97 : f32 to vector<32x32xf32>
    %60 = arith.addf %59, %56 : vector<32x32xf32>
    %61 = arith.mulf %58, %60 : vector<32x32xf32>
    %cst_98 = arith.constant 1.000000e+00 : f32
    %62 = vector.broadcast %cst_98 : f32 to vector<32x32xf32>
    %63 = arith.subf %61, %62 : vector<32x32xf32>
    %64 = arith.mulf %53, %63 : vector<32x32xf32>
    %cst_99 = arith.constant 1.000000e+00 : f32
    %65 = vector.broadcast %cst_99 : f32 to vector<32x32xf32>
    %66 = arith.addf %61, %65 : vector<32x32xf32>
    %67 = tpu.reciprocal %66 {approx = true} : vector<32x32xf32> -> vector<32x32xf32>
    %68 = arith.mulf %64, %67 : vector<32x32xf32>
    %69 = vector.shape_cast %68 : vector<32x32xf32> to vector<4x8x32xf32>
    %70 = arith.truncf %69 : vector<4x8x32xf32> to vector<4x8x32xbf16>
    %c1_100 = arith.constant 1 : index
    %c1_101 = arith.constant 1 : index
    %c0_102 = arith.constant 0 : index
    %71 = vector.load %arg14[%c1_100, %c1_101, %c0_102] : memref<10x10x32xbf16, #tpu.memory_space<vmem>>, vector<4x8x32xbf16>
    tpu.vector_store %arg14[%c1_100, %c1_101, %c0_102], %70 {strides = array<i32>} : memref<10x10x32xbf16, #tpu.memory_space<vmem>>, vector<4x8x32xbf16>,
    %cst_103 = arith.constant 0.000000e+00 : f32
    %72 = vector.broadcast %cst_103 : f32 to vector<32x32xf32>
    %c0_104 = arith.constant 0 : index
    %c0_105 = arith.constant 0 : index
    %c4 = arith.constant 4 : index
    %c0_106 = arith.constant 0 : index
    %c0_107 = arith.constant 0 : index
    %73 = vector.load %arg1[%c0_104, %c0_105, %c4, %c0_106, %c0_107] : memref<1x4x9x9x16xbf16, #tpu.memory_space<vmem>>, vector<1x1x4x8x16xbf16>
    %74 = vector.shape_cast %73 : vector<1x1x4x8x16xbf16> to vector<4x8x16xbf16>
    %c0_108 = arith.constant 0 : index
    %c0_109 = arith.constant 0 : index
    %c0_110 = arith.constant 0 : index
    %75 = vector.load %arg15[%c0_108, %c0_109, %c0_110] : memref<4x8x48xbf16, #tpu.memory_space<vmem>>, vector<4x8x16xbf16>
    tpu.vector_store %arg15[%c0_108, %c0_109, %c0_110], %74 {strides = array<i32>} : memref<4x8x48xbf16, #tpu.memory_space<vmem>>, vector<4x8x16xbf16>,
    %c0_111 = arith.constant 0 : index
    %c1_112 = arith.constant 1 : index
    %c4_113 = arith.constant 4 : index
    %c0_114 = arith.constant 0 : index
    %c0_115 = arith.constant 0 : index
    %76 = vector.load %arg1[%c0_111, %c1_112, %c4_113, %c0_114, %c0_115] : memref<1x4x9x9x16xbf16, #tpu.memory_space<vmem>>, vector<1x1x4x8x16xbf16>
    %77 = vector.shape_cast %76 : vector<1x1x4x8x16xbf16> to vector<4x8x16xbf16>
    %c0_116 = arith.constant 0 : index
    %c0_117 = arith.constant 0 : index
    %c16_118 = arith.constant 16 : index
    %78 = vector.load %arg15[%c0_116, %c0_117, %c16_118] : memref<4x8x48xbf16, #tpu.memory_space<vmem>>, vector<4x8x16xbf16>
    tpu.vector_store %arg15[%c0_116, %c0_117, %c16_118], %77 {strides = array<i32>} : memref<4x8x48xbf16, #tpu.memory_space<vmem>>, vector<4x8x16xbf16>,
    %c0_119 = arith.constant 0 : index
    %c0_120 = arith.constant 0 : index
    %c4_121 = arith.constant 4 : index
    %c1_122 = arith.constant 1 : index
    %c0_123 = arith.constant 0 : index
    %79 = vector.load %arg1[%c0_119, %c0_120, %c4_121, %c1_122, %c0_123] : memref<1x4x9x9x16xbf16, #tpu.memory_space<vmem>>, vector<1x1x4x8x16xbf16>
    %80 = vector.shape_cast %79 : vector<1x1x4x8x16xbf16> to vector<4x8x16xbf16>
    %c0_124 = arith.constant 0 : index
    %c0_125 = arith.constant 0 : index
    %c32_126 = arith.constant 32 : index
    %81 = vector.load %arg15[%c0_124, %c0_125, %c32_126] : memref<4x8x48xbf16, #tpu.memory_space<vmem>>, vector<4x8x16xbf16>
    tpu.vector_store %arg15[%c0_124, %c0_125, %c32_126], %80 {strides = array<i32>} : memref<4x8x48xbf16, #tpu.memory_space<vmem>>, vector<4x8x16xbf16>,
    %c0_127 = arith.constant 0 : index
    %c0_128 = arith.constant 0 : index
    %c0_129 = arith.constant 0 : index
    %82 = vector.load %arg15[%c0_127, %c0_128, %c0_129] : memref<4x8x48xbf16, #tpu.memory_space<vmem>>, vector<4x8x48xbf16>
    %83 = vector.shape_cast %82 : vector<4x8x48xbf16> to vector<32x48xbf16>
    %c0_130 = arith.constant 0 : index
    %c0_131 = arith.constant 0 : index
    %c0_132 = arith.constant 0 : index
    %84 = vector.load %arg2[%c0_130, %c0_131, %c0_132] : memref<3x48x32xbf16, #tpu.memory_space<vmem>>, vector<1x48x32xbf16>
    %85 = vector.shape_cast %84 : vector<1x48x32xbf16> to vector<48x32xbf16>
    %cst_133 = arith.constant dense<0.000000e+00> : vector<32x32xf32>
    %86 = tpu.matmul %83, %85, %cst_133 {dimension_numbers = #tpu.dot_dimension_numbers<[1], [0], [0], [1], [0, 0, 1, 1], [], []>} : vector<32x48xbf16>, vector<48x32xbf16>, vector<32x32xf32> -> vector<32x32xf32>
    %87 = arith.addf %72, %86 : vector<32x32xf32>
    %c0_134 = arith.constant 0 : index
    %c2_135 = arith.constant 2 : index
    %c4_136 = arith.constant 4 : index
    %c0_137 = arith.constant 0 : index
    %c0_138 = arith.constant 0 : index
    %88 = vector.load %arg1[%c0_134, %c2_135, %c4_136, %c0_137, %c0_138] : memref<1x4x9x9x16xbf16, #tpu.memory_space<vmem>>, vector<1x1x4x8x16xbf16>
    %89 = vector.shape_cast %88 : vector<1x1x4x8x16xbf16> to vector<4x8x16xbf16>
    %c0_139 = arith.constant 0 : index
    %c0_140 = arith.constant 0 : index
    %c0_141 = arith.constant 0 : index
    %90 = vector.load %arg15[%c0_139, %c0_140, %c0_141] : memref<4x8x48xbf16, #tpu.memory_space<vmem>>, vector<4x8x16xbf16>
    tpu.vector_store %arg15[%c0_139, %c0_140, %c0_141], %89 {strides = array<i32>} : memref<4x8x48xbf16, #tpu.memory_space<vmem>>, vector<4x8x16xbf16>,
    %c0_142 = arith.constant 0 : index
    %c3_143 = arith.constant 3 : index
    %c4_144 = arith.constant 4 : index
    %c0_145 = arith.constant 0 : index
    %c0_146 = arith.constant 0 : index
    %91 = vector.load %arg1[%c0_142, %c3_143, %c4_144, %c0_145, %c0_146] : memref<1x4x9x9x16xbf16, #tpu.memory_space<vmem>>, vector<1x1x4x8x16xbf16>
    %92 = vector.shape_cast %91 : vector<1x1x4x8x16xbf16> to vector<4x8x16xbf16>
    %c0_147 = arith.constant 0 : index
    %c0_148 = arith.constant 0 : index
    %c16_149 = arith.constant 16 : index
    %93 = vector.load %arg15[%c0_147, %c0_148, %c16_149] : memref<4x8x48xbf16, #tpu.memory_space<vmem>>, vector<4x8x16xbf16>
    tpu.vector_store %arg15[%c0_147, %c0_148, %c16_149], %92 {strides = array<i32>} : memref<4x8x48xbf16, #tpu.memory_space<vmem>>, vector<4x8x16xbf16>,
    %c0_150 = arith.constant 0 : index
    %c2_151 = arith.constant 2 : index
    %c4_152 = arith.constant 4 : index
    %c1_153 = arith.constant 1 : index
    %c0_154 = arith.constant 0 : index
    %94 = vector.load %arg1[%c0_150, %c2_151, %c4_152, %c1_153, %c0_154] : memref<1x4x9x9x16xbf16, #tpu.memory_space<vmem>>, vector<1x1x4x8x16xbf16>
    %95 = vector.shape_cast %94 : vector<1x1x4x8x16xbf16> to vector<4x8x16xbf16>
    %c0_155 = arith.constant 0 : index
    %c0_156 = arith.constant 0 : index
    %c32_157 = arith.constant 32 : index
    %96 = vector.load %arg15[%c0_155, %c0_156, %c32_157] : memref<4x8x48xbf16, #tpu.memory_space<vmem>>, vector<4x8x16xbf16>
    tpu.vector_store %arg15[%c0_155, %c0_156, %c32_157], %95 {strides = array<i32>} : memref<4x8x48xbf16, #tpu.memory_space<vmem>>, vector<4x8x16xbf16>,
    %c0_158 = arith.constant 0 : index
    %c0_159 = arith.constant 0 : index
    %c0_160 = arith.constant 0 : index
    %97 = vector.load %arg15[%c0_158, %c0_159, %c0_160] : memref<4x8x48xbf16, #tpu.memory_space<vmem>>, vector<4x8x48xbf16>
    %98 = vector.shape_cast %97 : vector<4x8x48xbf16> to vector<32x48xbf16>
    %c1_161 = arith.constant 1 : index
    %c0_162 = arith.constant 0 : index
    %c0_163 = arith.constant 0 : index
    %99 = vector.load %arg2[%c1_161, %c0_162, %c0_163] : memref<3x48x32xbf16, #tpu.memory_space<vmem>>, vector<1x48x32xbf16>
    %100 = vector.shape_cast %99 : vector<1x48x32xbf16> to vector<48x32xbf16>
    %cst_164 = arith.constant dense<0.000000e+00> : vector<32x32xf32>
    %101 = tpu.matmul %98, %100, %cst_164 {dimension_numbers = #tpu.dot_dimension_numbers<[1], [0], [0], [1], [0, 0, 1, 1], [], []>} : vector<32x48xbf16>, vector<48x32xbf16>, vector<32x32xf32> -> vector<32x32xf32>
    %102 = arith.addf %87, %101 : vector<32x32xf32>
    %c0_165 = arith.constant 0 : index
    %c0_166 = arith.constant 0 : index
    %c5 = arith.constant 5 : index
    %c0_167 = arith.constant 0 : index
    %c0_168 = arith.constant 0 : index
    %103 = vector.load %arg1[%c0_165, %c0_166, %c5, %c0_167, %c0_168] : memref<1x4x9x9x16xbf16, #tpu.memory_space<vmem>>, vector<1x1x4x8x16xbf16>
    %104 = vector.shape_cast %103 : vector<1x1x4x8x16xbf16> to vector<4x8x16xbf16>
    %c0_169 = arith.constant 0 : index
    %c0_170 = arith.constant 0 : index
    %c0_171 = arith.constant 0 : index
    %105 = vector.load %arg15[%c0_169, %c0_170, %c0_171] : memref<4x8x48xbf16, #tpu.memory_space<vmem>>, vector<4x8x16xbf16>
    tpu.vector_store %arg15[%c0_169, %c0_170, %c0_171], %104 {strides = array<i32>} : memref<4x8x48xbf16, #tpu.memory_space<vmem>>, vector<4x8x16xbf16>,
    %c0_172 = arith.constant 0 : index
    %c1_173 = arith.constant 1 : index
    %c5_174 = arith.constant 5 : index
    %c0_175 = arith.constant 0 : index
    %c0_176 = arith.constant 0 : index
    %106 = vector.load %arg1[%c0_172, %c1_173, %c5_174, %c0_175, %c0_176] : memref<1x4x9x9x16xbf16, #tpu.memory_space<vmem>>, vector<1x1x4x8x16xbf16>
    %107 = vector.shape_cast %106 : vector<1x1x4x8x16xbf16> to vector<4x8x16xbf16>
    %c0_177 = arith.constant 0 : index
    %c0_178 = arith.constant 0 : index
    %c16_179 = arith.constant 16 : index
    %108 = vector.load %arg15[%c0_177, %c0_178, %c16_179] : memref<4x8x48xbf16, #tpu.memory_space<vmem>>, vector<4x8x16xbf16>
    tpu.vector_store %arg15[%c0_177, %c0_178, %c16_179], %107 {strides = array<i32>} : memref<4x8x48xbf16, #tpu.memory_space<vmem>>, vector<4x8x16xbf16>,
    %c0_180 = arith.constant 0 : index
    %c0_181 = arith.constant 0 : index
    %c5_182 = arith.constant 5 : index
    %c1_183 = arith.constant 1 : index
    %c0_184 = arith.constant 0 : index
    %109 = vector.load %arg1[%c0_180, %c0_181, %c5_182, %c1_183, %c0_184] : memref<1x4x9x9x16xbf16, #tpu.memory_space<vmem>>, vector<1x1x4x8x16xbf16>
    %110 = vector.shape_cast %109 : vector<1x1x4x8x16xbf16> to vector<4x8x16xbf16>
    %c0_185 = arith.constant 0 : index
    %c0_186 = arith.constant 0 : index
    %c32_187 = arith.constant 32 : index
    %111 = vector.load %arg15[%c0_185, %c0_186, %c32_187] : memref<4x8x48xbf16, #tpu.memory_space<vmem>>, vector<4x8x16xbf16>
    tpu.vector_store %arg15[%c0_185, %c0_186, %c32_187], %110 {strides = array<i32>} : memref<4x8x48xbf16, #tpu.memory_space<vmem>>, vector<4x8x16xbf16>,
    %c0_188 = arith.constant 0 : index
    %c0_189 = arith.constant 0 : index
    %c0_190 = arith.constant 0 : index
    %112 = vector.load %arg15[%c0_188, %c0_189, %c0_190] : memref<4x8x48xbf16, #tpu.memory_space<vmem>>, vector<4x8x48xbf16>
    %113 = vector.shape_cast %112 : vector<4x8x48xbf16> to vector<32x48xbf16>
    %c2_191 = arith.constant 2 : index
    %c0_192 = arith.constant 0 : index
    %c0_193 = arith.constant 0 : index
    %114 = vector.load %arg2[%c2_191, %c0_192, %c0_193] : memref<3x48x32xbf16, #tpu.memory_space<vmem>>, vector<1x48x32xbf16>
    %115 = vector.shape_cast %114 : vector<1x48x32xbf16> to vector<48x32xbf16>
    %cst_194 = arith.constant dense<0.000000e+00> : vector<32x32xf32>
    %116 = tpu.matmul %113, %115, %cst_194 {dimension_numbers = #tpu.dot_dimension_numbers<[1], [0], [0], [1], [0, 0, 1, 1], [], []>} : vector<32x48xbf16>, vector<48x32xbf16>, vector<32x32xf32> -> vector<32x32xf32>
    %117 = arith.addf %102, %116 : vector<32x32xf32>
    %c0_195 = arith.constant 0 : index
    %c0_196 = arith.constant 0 : index
    %118 = vector.load %arg3[%c0_195, %c0_196] : memref<1x32xf32, #tpu.memory_space<vmem>>, vector<1x32xf32>
    %119 = vector.broadcast %118 : vector<1x32xf32> to vector<32x32xf32>
    %120 = arith.mulf %117, %119 : vector<32x32xf32>
    %c0_197 = arith.constant 0 : index
    %c0_198 = arith.constant 0 : index
    %121 = vector.load %arg4[%c0_197, %c0_198] : memref<1x32xf32, #tpu.memory_space<vmem>>, vector<1x32xf32>
    %122 = vector.broadcast %121 : vector<1x32xf32> to vector<32x32xf32>
    %123 = arith.addf %120, %122 : vector<32x32xf32>
    %cst_199 = arith.constant 2.000000e+01 : f32
    %124 = vector.broadcast %cst_199 : f32 to vector<32x32xf32>
    %125 = arith.minimumf %123, %124 : vector<32x32xf32>
    %126 = math.exp %125 : vector<32x32xf32>
    %cst_200 = arith.constant 1.000000e+00 : f32
    %127 = vector.broadcast %cst_200 : f32 to vector<32x32xf32>
    %128 = arith.addf %127, %126 : vector<32x32xf32>
    %cst_201 = arith.constant 1.000000e+00 : f32
    %129 = vector.broadcast %cst_201 : f32 to vector<32x32xf32>
    %130 = arith.addf %129, %126 : vector<32x32xf32>
    %131 = arith.mulf %128, %130 : vector<32x32xf32>
    %cst_202 = arith.constant 1.000000e+00 : f32
    %132 = vector.broadcast %cst_202 : f32 to vector<32x32xf32>
    %133 = arith.subf %131, %132 : vector<32x32xf32>
    %134 = arith.mulf %123, %133 : vector<32x32xf32>
    %cst_203 = arith.constant 1.000000e+00 : f32
    %135 = vector.broadcast %cst_203 : f32 to vector<32x32xf32>
    %136 = arith.addf %131, %135 : vector<32x32xf32>
    %137 = tpu.reciprocal %136 {approx = true} : vector<32x32xf32> -> vector<32x32xf32>
    %138 = arith.mulf %134, %137 : vector<32x32xf32>
    %139 = vector.shape_cast %138 : vector<32x32xf32> to vector<4x8x32xf32>
    %140 = arith.truncf %139 : vector<4x8x32xf32> to vector<4x8x32xbf16>
    %c5_204 = arith.constant 5 : index
    %c1_205 = arith.constant 1 : index
    %c0_206 = arith.constant 0 : index
    %141 = vector.load %arg14[%c5_204, %c1_205, %c0_206] : memref<10x10x32xbf16, #tpu.memory_space<vmem>>, vector<4x8x32xbf16>
    tpu.vector_store %arg14[%c5_204, %c1_205, %c0_206], %140 {strides = array<i32>} : memref<10x10x32xbf16, #tpu.memory_space<vmem>>, vector<4x8x32xbf16>,
    %cst_207 = arith.constant 0.000000e+00 : f32
    %142 = vector.broadcast %cst_207 : f32 to vector<32x32xf32>
    %c0_208 = arith.constant 0 : index
    %c0_209 = arith.constant 0 : index
    %c0_210 = arith.constant 0 : index
    %143 = vector.load %arg14[%c0_208, %c0_209, %c0_210] : memref<10x10x32xbf16, #tpu.memory_space<vmem>>, vector<4x8x32xbf16>
    %c0_211 = arith.constant 0 : index
    %c0_212 = arith.constant 0 : index
    %c0_213 = arith.constant 0 : index
    %144 = vector.load %arg16[%c0_211, %c0_212, %c0_213] : memref<4x8x96xbf16, #tpu.memory_space<vmem>>, vector<4x8x32xbf16>
    tpu.vector_store %arg16[%c0_211, %c0_212, %c0_213], %143 {strides = array<i32>} : memref<4x8x96xbf16, #tpu.memory_space<vmem>>, vector<4x8x32xbf16>,
    %c0_214 = arith.constant 0 : index
    %c1_215 = arith.constant 1 : index
    %c0_216 = arith.constant 0 : index
    %145 = vector.load %arg14[%c0_214, %c1_215, %c0_216] : memref<10x10x32xbf16, #tpu.memory_space<vmem>>, vector<4x8x32xbf16>
    %c0_217 = arith.constant 0 : index
    %c0_218 = arith.constant 0 : index
    %c32_219 = arith.constant 32 : index
    %146 = vector.load %arg16[%c0_217, %c0_218, %c32_219] : memref<4x8x96xbf16, #tpu.memory_space<vmem>>, vector<4x8x32xbf16>
    tpu.vector_store %arg16[%c0_217, %c0_218, %c32_219], %145 {strides = array<i32>} : memref<4x8x96xbf16, #tpu.memory_space<vmem>>, vector<4x8x32xbf16>,
    %c0_220 = arith.constant 0 : index
    %c2_221 = arith.constant 2 : index
    %c0_222 = arith.constant 0 : index
    %147 = vector.load %arg14[%c0_220, %c2_221, %c0_222] : memref<10x10x32xbf16, #tpu.memory_space<vmem>>, vector<4x8x32xbf16>
    %c0_223 = arith.constant 0 : index
    %c0_224 = arith.constant 0 : index
    %c64 = arith.constant 64 : index
    %148 = vector.load %arg16[%c0_223, %c0_224, %c64] : memref<4x8x96xbf16, #tpu.memory_space<vmem>>, vector<4x8x32xbf16>
    tpu.vector_store %arg16[%c0_223, %c0_224, %c64], %147 {strides = array<i32>} : memref<4x8x96xbf16, #tpu.memory_space<vmem>>, vector<4x8x32xbf16>,
    %c0_225 = arith.constant 0 : index
    %c0_226 = arith.constant 0 : index
    %c0_227 = arith.constant 0 : index
    %149 = vector.load %arg16[%c0_225, %c0_226, %c0_227] : memref<4x8x96xbf16, #tpu.memory_space<vmem>>, vector<4x8x96xbf16>
    %150 = vector.shape_cast %149 : vector<4x8x96xbf16> to vector<32x96xbf16>
    %c0_228 = arith.constant 0 : index
    %c0_229 = arith.constant 0 : index
    %c0_230 = arith.constant 0 : index
    %151 = vector.load %arg5[%c0_228, %c0_229, %c0_230] : memref<3x96x32xbf16, #tpu.memory_space<vmem>>, vector<1x96x32xbf16>
    %152 = vector.shape_cast %151 : vector<1x96x32xbf16> to vector<96x32xbf16>
    %cst_231 = arith.constant dense<0.000000e+00> : vector<32x32xf32>
    %153 = tpu.matmul %150, %152, %cst_231 {dimension_numbers = #tpu.dot_dimension_numbers<[1], [0], [0], [1], [0, 0, 1, 1], [], []>} : vector<32x96xbf16>, vector<96x32xbf16>, vector<32x32xf32> -> vector<32x32xf32>
    %154 = arith.addf %142, %153 : vector<32x32xf32>
    %c1_232 = arith.constant 1 : index
    %c0_233 = arith.constant 0 : index
    %c0_234 = arith.constant 0 : index
    %155 = vector.load %arg14[%c1_232, %c0_233, %c0_234] : memref<10x10x32xbf16, #tpu.memory_space<vmem>>, vector<4x8x32xbf16>
    %c0_235 = arith.constant 0 : index
    %c0_236 = arith.constant 0 : index
    %c0_237 = arith.constant 0 : index
    %156 = vector.load %arg16[%c0_235, %c0_236, %c0_237] : memref<4x8x96xbf16, #tpu.memory_space<vmem>>, vector<4x8x32xbf16>
    tpu.vector_store %arg16[%c0_235, %c0_236, %c0_237], %155 {strides = array<i32>} : memref<4x8x96xbf16, #tpu.memory_space<vmem>>, vector<4x8x32xbf16>,
    %c1_238 = arith.constant 1 : index
    %c1_239 = arith.constant 1 : index
    %c0_240 = arith.constant 0 : index
    %157 = vector.load %arg14[%c1_238, %c1_239, %c0_240] : memref<10x10x32xbf16, #tpu.memory_space<vmem>>, vector<4x8x32xbf16>
    %c0_241 = arith.constant 0 : index
    %c0_242 = arith.constant 0 : index
    %c32_243 = arith.constant 32 : index
    %158 = vector.load %arg16[%c0_241, %c0_242, %c32_243] : memref<4x8x96xbf16, #tpu.memory_space<vmem>>, vector<4x8x32xbf16>
    tpu.vector_store %arg16[%c0_241, %c0_242, %c32_243], %157 {strides = array<i32>} : memref<4x8x96xbf16, #tpu.memory_space<vmem>>, vector<4x8x32xbf16>,
    %c1_244 = arith.constant 1 : index
    %c2_245 = arith.constant 2 : index
    %c0_246 = arith.constant 0 : index
    %159 = vector.load %arg14[%c1_244, %c2_245, %c0_246] : memref<10x10x32xbf16, #tpu.memory_space<vmem>>, vector<4x8x32xbf16>
    %c0_247 = arith.constant 0 : index
    %c0_248 = arith.constant 0 : index
    %c64_249 = arith.constant 64 : index
    %160 = vector.load %arg16[%c0_247, %c0_248, %c64_249] : memref<4x8x96xbf16, #tpu.memory_space<vmem>>, vector<4x8x32xbf16>
    tpu.vector_store %arg16[%c0_247, %c0_248, %c64_249], %159 {strides = array<i32>} : memref<4x8x96xbf16, #tpu.memory_space<vmem>>, vector<4x8x32xbf16>,
    %c0_250 = arith.constant 0 : index
    %c0_251 = arith.constant 0 : index
    %c0_252 = arith.constant 0 : index
    %161 = vector.load %arg16[%c0_250, %c0_251, %c0_252] : memref<4x8x96xbf16, #tpu.memory_space<vmem>>, vector<4x8x96xbf16>
    %162 = vector.shape_cast %161 : vector<4x8x96xbf16> to vector<32x96xbf16>
    %c1_253 = arith.constant 1 : index
    %c0_254 = arith.constant 0 : index
    %c0_255 = arith.constant 0 : index
    %163 = vector.load %arg5[%c1_253, %c0_254, %c0_255] : memref<3x96x32xbf16, #tpu.memory_space<vmem>>, vector<1x96x32xbf16>
    %164 = vector.shape_cast %163 : vector<1x96x32xbf16> to vector<96x32xbf16>
    %cst_256 = arith.constant dense<0.000000e+00> : vector<32x32xf32>
    %165 = tpu.matmul %162, %164, %cst_256 {dimension_numbers = #tpu.dot_dimension_numbers<[1], [0], [0], [1], [0, 0, 1, 1], [], []>} : vector<32x96xbf16>, vector<96x32xbf16>, vector<32x32xf32> -> vector<32x32xf32>
    %166 = arith.addf %154, %165 : vector<32x32xf32>
    %c2_257 = arith.constant 2 : index
    %c0_258 = arith.constant 0 : index
    %c0_259 = arith.constant 0 : index
    %167 = vector.load %arg14[%c2_257, %c0_258, %c0_259] : memref<10x10x32xbf16, #tpu.memory_space<vmem>>, vector<4x8x32xbf16>
    %c0_260 = arith.constant 0 : index
    %c0_261 = arith.constant 0 : index
    %c0_262 = arith.constant 0 : index
    %168 = vector.load %arg16[%c0_260, %c0_261, %c0_262] : memref<4x8x96xbf16, #tpu.memory_space<vmem>>, vector<4x8x32xbf16>
    tpu.vector_store %arg16[%c0_260, %c0_261, %c0_262], %167 {strides = array<i32>} : memref<4x8x96xbf16, #tpu.memory_space<vmem>>, vector<4x8x32xbf16>,
    %c2_263 = arith.constant 2 : index
    %c1_264 = arith.constant 1 : index
    %c0_265 = arith.constant 0 : index
    %169 = vector.load %arg14[%c2_263, %c1_264, %c0_265] : memref<10x10x32xbf16, #tpu.memory_space<vmem>>, vector<4x8x32xbf16>
    %c0_266 = arith.constant 0 : index
    %c0_267 = arith.constant 0 : index
    %c32_268 = arith.constant 32 : index
    %170 = vector.load %arg16[%c0_266, %c0_267, %c32_268] : memref<4x8x96xbf16, #tpu.memory_space<vmem>>, vector<4x8x32xbf16>
    tpu.vector_store %arg16[%c0_266, %c0_267, %c32_268], %169 {strides = array<i32>} : memref<4x8x96xbf16, #tpu.memory_space<vmem>>, vector<4x8x32xbf16>,
    %c2_269 = arith.constant 2 : index
    %c2_270 = arith.constant 2 : index
    %c0_271 = arith.constant 0 : index
    %171 = vector.load %arg14[%c2_269, %c2_270, %c0_271] : memref<10x10x32xbf16, #tpu.memory_space<vmem>>, vector<4x8x32xbf16>
    %c0_272 = arith.constant 0 : index
    %c0_273 = arith.constant 0 : index
    %c64_274 = arith.constant 64 : index
    %172 = vector.load %arg16[%c0_272, %c0_273, %c64_274] : memref<4x8x96xbf16, #tpu.memory_space<vmem>>, vector<4x8x32xbf16>
    tpu.vector_store %arg16[%c0_272, %c0_273, %c64_274], %171 {strides = array<i32>} : memref<4x8x96xbf16, #tpu.memory_space<vmem>>, vector<4x8x32xbf16>,
    %c0_275 = arith.constant 0 : index
    %c0_276 = arith.constant 0 : index
    %c0_277 = arith.constant 0 : index
    %173 = vector.load %arg16[%c0_275, %c0_276, %c0_277] : memref<4x8x96xbf16, #tpu.memory_space<vmem>>, vector<4x8x96xbf16>
    %174 = vector.shape_cast %173 : vector<4x8x96xbf16> to vector<32x96xbf16>
    %c2_278 = arith.constant 2 : index
    %c0_279 = arith.constant 0 : index
    %c0_280 = arith.constant 0 : index
    %175 = vector.load %arg5[%c2_278, %c0_279, %c0_280] : memref<3x96x32xbf16, #tpu.memory_space<vmem>>, vector<1x96x32xbf16>
    %176 = vector.shape_cast %175 : vector<1x96x32xbf16> to vector<96x32xbf16>
    %cst_281 = arith.constant dense<0.000000e+00> : vector<32x32xf32>
    %177 = tpu.matmul %174, %176, %cst_281 {dimension_numbers = #tpu.dot_dimension_numbers<[1], [0], [0], [1], [0, 0, 1, 1], [], []>} : vector<32x96xbf16>, vector<96x32xbf16>, vector<32x32xf32> -> vector<32x32xf32>
    %178 = arith.addf %166, %177 : vector<32x32xf32>
    %c0_282 = arith.constant 0 : index
    %c0_283 = arith.constant 0 : index
    %179 = vector.load %arg6[%c0_282, %c0_283] : memref<1x32xf32, #tpu.memory_space<vmem>>, vector<1x32xf32>
    %180 = vector.broadcast %179 : vector<1x32xf32> to vector<32x32xf32>
    %181 = arith.mulf %178, %180 : vector<32x32xf32>
    %c0_284 = arith.constant 0 : index
    %c0_285 = arith.constant 0 : index
    %182 = vector.load %arg7[%c0_284, %c0_285] : memref<1x32xf32, #tpu.memory_space<vmem>>, vector<1x32xf32>
    %183 = vector.broadcast %182 : vector<1x32xf32> to vector<32x32xf32>
    %184 = arith.addf %181, %183 : vector<32x32xf32>
    %c0_286 = arith.constant 0 : index
    %c0_287 = arith.constant 0 : index
    %c0_288 = arith.constant 0 : index
    %185 = vector.load %arg13[%c0_286, %c0_287, %c0_288] : memref<1x64x32xf32, #tpu.memory_space<vmem>>, vector<1x32x32xf32>
    %186 = vector.shape_cast %185 : vector<1x32x32xf32> to vector<32x32xf32>
    %187 = vector.shape_cast %184 : vector<32x32xf32> to vector<1x32x32xf32>
    tpu.vector_store %arg13[%c0_286, %c0_287, %c0_288], %187 {strides = array<i32>} : memref<1x64x32xf32, #tpu.memory_space<vmem>>, vector<1x32x32xf32>,
    %cst_289 = arith.constant 0.000000e+00 : f32
    %188 = vector.broadcast %cst_289 : f32 to vector<32x32xf32>
    %c4_290 = arith.constant 4 : index
    %c0_291 = arith.constant 0 : index
    %c0_292 = arith.constant 0 : index
    %189 = vector.load %arg14[%c4_290, %c0_291, %c0_292] : memref<10x10x32xbf16, #tpu.memory_space<vmem>>, vector<4x8x32xbf16>
    %c0_293 = arith.constant 0 : index
    %c0_294 = arith.constant 0 : index
    %c0_295 = arith.constant 0 : index
    %190 = vector.load %arg16[%c0_293, %c0_294, %c0_295] : memref<4x8x96xbf16, #tpu.memory_space<vmem>>, vector<4x8x32xbf16>
    tpu.vector_store %arg16[%c0_293, %c0_294, %c0_295], %189 {strides = array<i32>} : memref<4x8x96xbf16, #tpu.memory_space<vmem>>, vector<4x8x32xbf16>,
    %c4_296 = arith.constant 4 : index
    %c1_297 = arith.constant 1 : index
    %c0_298 = arith.constant 0 : index
    %191 = vector.load %arg14[%c4_296, %c1_297, %c0_298] : memref<10x10x32xbf16, #tpu.memory_space<vmem>>, vector<4x8x32xbf16>
    %c0_299 = arith.constant 0 : index
    %c0_300 = arith.constant 0 : index
    %c32_301 = arith.constant 32 : index
    %192 = vector.load %arg16[%c0_299, %c0_300, %c32_301] : memref<4x8x96xbf16, #tpu.memory_space<vmem>>, vector<4x8x32xbf16>
    tpu.vector_store %arg16[%c0_299, %c0_300, %c32_301], %191 {strides = array<i32>} : memref<4x8x96xbf16, #tpu.memory_space<vmem>>, vector<4x8x32xbf16>,
    %c4_302 = arith.constant 4 : index
    %c2_303 = arith.constant 2 : index
    %c0_304 = arith.constant 0 : index
    %193 = vector.load %arg14[%c4_302, %c2_303, %c0_304] : memref<10x10x32xbf16, #tpu.memory_space<vmem>>, vector<4x8x32xbf16>
    %c0_305 = arith.constant 0 : index
    %c0_306 = arith.constant 0 : index
    %c64_307 = arith.constant 64 : index
    %194 = vector.load %arg16[%c0_305, %c0_306, %c64_307] : memref<4x8x96xbf16, #tpu.memory_space<vmem>>, vector<4x8x32xbf16>
    tpu.vector_store %arg16[%c0_305, %c0_306, %c64_307], %193 {strides = array<i32>} : memref<4x8x96xbf16, #tpu.memory_space<vmem>>, vector<4x8x32xbf16>,
    %c0_308 = arith.constant 0 : index
    %c0_309 = arith.constant 0 : index
    %c0_310 = arith.constant 0 : index
    %195 = vector.load %arg16[%c0_308, %c0_309, %c0_310] : memref<4x8x96xbf16, #tpu.memory_space<vmem>>, vector<4x8x96xbf16>
    %196 = vector.shape_cast %195 : vector<4x8x96xbf16> to vector<32x96xbf16>
    %c0_311 = arith.constant 0 : index
    %c0_312 = arith.constant 0 : index
    %c0_313 = arith.constant 0 : index
    %197 = vector.load %arg5[%c0_311, %c0_312, %c0_313] : memref<3x96x32xbf16, #tpu.memory_space<vmem>>, vector<1x96x32xbf16>
    %198 = vector.shape_cast %197 : vector<1x96x32xbf16> to vector<96x32xbf16>
    %cst_314 = arith.constant dense<0.000000e+00> : vector<32x32xf32>
    %199 = tpu.matmul %196, %198, %cst_314 {dimension_numbers = #tpu.dot_dimension_numbers<[1], [0], [0], [1], [0, 0, 1, 1], [], []>} : vector<32x96xbf16>, vector<96x32xbf16>, vector<32x32xf32> -> vector<32x32xf32>
    %200 = arith.addf %188, %199 : vector<32x32xf32>
    %c5_315 = arith.constant 5 : index
    %c0_316 = arith.constant 0 : index
    %c0_317 = arith.constant 0 : index
    %201 = vector.load %arg14[%c5_315, %c0_316, %c0_317] : memref<10x10x32xbf16, #tpu.memory_space<vmem>>, vector<4x8x32xbf16>
    %c0_318 = arith.constant 0 : index
    %c0_319 = arith.constant 0 : index
    %c0_320 = arith.constant 0 : index
    %202 = vector.load %arg16[%c0_318, %c0_319, %c0_320] : memref<4x8x96xbf16, #tpu.memory_space<vmem>>, vector<4x8x32xbf16>
    tpu.vector_store %arg16[%c0_318, %c0_319, %c0_320], %201 {strides = array<i32>} : memref<4x8x96xbf16, #tpu.memory_space<vmem>>, vector<4x8x32xbf16>,
    %c5_321 = arith.constant 5 : index
    %c1_322 = arith.constant 1 : index
    %c0_323 = arith.constant 0 : index
    %203 = vector.load %arg14[%c5_321, %c1_322, %c0_323] : memref<10x10x32xbf16, #tpu.memory_space<vmem>>, vector<4x8x32xbf16>
    %c0_324 = arith.constant 0 : index
    %c0_325 = arith.constant 0 : index
    %c32_326 = arith.constant 32 : index
    %204 = vector.load %arg16[%c0_324, %c0_325, %c32_326] : memref<4x8x96xbf16, #tpu.memory_space<vmem>>, vector<4x8x32xbf16>
    tpu.vector_store %arg16[%c0_324, %c0_325, %c32_326], %203 {strides = array<i32>} : memref<4x8x96xbf16, #tpu.memory_space<vmem>>, vector<4x8x32xbf16>,
    %c5_327 = arith.constant 5 : index
    %c2_328 = arith.constant 2 : index
    %c0_329 = arith.constant 0 : index
    %205 = vector.load %arg14[%c5_327, %c2_328, %c0_329] : memref<10x10x32xbf16, #tpu.memory_space<vmem>>, vector<4x8x32xbf16>
    %c0_330 = arith.constant 0 : index
    %c0_331 = arith.constant 0 : index
    %c64_332 = arith.constant 64 : index
    %206 = vector.load %arg16[%c0_330, %c0_331, %c64_332] : memref<4x8x96xbf16, #tpu.memory_space<vmem>>, vector<4x8x32xbf16>
    tpu.vector_store %arg16[%c0_330, %c0_331, %c64_332], %205 {strides = array<i32>} : memref<4x8x96xbf16, #tpu.memory_space<vmem>>, vector<4x8x32xbf16>,
    %c0_333 = arith.constant 0 : index
    %c0_334 = arith.constant 0 : index
    %c0_335 = arith.constant 0 : index
    %207 = vector.load %arg16[%c0_333, %c0_334, %c0_335] : memref<4x8x96xbf16, #tpu.memory_space<vmem>>, vector<4x8x96xbf16>
    %208 = vector.shape_cast %207 : vector<4x8x96xbf16> to vector<32x96xbf16>
    %c1_336 = arith.constant 1 : index
    %c0_337 = arith.constant 0 : index
    %c0_338 = arith.constant 0 : index
    %209 = vector.load %arg5[%c1_336, %c0_337, %c0_338] : memref<3x96x32xbf16, #tpu.memory_space<vmem>>, vector<1x96x32xbf16>
    %210 = vector.shape_cast %209 : vector<1x96x32xbf16> to vector<96x32xbf16>
    %cst_339 = arith.constant dense<0.000000e+00> : vector<32x32xf32>
    %211 = tpu.matmul %208, %210, %cst_339 {dimension_numbers = #tpu.dot_dimension_numbers<[1], [0], [0], [1], [0, 0, 1, 1], [], []>} : vector<32x96xbf16>, vector<96x32xbf16>, vector<32x32xf32> -> vector<32x32xf32>
    %212 = arith.addf %200, %211 : vector<32x32xf32>
    %c6 = arith.constant 6 : index
    %c0_340 = arith.constant 0 : index
    %c0_341 = arith.constant 0 : index
    %213 = vector.load %arg14[%c6, %c0_340, %c0_341] : memref<10x10x32xbf16, #tpu.memory_space<vmem>>, vector<4x8x32xbf16>
    %c0_342 = arith.constant 0 : index
    %c0_343 = arith.constant 0 : index
    %c0_344 = arith.constant 0 : index
    %214 = vector.load %arg16[%c0_342, %c0_343, %c0_344] : memref<4x8x96xbf16, #tpu.memory_space<vmem>>, vector<4x8x32xbf16>
    tpu.vector_store %arg16[%c0_342, %c0_343, %c0_344], %213 {strides = array<i32>} : memref<4x8x96xbf16, #tpu.memory_space<vmem>>, vector<4x8x32xbf16>,
    %c6_345 = arith.constant 6 : index
    %c1_346 = arith.constant 1 : index
    %c0_347 = arith.constant 0 : index
    %215 = vector.load %arg14[%c6_345, %c1_346, %c0_347] : memref<10x10x32xbf16, #tpu.memory_space<vmem>>, vector<4x8x32xbf16>
    %c0_348 = arith.constant 0 : index
    %c0_349 = arith.constant 0 : index
    %c32_350 = arith.constant 32 : index
    %216 = vector.load %arg16[%c0_348, %c0_349, %c32_350] : memref<4x8x96xbf16, #tpu.memory_space<vmem>>, vector<4x8x32xbf16>
    tpu.vector_store %arg16[%c0_348, %c0_349, %c32_350], %215 {strides = array<i32>} : memref<4x8x96xbf16, #tpu.memory_space<vmem>>, vector<4x8x32xbf16>,
    %c6_351 = arith.constant 6 : index
    %c2_352 = arith.constant 2 : index
    %c0_353 = arith.constant 0 : index
    %217 = vector.load %arg14[%c6_351, %c2_352, %c0_353] : memref<10x10x32xbf16, #tpu.memory_space<vmem>>, vector<4x8x32xbf16>
    %c0_354 = arith.constant 0 : index
    %c0_355 = arith.constant 0 : index
    %c64_356 = arith.constant 64 : index
    %218 = vector.load %arg16[%c0_354, %c0_355, %c64_356] : memref<4x8x96xbf16, #tpu.memory_space<vmem>>, vector<4x8x32xbf16>
    tpu.vector_store %arg16[%c0_354, %c0_355, %c64_356], %217 {strides = array<i32>} : memref<4x8x96xbf16, #tpu.memory_space<vmem>>, vector<4x8x32xbf16>,
    %c0_357 = arith.constant 0 : index
    %c0_358 = arith.constant 0 : index
    %c0_359 = arith.constant 0 : index
    %219 = vector.load %arg16[%c0_357, %c0_358, %c0_359] : memref<4x8x96xbf16, #tpu.memory_space<vmem>>, vector<4x8x96xbf16>
    %220 = vector.shape_cast %219 : vector<4x8x96xbf16> to vector<32x96xbf16>
    %c2_360 = arith.constant 2 : index
    %c0_361 = arith.constant 0 : index
    %c0_362 = arith.constant 0 : index
    %221 = vector.load %arg5[%c2_360, %c0_361, %c0_362] : memref<3x96x32xbf16, #tpu.memory_space<vmem>>, vector<1x96x32xbf16>
    %222 = vector.shape_cast %221 : vector<1x96x32xbf16> to vector<96x32xbf16>
    %cst_363 = arith.constant dense<0.000000e+00> : vector<32x32xf32>
    %223 = tpu.matmul %220, %222, %cst_363 {dimension_numbers = #tpu.dot_dimension_numbers<[1], [0], [0], [1], [0, 0, 1, 1], [], []>} : vector<32x96xbf16>, vector<96x32xbf16>, vector<32x32xf32> -> vector<32x32xf32>
    %224 = arith.addf %212, %223 : vector<32x32xf32>
    %c0_364 = arith.constant 0 : index
    %c0_365 = arith.constant 0 : index
    %225 = vector.load %arg6[%c0_364, %c0_365] : memref<1x32xf32, #tpu.memory_space<vmem>>, vector<1x32xf32>
    %226 = vector.broadcast %225 : vector<1x32xf32> to vector<32x32xf32>
    %227 = arith.mulf %224, %226 : vector<32x32xf32>
    %c0_366 = arith.constant 0 : index
    %c0_367 = arith.constant 0 : index
    %228 = vector.load %arg7[%c0_366, %c0_367] : memref<1x32xf32, #tpu.memory_space<vmem>>, vector<1x32xf32>
    %229 = vector.broadcast %228 : vector<1x32xf32> to vector<32x32xf32>
    %230 = arith.addf %227, %229 : vector<32x32xf32>
    %c0_368 = arith.constant 0 : index
    %c32_369 = arith.constant 32 : index
    %c0_370 = arith.constant 0 : index
    %231 = vector.load %arg13[%c0_368, %c32_369, %c0_370] : memref<1x64x32xf32, #tpu.memory_space<vmem>>, vector<1x32x32xf32>
    %232 = vector.shape_cast %231 : vector<1x32x32xf32> to vector<32x32xf32>
    %233 = vector.shape_cast %230 : vector<32x32xf32> to vector<1x32x32xf32>
    tpu.vector_store %arg13[%c0_368, %c32_369, %c0_370], %233 {strides = array<i32>} : memref<1x64x32xf32, #tpu.memory_space<vmem>>, vector<1x32x32xf32>,
    %c0_371 = arith.constant 0 : index
    %c0_372 = arith.constant 0 : index
    %c0_373 = arith.constant 0 : index
    %234 = vector.load %arg13[%c0_371, %c0_372, %c0_373] : memref<1x64x32xf32, #tpu.memory_space<vmem>>, vector<1x64x32xf32>
    %235 = vector.shape_cast %234 : vector<1x64x32xf32> to vector<64x32xf32>
    %cst_374 = arith.constant dense<0.000000e+00> : vector<32xf32>
    %236 = vector.multi_reduction <add>, %235, %cst_374 [0] : vector<64x32xf32> to vector<32xf32>
    %237 = vector.shape_cast %236 : vector<32xf32> to vector<1x32xf32>
    %cst_375 = arith.constant 1.562500e-02 : f32
    %238 = vector.broadcast %cst_375 : f32 to vector<1x32xf32>
    %239 = arith.mulf %237, %238 : vector<1x32xf32>
    %c0_376 = arith.constant 0 : index
    %c0_377 = arith.constant 0 : index
    %240 = vector.load %arg8[%c0_376, %c0_377] : memref<32x2xf32, #tpu.memory_space<vmem>>, vector<32x2xf32>
    %cst_378 = arith.constant dense<0.000000e+00> : vector<1x2xf32>
    %241 = tpu.matmul %239, %240, %cst_378 {dimension_numbers = #tpu.dot_dimension_numbers<[1], [0], [0], [1], [0, 0, 1, 1], [], []>} : vector<1x32xf32>, vector<32x2xf32>, vector<1x2xf32> -> vector<1x2xf32>
    %cst_379 = arith.constant 2.000000e+01 : f32
    %242 = vector.broadcast %cst_379 : f32 to vector<1x2xf32>
    %243 = arith.minimumf %241, %242 : vector<1x2xf32>
    %244 = math.exp %243 : vector<1x2xf32>
    %cst_380 = arith.constant 1.000000e+00 : f32
    %245 = vector.broadcast %cst_380 : f32 to vector<1x2xf32>
    %246 = arith.addf %245, %244 : vector<1x2xf32>
    %cst_381 = arith.constant 1.000000e+00 : f32
    %247 = vector.broadcast %cst_381 : f32 to vector<1x2xf32>
    %248 = arith.addf %247, %244 : vector<1x2xf32>
    %249 = arith.mulf %246, %248 : vector<1x2xf32>
    %cst_382 = arith.constant 1.000000e+00 : f32
    %250 = vector.broadcast %cst_382 : f32 to vector<1x2xf32>
    %251 = arith.subf %249, %250 : vector<1x2xf32>
    %252 = arith.mulf %241, %251 : vector<1x2xf32>
    %cst_383 = arith.constant 1.000000e+00 : f32
    %253 = vector.broadcast %cst_383 : f32 to vector<1x2xf32>
    %254 = arith.addf %249, %253 : vector<1x2xf32>
    %255 = arith.divf %252, %254 : vector<1x2xf32>
    %c0_384 = arith.constant 0 : index
    %c0_385 = arith.constant 0 : index
    %256 = vector.load %arg9[%c0_384, %c0_385] : memref<2x32xf32, #tpu.memory_space<vmem>>, vector<2x32xf32>
    %cst_386 = arith.constant dense<0.000000e+00> : vector<1x32xf32>
    %257 = tpu.matmul %255, %256, %cst_386 {dimension_numbers = #tpu.dot_dimension_numbers<[1], [0], [0], [1], [0, 0, 1, 1], [], []>} : vector<1x2xf32>, vector<2x32xf32>, vector<1x32xf32> -> vector<1x32xf32>
    %258 = math.absf %257 : vector<1x32xf32>
    %cst_387 = arith.constant 0.000000e+00 : f32
    %259 = vector.broadcast %cst_387 : f32 to vector<1x32xf32>
    %260 = arith.subf %259, %258 : vector<1x32xf32>
    %261 = math.exp %260 : vector<1x32xf32>
    %cst_388 = arith.constant 1.000000e+00 : f32
    %262 = vector.broadcast %cst_388 : f32 to vector<1x32xf32>
    %263 = arith.addf %262, %261 : vector<1x32xf32>
    %cst_389 = arith.constant 1.000000e+00 : f32
    %264 = vector.broadcast %cst_389 : f32 to vector<1x32xf32>
    %265 = arith.divf %264, %263 : vector<1x32xf32>
    %cst_390 = arith.constant 0.000000e+00 : f32
    %266 = vector.broadcast %cst_390 : f32 to vector<1x32xf32>
    %267 = arith.cmpf oge, %257, %266 : vector<1x32xf32>
    %cst_391 = arith.constant 1.000000e+00 : f32
    %268 = vector.broadcast %cst_391 : f32 to vector<1x32xf32>
    %269 = arith.subf %268, %265 : vector<1x32xf32>
    %270 = arith.select %267, %265, %269 : vector<1x32xi1>, vector<1x32xf32>
    %c0_392 = arith.constant 0 : index
    %c0_393 = arith.constant 0 : index
    %c0_394 = arith.constant 0 : index
    %271 = vector.load %arg13[%c0_392, %c0_393, %c0_394] : memref<1x64x32xf32, #tpu.memory_space<vmem>>, vector<1x32x32xf32>
    %272 = vector.shape_cast %271 : vector<1x32x32xf32> to vector<32x32xf32>
    %c0_395 = arith.constant 0 : index
    %c3_396 = arith.constant 3 : index
    %c0_397 = arith.constant 0 : index
    %c0_398 = arith.constant 0 : index
    %c0_399 = arith.constant 0 : index
    %273 = vector.load %arg1[%c0_395, %c3_396, %c0_397, %c0_398, %c0_399] : memref<1x4x9x9x16xbf16, #tpu.memory_space<vmem>>, vector<1x1x4x8x16xbf16>
    %274 = vector.shape_cast %273 : vector<1x1x4x8x16xbf16> to vector<4x8x16xbf16>
    %275 = vector.shape_cast %274 : vector<4x8x16xbf16> to vector<32x16xbf16>
    %c0_400 = arith.constant 0 : index
    %c0_401 = arith.constant 0 : index
    %276 = vector.load %arg10[%c0_400, %c0_401] : memref<16x32xbf16, #tpu.memory_space<vmem>>, vector<16x32xbf16>
    %cst_402 = arith.constant dense<0.000000e+00> : vector<32x32xf32>
    %277 = tpu.matmul %275, %276, %cst_402 {dimension_numbers = #tpu.dot_dimension_numbers<[1], [0], [0], [1], [0, 0, 1, 1], [], []>} : vector<32x16xbf16>, vector<16x32xbf16>, vector<32x32xf32> -> vector<32x32xf32>
    %c0_403 = arith.constant 0 : index
    %c0_404 = arith.constant 0 : index
    %278 = vector.load %arg11[%c0_403, %c0_404] : memref<1x32xf32, #tpu.memory_space<vmem>>, vector<1x32xf32>
    %279 = vector.broadcast %278 : vector<1x32xf32> to vector<32x32xf32>
    %280 = arith.mulf %277, %279 : vector<32x32xf32>
    %c0_405 = arith.constant 0 : index
    %c0_406 = arith.constant 0 : index
    %281 = vector.load %arg12[%c0_405, %c0_406] : memref<1x32xf32, #tpu.memory_space<vmem>>, vector<1x32xf32>
    %282 = vector.broadcast %281 : vector<1x32xf32> to vector<32x32xf32>
    %283 = arith.addf %280, %282 : vector<32x32xf32>
    %284 = vector.broadcast %270 : vector<1x32xf32> to vector<32x32xf32>
    %285 = arith.mulf %272, %284 : vector<32x32xf32>
    %286 = arith.addf %285, %283 : vector<32x32xf32>
    %cst_407 = arith.constant 2.000000e+01 : f32
    %287 = vector.broadcast %cst_407 : f32 to vector<32x32xf32>
    %288 = arith.minimumf %286, %287 : vector<32x32xf32>
    %289 = math.exp %288 : vector<32x32xf32>
    %cst_408 = arith.constant 1.000000e+00 : f32
    %290 = vector.broadcast %cst_408 : f32 to vector<32x32xf32>
    %291 = arith.addf %290, %289 : vector<32x32xf32>
    %cst_409 = arith.constant 1.000000e+00 : f32
    %292 = vector.broadcast %cst_409 : f32 to vector<32x32xf32>
    %293 = arith.addf %292, %289 : vector<32x32xf32>
    %294 = arith.mulf %291, %293 : vector<32x32xf32>
    %cst_410 = arith.constant 1.000000e+00 : f32
    %295 = vector.broadcast %cst_410 : f32 to vector<32x32xf32>
    %296 = arith.subf %294, %295 : vector<32x32xf32>
    %297 = arith.mulf %286, %296 : vector<32x32xf32>
    %cst_411 = arith.constant 1.000000e+00 : f32
    %298 = vector.broadcast %cst_411 : f32 to vector<32x32xf32>
    %299 = arith.addf %294, %298 : vector<32x32xf32>
    %300 = arith.divf %297, %299 : vector<32x32xf32>
    %c0_412 = arith.constant 0 : index
    %c0_413 = arith.constant 0 : index
    %c0_414 = arith.constant 0 : index
    %301 = vector.load %arg13[%c0_412, %c0_413, %c0_414] : memref<1x64x32xf32, #tpu.memory_space<vmem>>, vector<1x32x32xf32>
    %302 = vector.shape_cast %301 : vector<1x32x32xf32> to vector<32x32xf32>
    %303 = vector.shape_cast %300 : vector<32x32xf32> to vector<1x32x32xf32>
    tpu.vector_store %arg13[%c0_412, %c0_413, %c0_414], %303 {strides = array<i32>} : memref<1x64x32xf32, #tpu.memory_space<vmem>>, vector<1x32x32xf32>,
    %c0_415 = arith.constant 0 : index
    %c32_416 = arith.constant 32 : index
    %c0_417 = arith.constant 0 : index
    %304 = vector.load %arg13[%c0_415, %c32_416, %c0_417] : memref<1x64x32xf32, #tpu.memory_space<vmem>>, vector<1x32x32xf32>
    %305 = vector.shape_cast %304 : vector<1x32x32xf32> to vector<32x32xf32>
    %c0_418 = arith.constant 0 : index
    %c3_419 = arith.constant 3 : index
    %c4_420 = arith.constant 4 : index
    %c0_421 = arith.constant 0 : index
    %c0_422 = arith.constant 0 : index
    %306 = vector.load %arg1[%c0_418, %c3_419, %c4_420, %c0_421, %c0_422] : memref<1x4x9x9x16xbf16, #tpu.memory_space<vmem>>, vector<1x1x4x8x16xbf16>
    %307 = vector.shape_cast %306 : vector<1x1x4x8x16xbf16> to vector<4x8x16xbf16>
    %308 = vector.shape_cast %307 : vector<4x8x16xbf16> to vector<32x16xbf16>
    %c0_423 = arith.constant 0 : index
    %c0_424 = arith.constant 0 : index
    %309 = vector.load %arg10[%c0_423, %c0_424] : memref<16x32xbf16, #tpu.memory_space<vmem>>, vector<16x32xbf16>
    %cst_425 = arith.constant dense<0.000000e+00> : vector<32x32xf32>
    %310 = tpu.matmul %308, %309, %cst_425 {dimension_numbers = #tpu.dot_dimension_numbers<[1], [0], [0], [1], [0, 0, 1, 1], [], []>} : vector<32x16xbf16>, vector<16x32xbf16>, vector<32x32xf32> -> vector<32x32xf32>
    %c0_426 = arith.constant 0 : index
    %c0_427 = arith.constant 0 : index
    %311 = vector.load %arg11[%c0_426, %c0_427] : memref<1x32xf32, #tpu.memory_space<vmem>>, vector<1x32xf32>
    %312 = vector.broadcast %311 : vector<1x32xf32> to vector<32x32xf32>
    %313 = arith.mulf %310, %312 : vector<32x32xf32>
    %c0_428 = arith.constant 0 : index
    %c0_429 = arith.constant 0 : index
    %314 = vector.load %arg12[%c0_428, %c0_429] : memref<1x32xf32, #tpu.memory_space<vmem>>, vector<1x32xf32>
    %315 = vector.broadcast %314 : vector<1x32xf32> to vector<32x32xf32>
    %316 = arith.addf %313, %315 : vector<32x32xf32>
    %317 = vector.broadcast %270 : vector<1x32xf32> to vector<32x32xf32>
    %318 = arith.mulf %305, %317 : vector<32x32xf32>
    %319 = arith.addf %318, %316 : vector<32x32xf32>
    %cst_430 = arith.constant 2.000000e+01 : f32
    %320 = vector.broadcast %cst_430 : f32 to vector<32x32xf32>
    %321 = arith.minimumf %319, %320 : vector<32x32xf32>
    %322 = math.exp %321 : vector<32x32xf32>
    %cst_431 = arith.constant 1.000000e+00 : f32
    %323 = vector.broadcast %cst_431 : f32 to vector<32x32xf32>
    %324 = arith.addf %323, %322 : vector<32x32xf32>
    %cst_432 = arith.constant 1.000000e+00 : f32
    %325 = vector.broadcast %cst_432 : f32 to vector<32x32xf32>
    %326 = arith.addf %325, %322 : vector<32x32xf32>
    %327 = arith.mulf %324, %326 : vector<32x32xf32>
    %cst_433 = arith.constant 1.000000e+00 : f32
    %328 = vector.broadcast %cst_433 : f32 to vector<32x32xf32>
    %329 = arith.subf %327, %328 : vector<32x32xf32>
    %330 = arith.mulf %319, %329 : vector<32x32xf32>
    %cst_434 = arith.constant 1.000000e+00 : f32
    %331 = vector.broadcast %cst_434 : f32 to vector<32x32xf32>
    %332 = arith.addf %327, %331 : vector<32x32xf32>
    %333 = arith.divf %330, %332 : vector<32x32xf32>
    %c0_435 = arith.constant 0 : index
    %c32_436 = arith.constant 32 : index
    %c0_437 = arith.constant 0 : index
    %334 = vector.load %arg13[%c0_435, %c32_436, %c0_437] : memref<1x64x32xf32, #tpu.memory_space<vmem>>, vector<1x32x32xf32>
    %335 = vector.shape_cast %334 : vector<1x32x32xf32> to vector<32x32xf32>
    %336 = vector.shape_cast %333 : vector<32x32xf32> to vector<1x32x32xf32>
    tpu.vector_store %arg13[%c0_435, %c32_436, %c0_437], %336 {strides = array<i32>} : memref<1x64x32xf32, #tpu.memory_space<vmem>>, vector<1x32x32xf32>,
    return
  }
  func.func @transform_0(%arg0: i32) -> (i32, i32, i32, i32, i32) {
    %c0_i32 = arith.constant 0 : i32
    %c0_i32_0 = arith.constant 0 : i32
    %c0_i32_1 = arith.constant 0 : i32
    %c0_i32_2 = arith.constant 0 : i32
    %c0_i32_3 = arith.constant 0 : i32
    return %arg0, %c0_i32, %c0_i32_0, %c0_i32_1, %c0_i32_2 : i32, i32, i32, i32, i32
  }
  func.func @transform_1(%arg0: i32) -> (i32, i32, i32) {
    %c0_i32 = arith.constant 0 : i32
    %c0_i32_0 = arith.constant 0 : i32
    %c0_i32_1 = arith.constant 0 : i32
    %c0_i32_2 = arith.constant 0 : i32
    return %c0_i32, %c0_i32_0, %c0_i32_1 : i32, i32, i32
  }
  func.func @transform_2(%arg0: i32) -> (i32, i32) {
    %c0_i32 = arith.constant 0 : i32
    %c0_i32_0 = arith.constant 0 : i32
    %c0_i32_1 = arith.constant 0 : i32
    return %c0_i32, %c0_i32_0 : i32, i32
  }
  func.func @transform_3(%arg0: i32) -> (i32, i32) {
    %c0_i32 = arith.constant 0 : i32
    %c0_i32_0 = arith.constant 0 : i32
    %c0_i32_1 = arith.constant 0 : i32
    return %c0_i32, %c0_i32_0 : i32, i32
  }
  func.func @transform_4(%arg0: i32) -> (i32, i32, i32) {
    %c0_i32 = arith.constant 0 : i32
    %c0_i32_0 = arith.constant 0 : i32
    %c0_i32_1 = arith.constant 0 : i32
    %c0_i32_2 = arith.constant 0 : i32
    return %c0_i32, %c0_i32_0, %c0_i32_1 : i32, i32, i32
  }
  func.func @transform_5(%arg0: i32) -> (i32, i32) {
    %c0_i32 = arith.constant 0 : i32
    %c0_i32_0 = arith.constant 0 : i32
    %c0_i32_1 = arith.constant 0 : i32
    return %c0_i32, %c0_i32_0 : i32, i32
  }
  func.func @transform_6(%arg0: i32) -> (i32, i32) {
    %c0_i32 = arith.constant 0 : i32
    %c0_i32_0 = arith.constant 0 : i32
    %c0_i32_1 = arith.constant 0 : i32
    return %c0_i32, %c0_i32_0 : i32, i32
  }
  func.func @transform_7(%arg0: i32) -> (i32, i32) {
    %c0_i32 = arith.constant 0 : i32
    %c0_i32_0 = arith.constant 0 : i32
    %c0_i32_1 = arith.constant 0 : i32
    return %c0_i32, %c0_i32_0 : i32, i32
  }
  func.func @transform_8(%arg0: i32) -> (i32, i32) {
    %c0_i32 = arith.constant 0 : i32
    %c0_i32_0 = arith.constant 0 : i32
    %c0_i32_1 = arith.constant 0 : i32
    return %c0_i32, %c0_i32_0 : i32, i32
  }
  func.func @transform_9(%arg0: i32) -> (i32, i32) {
    %c0_i32 = arith.constant 0 : i32
    %c0_i32_0 = arith.constant 0 : i32
    %c0_i32_1 = arith.constant 0 : i32
    return %c0_i32, %c0_i32_0 : i32, i32
  }
  func.func @transform_10(%arg0: i32) -> (i32, i32) {
    %c0_i32 = arith.constant 0 : i32
    %c0_i32_0 = arith.constant 0 : i32
    %c0_i32_1 = arith.constant 0 : i32
    return %c0_i32, %c0_i32_0 : i32, i32
  }
  func.func @transform_11(%arg0: i32) -> (i32, i32) {
    %c0_i32 = arith.constant 0 : i32
    %c0_i32_0 = arith.constant 0 : i32
    %c0_i32_1 = arith.constant 0 : i32
    return %c0_i32, %c0_i32_0 : i32, i32
  }
  func.func @transform_12(%arg0: i32) -> (i32, i32, i32) {
    %c0_i32 = arith.constant 0 : i32
    %c0_i32_0 = arith.constant 0 : i32
    %c0_i32_1 = arith.constant 0 : i32
    return %arg0, %c0_i32, %c0_i32_0 : i32, i32, i32
  }
}

</mosaic_0001>

<bundles_post_ra>
// kernel: tpu_custom_call.1
= control target key start
LH: loop header
LB: loop body
LE: loop exit
PB: predicated region body
PF: predicated region fallthrough
CT: control target
= control target key end

     0   :  { %s4553_s21 = smov 0   ;;  %s5687_s0 = inlined_call_operand.vmem [shape: bf16[2,4,9,9,16], index: 0, kind: input, shape index: {}]   ;;  %s5688_s1 = inlined_call_operand.vmem [shape: bf16[3,48,32], index: 1, kind: input, shape index: {}]   ;;  %s5689_s2 = inlined_call_operand.vmem [shape: f32[1,32], index: 2, kind: input, shape index: {}]   ;;  %s5690_s3 = inlined_call_operand.vmem [shape: f32[1,32], index: 3, kind: input, shape index: {}]   ;;  %s5691_s4 = inlined_call_operand.vmem [shape: bf16[3,96,32], index: 4, kind: input, shape index: {}]   ;;  %s5692_s5 = inlined_call_operand.vmem [shape: f32[1,32], index: 5, kind: input, shape index: {}]   ;;  %s5693_s6 = inlined_call_operand.vmem [shape: f32[1,32], index: 6, kind: input, shape index: {}]   ;;  %s5694_s7 = inlined_call_operand.vmem [shape: f32[32,2], index: 7, kind: input, shape index: {}]   ;;  %s5695_s8 = inlined_call_operand.vmem [shape: f32[2,32], index: 8, kind: input, shape index: {}]   ;;  %s5696_s9 = inlined_call_operand.vmem [shape: bf16[16,32], index: 9, kind: input, shape index: {}]   ;;  %s5697_s10 = inlined_call_operand.vmem [shape: f32[1,32], index: 10, kind: input, shape index: {}]   ;;  %s5698_s11 = inlined_call_operand.vmem [shape: f32[1,32], index: 11, kind: input, shape index: {}]   ;;  %s5699_s12 = inlined_call_operand.vmem [shape: f32[2,64,32], index: 12, kind: output, shape index: {}]  }
   0x1 LB: > { %s3700_s22 = sadd.s32 4294967295, %s4482_s21   ;;  %p3704_p0 = scmp.ge.s32.totalorder %s4482_s21, 1  ;;  %s4482_s21 = sphi %s4553_s21, %s22_s21  }
   0x2   : > { %p362_p1 = scmp.lt.s32.totalorder %s4482_s21, 3 }
   0x4   : > { %p363_p2 = pnand %p3704_p0, %p362_p1 }
   0x5   : > { %p404_p3 = scmp.lt.s32.totalorder (!%p363_p2), %s3700_s22, 1  ;;  %s4484_s27 = smov (!%p363_p2), 16  }
   0x6   : > { %366 = sbr.rel (%p363_p2) target bundleno = 1178 (0x49a), region = 68  ;;  %s4485_s28 = smov (!%p363_p2), 32  }
   0x7   : > { %s4487_s19 = smov (!%p363_p2), 64  }
   0xb   : > { %s5715_s22 = smov (!%p404_p3, %s3700_s22), 1  ;;  %vm480_vm0 = vsmask.f32 3328  ;;  %vm481_vm1 = vsmask.f32 7440  ;;  %vm441_vm3 = vcmask 125952  }
   0xc   : > { %s4379_s23 = smul.u32 288, %s5715_s22  ;;  %vm4580_vm2 = vmor %vm480_vm0, %vm481_vm1  ;;  %vm467_vm4 = vcmask 257152   ;;  %vm551_vm5 = vcmask 388352   ;;  %vm719_vm6 = vcmask 392192   ;;  %vm415_vm7 = vcmask 257024   ;;  %s4282_s17 = sshll.u32 %s5715_s22, 6 }
   0xd   : > { %vm417_vm8 = vcmask 253952   ;;  %vm1876_vm9 = vcmask 1042432   ;;  %vm1877_vm10 = vcmask 1046532   ;;  %vm1855_vm12 = vcmask 519424   ;;  %s5430_s24 = scalar_lea.vmem %s5699_s12, %s4282_s17 }
   0xe   : > { %s4567_s26 = scalar_lea.vmem %s5687_s0, %s4379_s23  ;;  %vm4926_vm11 = vmor %vm1876_vm9, %vm1877_vm10  ;;  %vm1907_vm13 = vcmask 781824   ;;  %vm1082_vm14 = vsmask.f32 7938  ;;  %vm1088_vm15 = vsmask.f32 256  ;;  %vm3250_vm10 = vcmask 15360  }
   0xf   : > { %v3708_v0 = vld [vmem:[%s4567_s26 + $0x48] sm:$0xf]  ;;  %v472_v1 = vld [vmem:[%s4567_s26] sm:$0xf]  ;;  %v473_v2 = vld [vmem:[%s4567_s26 + $0x4] sm:$0x1] }
  0x10   : > { %455 = vrot.lane.b32.xlu0 %v3708_v0, %s4484_s27  ;;  %v484_v3 = vshrl.u32 %v472_v1, 16  ;;  %v487_v4 = vshll.u32 %v472_v1, 16  ;;  %v493_v5 = vshll.u32 %v473_v2, 16  ;;  %v474_v6 = vld [vmem:[%s4567_s26 + $0x8] sm:$0xf]  ;;  %vm4984_vm0 = vmand %vm415_vm7, %vm1082_vm14 }
  0x11   : > { %v475_v7 = vld [vmem:[%s4567_s26 + $0xc] sm:$0x1]  ;;  %v3720_v8 = vld [vmem:[%s4567_s26 + $0x90] sm:$0xf]  ;;  %v498_v11 = vshrl.u32 %v474_v6, 16  ;;  %v501_v13 = vshll.u32 %v474_v6, 16  ;;  %vm4989_vm1 = vmand %vm417_vm8, %vm1088_vm15 }
  0x12   : > { %v486_v9 = vrot.slane %v484_v3, 4  ;;  %v489_v10 = vrot.slane %v487_v4, 5  ;;  %v3721_v12 = vld [vmem:[%s4567_s26 + $0x94] sm:$0x1]  ;;  %v609_v14 = vshrl.u32 %v3720_v8, 16  ;;  %v612_v15 = vshll.u32 %v3720_v8, 16 }
  0x13   : > { %v3722_v16 = vld [vmem:[%s4567_s26 + $0x98] sm:$0xf]  ;;  %v495_v18 = vrot.slane %v493_v5, 5  ;;  %v500_v19 = vrot.slane %v498_v11, 4  ;;  %v3709_v21 = vld [vmem:[%s4567_s26 + $0x50] sm:$0xf] }
  0x14   : > { %v490_v17 = vor.u32 %v489_v10, %v486_v9  ;;  %v503_v22 = vrot.slane %v501_v13, 5  ;;  %v611_v23 = vrot.slane %v609_v14, 4  ;;  %v614_v24 = vrot.slane %v612_v15, 5  ;;  %v3716_v30 = vld [vmem:[%s4567_s26 + $0xd8] sm:$0xf] }
  0x15   : > { %v618_v25 = vshll.u32 %v3721_v12, 16  ;;  %v507_v27 = vshll.u32 %v475_v7, 16  ;;  %v623_v28 = vshrl.u32 %v3722_v16, 16  ;;  %v626_v29 = vshll.u32 %v3722_v16, 16  ;;  %584 = vrot.lane.b32.xlu2 %v3716_v30, %s4484_s27  ;;  %v3723_v38 = vld [vmem:[%s4567_s26 + $0x9c] sm:$0x1] }
  0x16   : > { %v491_v26 = vrot.slane %v490_v17, 4  ;;  %v504_v31 = vor.u32 %v503_v22, %v500_v19  ;;  %v615_v32 = vor.u32 %v614_v24, %v611_v23  ;;  %v476_v41 = vld [vmem:[%s4567_s26 + $0x10] sm:$0xf]  ;;  %v3717_v42 = vld [vmem:[%s4567_s26 + $0xe0] sm:$0xf]  ;;  %v632_v44 = vshll.u32 %v3723_v38, 16 }
  0x17   : > { %v620_v35 = vrot.slane %v618_v25, 5  ;;  %v509_v37 = vrot.slane %v507_v27, 5  ;;  %v625_v39 = vrot.slane %v623_v28, 4  ;;  %v628_v40 = vrot.slane %v626_v29, 5  ;;  %v478_v49 = vld [vmem:[%s4567_s26 + $0x18] sm:$0xf] }
  0x18   : > { %v496_v33 = vsel %vm4580_vm2, %v491_v26, %v495_v18  ;;  %457 = vrot.lane.b32.xlu0 %v3709_v21, %s4484_s27  ;;  %v616_v34 = vrot.slane %v615_v32, 4  ;;  %v505_v36 = vrot.slane %v504_v31, 4  ;;  %v512_v47 = vshrl.u32 %v476_v41, 16  ;;  %v3788_v56 = vld [vmem:[%s4567_s26 + $0x10] sm:$0xf] }
  0x19   : > { %539 = vrot.lane.b32.xlu1 %v496_v33, %s4485_s28  ;;  %v629_v46 = vor.u32 %v628_v40, %v625_v39  ;;  %v515_v48 = vshll.u32 %v476_v41, 16  ;;  %v526_v50 = vshrl.u32 %v478_v49, 16  ;;  %v529_v51 = vshll.u32 %v478_v49, 16  ;;  %v477_v57 = vld [vmem:[%s4567_s26 + $0x14] sm:$0x1] }
  0x1a   : > { %v621_v43 = vsel %vm4580_vm2, %v616_v34, %v620_v35  ;;  %v510_v45 = vsel %vm4580_vm2, %v505_v36, %v509_v37  ;;  %v634_v53 = vrot.slane %v632_v44, 5  ;;  %v514_v54 = vrot.slane %v512_v47, 4  ;;  %v479_v58 = vld [vmem:[%s4567_s26 + $0x1c] sm:$0x1]  ;;  %v3710_v61 = vld [vmem:[%s4567_s26 + $0x58] sm:$0xf] }
  0x1b   : > { %v630_v52 = vrot.slane %v629_v46, 4  ;;  %v517_v55 = vrot.slane %v515_v48, 5  ;;  %v528_v59 = vrot.slane %v526_v50, 4  ;;  %v531_v60 = vrot.slane %v529_v51, 5  ;;  %v3711_v63 = vld [vmem:[%s4567_s26 + $0x60] sm:$0xf] }
  0x1c   : > { %v535_v62 = vshll.u32 %v479_v58, 16  ;;  %v855_v0 = vshrl.u32 %v3788_v56, 16  ;;  %v858_v1 = vshll.u32 %v3788_v56, 16  ;;  %v521_v5 = vshll.u32 %v477_v57, 16  ;;  %v3786_v6 = vld [vmem:[%s4567_s26 + $0x8] sm:$0xf] }
  0x1d   : > { %586 = vrot.lane.b32.xlu2 %v3717_v42, %s4484_s27  ;;  %v532_v2 = vor.u32 %v531_v60, %v528_v59  ;;  %v635_v3 = vsel %vm4580_vm2, %v630_v52, %v634_v53  ;;  %v518_v4 = vor.u32 %v517_v55, %v514_v54  ;;  %v841_v9 = vshrl.u32 %v3786_v6, 16  ;;  %v3789_v11 = vld [vmem:[%s4567_s26 + $0x14] sm:$0x1]  ;;  %v3724_v16 = vld [vmem:[%s4567_s26 + $0xa0] sm:$0xf] }
  0x1e   : > { %v537_v8 = vrot.slane %v535_v62, 5  ;;  %v844_v10 = vshll.u32 %v3786_v6, 16  ;;  %v857_v12 = vrot.slane %v855_v0, 4  ;;  %v860_v13 = vrot.slane %v858_v1, 5  ;;  %v3787_v19 = vld [vmem:[%s4567_s26 + $0xc] sm:$0x1] }
  0x1f   : > { %v533_v7 = vrot.slane %v532_v2, 4  ;;  %v519_v14 = vrot.slane %v518_v4, 4  ;;  %v523_v15 = vrot.slane %v521_v5, 5  ;;  %v843_v17 = vrot.slane %v841_v9, 4  ;;  %v3782_v24 = vld [vmem:[%s4567_s26 + $0x50] sm:$0xf] }
  0x20   : > { %664 = vrot.lane.b32.xlu0 %v621_v43, %s4485_s28  ;;  %v846_v18 = vrot.slane %v844_v10, 5  ;;  %v850_v23 = vshll.u32 %v3787_v19, 16  ;;  %v861_v25 = vor.u32 %v860_v13, %v857_v12  ;;  %v864_v26 = vshll.u32 %v3789_v11, 16  ;;  %v3725_v36 = vld [vmem:[%s4567_s26 + $0xa4] sm:$0x1] }
  0x21   : > { %541 = vrot.lane.b32.xlu1 %v510_v45, %s4485_s28  ;;  %v538_v21 = vsel %vm4580_vm2, %v533_v7, %v537_v8  ;;  %v637_v27 = vshrl.u32 %v3724_v16, 16  ;;  %v640_v28 = vshll.u32 %v3724_v16, 16  ;;  %v524_v29 = vsel %vm4580_vm2, %v519_v14, %v523_v15  ;;  %v3726_v37 = vld [vmem:[%s4567_s26 + $0xa8] sm:$0xf]  ;;  %v3783_v42 = vld [vmem:[%s4567_s26 + $0x58] sm:$0xf] }
  0x22   : > { %v847_v22 = vor.u32 %v846_v18, %v843_v17  ;;  %v852_v31 = vrot.slane %v850_v23, 5  ;;  %v862_v32 = vrot.slane %v861_v25, 4  ;;  %v866_v33 = vrot.slane %v864_v26, 5  ;;  %v3790_v47 = vld [vmem:[%s4567_s26 + $0x18] sm:$0xf] }
  0x23   : > { %v639_v34 = vrot.slane %v637_v27, 4  ;;  %v642_v35 = vrot.slane %v640_v28, 5  ;;  %v646_v41 = vshll.u32 %v3725_v36, 16  ;;  %v651_v43 = vshrl.u32 %v3726_v37, 16  ;;  %v3727_v50 = vld [vmem:[%s4567_s26 + $0xac] sm:$0x1] }
  0x24   : > { %v848_v30 = vrot.slane %v847_v22, 4  ;;  %v867_v39 = vsel %vm4580_vm2, %v862_v32, %v866_v33  ;;  %v654_v44 = vshll.u32 %v3726_v37, 16  ;;  %v869_v51 = vshrl.u32 %v3790_v47, 16  ;;  %v3719_v53 = vld [vmem:[%s4567_s26 + $0xf0] sm:$0xf] }
  0x25   : > { %459 = vrot.lane.b32.xlu2 %v3710_v61, %s4484_s27  ;;  %v643_v40 = vor.u32 %v642_v35, %v639_v34  ;;  %v648_v46 = vrot.slane %v646_v41, 5  ;;  %v653_v48 = vrot.slane %v651_v43, 4  ;;  %v872_v52 = vshll.u32 %v3790_v47, 16  ;;  %v3718_v55 = vld [vmem:[%s4567_s26 + $0xe8] sm:$0xf] }
  0x26   : > { %v853_v38 = vsel %vm4580_vm2, %v848_v30, %v852_v31  ;;  %v656_v49 = vrot.slane %v654_v44, 5  ;;  %v660_v57 = vshll.u32 %v3727_v50, 16  ;;  %v871_v58 = vrot.slane %v869_v51, 4  ;;  %v3791_v60 = vld [vmem:[%s4567_s26 + $0x1c] sm:$0x1] }
  0x27   : > { %v644_v45 = vrot.slane %v643_v40, 4  ;;  %v874_v59 = vrot.slane %v872_v52, 5  ;;  %v3792_v0 = vld [vmem:[%s4567_s26 + $0x20] sm:$0xf]  ;;  %v878_v2 = vshll.u32 %v3791_v60, 16 }
  0x28   : > { %461 = vrot.lane.b32.xlu0 %v3711_v63, %s4484_s27  ;;  %v657_v56 = vor.u32 %v656_v49, %v653_v48  ;;  %v662_v62 = vrot.slane %v660_v57, 5  ;;  %v3836_v63 = vld [vmem:[%s4567_s26 + $0x28] sm:$0xf]  ;;  %v883_v8 = vshrl.u32 %v3792_v0, 16  ;;  %v886_v9 = vshll.u32 %v3792_v0, 16 }
  0x29   : > { %666 = vrot.lane.b32.xlu1 %v635_v3, %s4485_s28  ;;  %v649_v54 = vsel %vm4580_vm2, %v644_v45, %v648_v46  ;;  %v875_v1 = vor.u32 %v874_v59, %v871_v58  ;;  %v3784_v3 = vld [vmem:[%s4567_s26 + $0x60] sm:$0xf]  ;;  %v3785_v4 = vld [vmem:[%s4567_s26 + $0x68] sm:$0xf]  ;;  %v1168_v5 = vshrl.u32 %v3836_v63, 16  ;;  %v1171_v6 = vshll.u32 %v3836_v63, 16 }
  0x2a   : > { %v658_v61 = vrot.slane %v657_v56, 4  ;;  %v3834_v10 = vld [vmem:[%s4567_s26 + $0x20] sm:$0xf]  ;;  %v880_v12 = vrot.slane %v878_v2, 5  ;;  %v3837_v14 = vld [vmem:[%s4567_s26 + $0x2c] sm:$0x1] }
  0x2b   : > { %v876_v11 = vrot.slane %v875_v1, 4  ;;  %v1154_v13 = vshrl.u32 %v3834_v10, 16  ;;  %v1170_v15 = vrot.slane %v1168_v5, 4  ;;  %v1173_v16 = vrot.slane %v1171_v6, 5  ;;  %v3793_v23 = vld [vmem:[%s4567_s26 + $0x24] sm:$0x1] }
  0x2c   : > { %v663_v7 = vsel %vm4580_vm2, %v658_v61, %v662_v62  ;;  %v1157_v17 = vshll.u32 %v3834_v10, 16  ;;  %v885_v18 = vrot.slane %v883_v8, 4  ;;  %v888_v19 = vrot.slane %v886_v9, 5  ;;  %v3831_v28 = vld [vmem:[%s4567_s26 + $0x70] sm:$0xf] }
  0x2d   : > { %545 = vrot.lane.b32.xlu2 %v538_v21, %s4485_s28  ;;  %v3850_v21 = vld [vmem:[%s4567_s26 + $0xb0] sm:$0xf]  ;;  %v1156_v22 = vrot.slane %v1154_v13, 4  ;;  %v881_v26 = vsel %vm4580_vm2, %v876_v11, %v880_v12  ;;  %v1177_v27 = vshll.u32 %v3837_v14, 16  ;;  %v1174_v30 = vor.u32 %v1173_v16, %v1170_v15  ;;  %v3830_v34 = vld [vmem:[%s4567_s26 + $0x68] sm:$0xf] }
  0x2e   : > { %v1159_v25 = vrot.slane %v1157_v17, 5  ;;  %v1278_v31 = vshrl.u32 %v3850_v21, 16  ;;  %v1281_v32 = vshll.u32 %v3850_v21, 16  ;;  %v889_v35 = vor.u32 %v888_v19, %v885_v18  ;;  %v3851_v45 = vld [vmem:[%s4567_s26 + $0xb4] sm:$0x1] }
  0x2f   : > { %v892_v36 = vshll.u32 %v3793_v23, 16  ;;  %v1179_v40 = vrot.slane %v1177_v27, 5  ;;  %v3852_v46 = vld [vmem:[%s4567_s26 + $0xb8] sm:$0xf]  ;;  %v1287_v50 = vshll.u32 %v3851_v45, 16 }
  0x30   : > { %816 = vrot.lane.b32.xlu0 %v3782_v24, %s4484_s27  ;;  %v3835_v24 = vld [vmem:[%s4567_s26 + $0x24] sm:$0x1]  ;;  %v1160_v33 = vor.u32 %v1159_v25, %v1156_v22  ;;  %v1280_v41 = vrot.slane %v1278_v31, 4  ;;  %v890_v43 = vrot.slane %v889_v35, 4  ;;  %v1292_v52 = vshrl.u32 %v3852_v46, 16 }
  0x31   : > { %543 = vrot.lane.b32.xlu1 %v524_v29, %s4485_s28  ;;  %v1163_v29 = vshll.u32 %v3835_v24, 16  ;;  %v894_v44 = vrot.slane %v892_v36, 5  ;;  %v3853_v58 = vld [vmem:[%s4567_s26 + $0xbc] sm:$0x1]  ;;  %v3838_v59 = vld [vmem:[%s4567_s26 + $0x30] sm:$0xf] }
  0x32   : > { %v1161_v37 = vrot.slane %v1160_v33, 4  ;;  %v1294_v56 = vrot.slane %v1292_v52, 4  ;;  %v3847_v60 = vld [vmem:[%s4567_s26 + $0x100] sm:$0xf]  ;;  %v3846_v62 = vld [vmem:[%s4567_s26 + $0xf8] sm:$0xf] }
  0x33   : > { %v895_v51 = vsel %vm4580_vm2, %v890_v43, %v894_v44  ;;  %v1301_v0 = vshll.u32 %v3853_v58, 16  ;;  %v1182_v1 = vshrl.u32 %v3838_v59, 16  ;;  %v1185_v2 = vshll.u32 %v3838_v59, 16  ;;  %v437_v11 = vld [vmem:[%s4567_s26] sm:$0xf] }
  0x34   : > { %v3839_v12 = vld [vmem:[%s4567_s26 + $0x34] sm:$0x1]  ;;  %442 = vst.msk [vmem:[#allocation3] sm:$0xf] %vm441_vm3, %v437_v11  ;;  %v3832_v15 = vld [vmem:[%s4567_s26 + $0x78] sm:$0xf] }
  0x35   : > { %896 = vrot.lane.b32.xlu2 %v853_v38, %s4485_s28  ;;  %v1165_v38 = vrot.slane %v1163_v29, 5  ;;  %v1303_v8 = vrot.slane %v1301_v0, 5  ;;  %v1184_v9 = vrot.slane %v1182_v1, 4  ;;  %v1187_v10 = vrot.slane %v1185_v2, 5  ;;  %v3841_v16 = vld [vmem:[%s4567_s26 + $0x3c] sm:$0x1] }
  0x36   : > { %v3833_v17 = vld [vmem:[%s4567_s26 + $0x80] sm:$0xf]  ;;  %v1205_v21 = vshll.u32 %v3841_v16, 16  ;;  %v1191_v24 = vshll.u32 %v3839_v12, 16  ;;  %v3916_v29 = vld [vmem:[%s4567_s26 + $0x28] sm:$0xf] }
  0x37   : > { %v1166_v47 = vsel %vm4580_vm2, %v1161_v37, %v1165_v38  ;;  %v1188_v23 = vor.u32 %v1187_v10, %v1184_v9  ;;  %v1511_v33 = vshll.u32 %v3916_v29, 16  ;;  %v3854_v36 = vld [vmem:[%s4567_s26 + $0xc0] sm:$0xf]  ;;  %v438_v37 = vld [vmem:[%s4567_s26 + $0x8] sm:$0xf] }
  0x38   : > { %898 = vrot.lane.b32.xlu0 %v867_v39, %s4485_s28  ;;  %v1175_v39 = vrot.slane %v1174_v30, 4  ;;  %v3919_v30 = vld [vmem:[%s4567_s26 + $0x34] sm:$0x1]  ;;  %v1193_v35 = vrot.slane %v1191_v24, 5  ;;  %443 = vst.msk [vmem:[#allocation3 + $0x4] sm:$0xf] %vm441_vm3, %v438_v37 }
  0x39   : > { %818 = vrot.lane.b32.xlu1 %v3783_v42, %s4484_s27  ;;  %v1283_v42 = vrot.slane %v1281_v32, 5  ;;  %v1508_v32 = vshrl.u32 %v3916_v29, 16  ;;  %v3917_v43 = vld [vmem:[%s4567_s26 + $0x2c] sm:$0x1]  ;;  %v3912_v44 = vld [vmem:[%s4567_s26 + $0x70] sm:$0xf] }
  0x3a   : > { %v1180_v48 = vsel %vm4580_vm2, %v1175_v39, %v1179_v40  ;;  %v1513_v39 = vrot.slane %v1511_v33, 5  ;;  %v1306_v45 = vshrl.u32 %v3854_v36, 16  ;;  %v3855_v58 = vld [vmem:[%s4567_s26 + $0xc4] sm:$0x1]  ;;  %v3856_v59 = vld [vmem:[%s4567_s26 + $0xc8] sm:$0xf] }
  0x3b   : > { %v1284_v49 = vor.u32 %v1283_v42, %v1280_v41  ;;  %v1510_v38 = vrot.slane %v1508_v32, 4  ;;  %v1531_v41 = vshll.u32 %v3919_v30, 16  ;;  %v1320_v0 = vshrl.u32 %v3856_v59, 16  ;;  %v3913_v2 = vld [vmem:[%s4567_s26 + $0x78] sm:$0xf]  ;;  %v4285_v11 = vld [vmem:[%s5688_s1] sm:$0xff] }
  0x3c   : > { %v1323_v1 = vshll.u32 %v3856_v59, 16  ;;  %v3857_v9 = vld [vmem:[%s4567_s26 + $0xcc] sm:$0x1]  ;;  %v3920_v10 = vld [vmem:[%s4567_s26 + $0x38] sm:$0xf]  ;;  %v4291_v29 = vld [vmem:[%s5688_s1 + $0x20] sm:$0xff] }
  0x3d   : > { %590 = vrot.lane.b32.xlu2 %v3719_v53, %s4484_s27  ;;  %v1295_v53 = vshll.u32 %v3852_v46, 16  ;;  %v1309_v46 = vshll.u32 %v3854_v36, 16  ;;  %v3848_v12 = vld [vmem:[%s4567_s26 + $0x108] sm:$0xf]  ;;  %v1536_v16 = vshrl.u32 %v3920_v10, 16 }
  0x3e   : > { %v3921_v30 = vld [vmem:[%s4567_s26 + $0x3c] sm:$0x1]  ;;  %v3915_v32 = vld [vmem:[%s4567_s26 + $0x88] sm:$0xf]  ;;  %v3914_v33 = vld [vmem:[%s4567_s26 + $0x80] sm:$0xf] }
  0x3f   : > { %v1297_v57 = vrot.slane %v1295_v53, 5 }
  0x40   : > { %668 = vrot.lane.b32.xlu0 %v649_v54, %s4485_s28  ;;  %v1285_v54 = vrot.slane %v1284_v49, 4 }
  0x41   : > { %588 = vrot.lane.b32.xlu1 %v3718_v55, %s4484_s27  ;;  %v1289_v55 = vrot.slane %v1287_v50, 5  ;;  %v1298_v63 = vor.u32 %v1297_v57, %v1294_v56  ;;  %v4287_v57 = vld [vmem:[%s5688_s1 + $0x10] sm:$0xff] }
  0x42   : > { %784 = vmatpush.bf16.msra.mxu1 %v4287_v57 }
  0x43   : > { %v1290_v61 = vsel %vm4580_vm2, %v1285_v54, %v1289_v55  ;;  %v1308_v54 = vrot.slane %v1306_v45, 4  ;;  %v1311_v55 = vrot.slane %v1309_v46, 5 }
  0x45   : > { %820 = vrot.lane.b32.xlu2 %v3784_v3, %s4484_s27  ;;  %v3840_v3 = vld [vmem:[%s4567_s26 + $0x38] sm:$0xf] }
  0x46   : > { %v1196_v5 = vshrl.u32 %v3840_v3, 16  ;;  %v1199_v6 = vshll.u32 %v3840_v3, 16  ;;  %v4286_v3 = vld [vmem:[%s5688_s1 + $0x8] sm:$0xff] }
  0x47   : > { %785 = vmatpush.bf16.msra.mxu1 %v4286_v3 }
  0x48   : > { %822 = vrot.lane.b32.xlu0 %v3785_v4, %s4484_s27  ;;  %v3918_v4 = vld [vmem:[%s4567_s26 + $0x30] sm:$0xf]  ;;  %v1198_v18 = vrot.slane %v1196_v5, 4  ;;  %v1201_v19 = vrot.slane %v1199_v6, 5  ;;  %v1322_v6 = vrot.slane %v1320_v0, 4 }
  0x49   : > { %670 = vrot.lane.b32.xlu1 %v663_v7, %s4485_s28  ;;  %v1299_v7 = vrot.slane %v1298_v63, 4  ;;  %v1522_v13 = vshrl.u32 %v3918_v4, 16  ;;  %v1525_v14 = vshll.u32 %v3918_v4, 16  ;;  %v1315_v63 = vshll.u32 %v3855_v58, 16  ;;  %v4296_v58 = vld [vmem:[%s5688_s1 + $0x38] sm:$0xff] }
  0x4a   : > { %v1202_v25 = vor.u32 %v1201_v19, %v1198_v18  ;;  %v1539_v18 = vshll.u32 %v3920_v10, 16  ;;  %v439_v19 = vld [vmem:[%s4567_s26 + $0x10] sm:$0xf]  ;;  %v3713_v0 = vld [vmem:[%s4567_s26 + $0x98] sm:$0xf] }
  0x4b   : > { %v1304_v22 = vsel %vm4580_vm2, %v1299_v7, %v1303_v8  ;;  %v1527_v27 = vrot.slane %v1525_v14, 5  ;;  %v1317_v5 = vrot.slane %v1315_v63, 5  ;;  %v1325_v7 = vrot.slane %v1323_v1, 5  ;;  %786 = vmatpush.bf16.msra.mxu1 %v4285_v11  ;;  %444 = vst.msk [vmem:[#allocation3 + $0x8] sm:$0xf] %vm441_vm3, %v439_v19  ;;  %v4302_v19 = vld [vmem:[%s5688_s1 + $0x10] sm:$0xff] }
  0x4c   : > { %v1203_v31 = vrot.slane %v1202_v25, 4  ;;  %v3779_v11 = vld [vmem:[%s4567_s26 + $0x10] sm:$0xf] }
  0x4d   : > { %1131 = vrot.lane.b32.xlu2 %v3831_v28, %s4484_s27  ;;  %v1207_v28 = vrot.slane %v1205_v21, 5  ;;  %v1326_v14 = vor.u32 %v1325_v7, %v1322_v6  ;;  %v440_v21 = vld [vmem:[%s4567_s26 + $0x18] sm:$0xf]  ;;  %v3715_v6 = vld [vmem:[%s4567_s26 + $0xa8] sm:$0xf] }
  0x4e   : > { %445 = vst.msk [vmem:[#allocation3 + $0xc] sm:$0xf] %vm441_vm3, %v440_v21 }
  0x4f   : > { %v1208_v42 = vsel %vm4580_vm2, %v1203_v31, %v1207_v28  ;;  %v1541_v28 = vrot.slane %v1539_v18, 5  ;;  %v3922_v31 = vld [vmem:[%s4567_s26 + $0x40] sm:$0xf] }
  0x50   : > { %900 = vrot.lane.b32.xlu0 %v881_v26, %s4485_s28  ;;  %v1524_v26 = vrot.slane %v1522_v13, 4  ;;  %v3826_v18 = vld [vmem:[%s4567_s26 + $0x20] sm:$0xf] }
  0x51   : > { %1129 = vrot.lane.b32.xlu1 %v3830_v34, %s4484_s27  ;;  %v1189_v34 = vrot.slane %v1188_v23, 4  ;;  %v1327_v23 = vrot.slane %v1326_v14, 4 }
  0x52   : > { %v1528_v40 = vor.u32 %v1527_v27, %v1524_v26  ;;  %v1538_v27 = vrot.slane %v1536_v16, 4 }
  0x53   : > { %v1194_v49 = vsel %vm4580_vm2, %v1189_v34, %v1193_v35  ;;  %v1550_v34 = vshrl.u32 %v3922_v31, 16  ;;  %v1553_v35 = vshll.u32 %v3922_v31, 16  ;;  %v4312_v31 = vld [vmem:[%s5688_s1 + $0x40] sm:$0xff] }
  0x54   : > { %v1529_v50 = vrot.slane %v1528_v40, 4  ;;  %v1542_v37 = vor.u32 %v1541_v28, %v1538_v27  ;;  %v3827_v27 = vld [vmem:[%s4567_s26 + $0x28] sm:$0xf]  ;;  %v4300_v28 = vld [vmem:[%s5688_s1] sm:$0xff]  ;;  %1628 = vmatpush.bf16.msrb.mxu1 %v4312_v31 }
  0x55   : > { %1209 = vrot.lane.b32.xlu2 %v1166_v47, %s4485_s28  ;;  %v1514_v47 = vor.u32 %v1513_v39, %v1510_v38  ;;  %v1545_v38 = vshll.u32 %v3921_v30, 16  ;;  %v4290_v39 = vld [vmem:[%s5688_s1 + $0x18] sm:$0xff]  ;;  %v1552_v40 = vrot.slane %v1550_v34, 4 }
  0x56   : > { %v3780_v34 = vld [vmem:[%s4567_s26 + $0x18] sm:$0xf] }
  0x57   : > { %v1515_v52 = vrot.slane %v1514_v47, 4  ;;  %v1543_v47 = vrot.slane %v1542_v37, 4 }
  0x58   : > { %1211 = vrot.lane.b32.xlu0 %v1180_v48, %s4485_s28  ;;  %v1517_v48 = vshll.u32 %v3917_v43, 16 }
  0x59   : > { %902 = vrot.lane.b32.xlu1 %v895_v51, %s4485_s28  ;;  %v1533_v51 = vrot.slane %v1531_v41, 5  ;;  %v1555_v41 = vrot.slane %v1553_v35, 5 }
  0x5a   : > { %v1519_v53 = vrot.slane %v1517_v48, 5  ;;  %v1547_v48 = vrot.slane %v1545_v38, 5  ;;  %v4306_v38 = vld [vmem:[%s5688_s1 + $0x20] sm:$0xff] }
  0x5d   : > { %1255 = vrot.lane.b32.xlu2 %v3847_v60, %s4484_s27  ;;  %v1534_v60 = vsel %vm4580_vm2, %v1529_v50, %v1533_v51 }
  0x60   : > { %1333 = vrot.lane.b32.xlu0 %v1290_v61, %s4485_s28  ;;  %v1520_v61 = vsel %vm4580_vm2, %v1515_v52, %v1519_v53  ;;  %v4297_v53 = vld [vmem:[%s5688_s1 + $0x40] sm:$0xff] }
  0x61   : > { %1253 = vrot.lane.b32.xlu1 %v3846_v62, %s4484_s27  ;;  %v1312_v62 = vor.u32 %v1311_v55, %v1308_v54  ;;  %v1548_v54 = vsel %vm4580_vm2, %v1543_v47, %v1547_v48  ;;  %962 = vmatpush.bf16.msra.mxu2 %v4297_v53  ;;  %v3712_v55 = vld [vmem:[%s4567_s26 + $0x90] sm:$0xf]  ;;  %v4311_v47 = vld [vmem:[%s5688_s1 + $0x38] sm:$0xff] }
  0x62   : > { %1629 = vmatpush.bf16.msrb.mxu1 %v4311_v47  ;;  %v3828_v48 = vld [vmem:[%s4567_s26 + $0x30] sm:$0xf] }
  0x63   : > { %v1313_v4 = vrot.slane %v1312_v62, 4  ;;  %v4295_v62 = vld [vmem:[%s5688_s1 + $0x30] sm:$0xff] }
  0x65   : > { %1133 = vrot.lane.b32.xlu2 %v3832_v15, %s4484_s27  ;;  %v1318_v13 = vsel %vm4580_vm2, %v1313_v4, %v1317_v5  ;;  %v1329_v15 = vshll.u32 %v3857_v9, 16  ;;  %963 = vmatpush.bf16.msra.mxu2 %v4296_v58 }
  0x67   : > { %v1331_v26 = vrot.slane %v1329_v15, 5 }
  0x68   : > { %1135 = vrot.lane.b32.xlu0 %v3833_v17, %s4484_s27  ;;  %v3849_v17 = vld [vmem:[%s4567_s26 + $0x110] sm:$0xf] }
  0x69   : > { %1335 = vrot.lane.b32.xlu1 %v1304_v22, %s4485_s28  ;;  %v4292_v22 = vld [vmem:[%s5688_s1 + $0x28] sm:$0xff]  ;;  %v1332_v36 = vsel %vm4580_vm2, %v1327_v23, %v1331_v26  ;;  %964 = vmatpush.bf16.msra.mxu2 %v4295_v62 }
  0x6a   : > { %731 = vmatpush.bf16.msra.mxu0 %v4292_v22 }
  0x6d   : > { %1215 = vrot.lane.b32.xlu2 %v1208_v42, %s4485_s28  ;;  %v3923_v42 = vld [vmem:[%s4567_s26 + $0x44] sm:$0x1] }
  0x6e   : > { %732 = vmatpush.bf16.msra.mxu0 %v4291_v29  ;;  %v1559_v45 = vshll.u32 %v3923_v42, 16  ;;  %v4486_v42 = vmov 0  }
  0x6f   : > { %v4712_v56 = vpop.permute.xlu2 %584  ;;  %416 = vst.msk [vmem:[#allocation2] sm:$0xf] %vm415_vm7, %v4486_v42 }
  0x70   : > { %1483 = vrot.lane.b32.xlu0 %v3912_v44, %s4484_s27  ;;  %v1556_v44 = vor.u32 %v1555_v41, %v1552_v40  ;;  %v1561_v51 = vrot.slane %v1559_v45, 5  ;;  %v3781_v40 = vld [vmem:[%s4567_s26 + $0x20] sm:$0xf]  ;;  %418 = vst.msk [vmem:[#allocation2 + $0x4] sm:$0x1] %vm417_vm8, %v4486_v42 }
  0x71   : > { %1213 = vrot.lane.b32.xlu1 %v1194_v49, %s4485_s28  ;;  %419 = vst.msk [vmem:[#allocation2 + $0x8] sm:$0xf] %vm415_vm7, %v4486_v42 }
  0x72   : > { %733 = vmatpush.bf16.msra.mxu0 %v4290_v39  ;;  %v1557_v50 = vrot.slane %v1556_v44, 4  ;;  %v4305_v39 = vld [vmem:[%s5688_s1 + $0x18] sm:$0xff]  ;;  %420 = vst.msk [vmem:[#allocation2 + $0xc] sm:$0x1] %vm417_vm8, %v4486_v42 }
  0x73   : > { %421 = vst.msk [vmem:[#allocation2 + $0x10] sm:$0xf] %vm415_vm7, %v4486_v42 }
  0x74   : > { %v1562_v52 = vsel %vm4580_vm2, %v1557_v50, %v1561_v51  ;;  %422 = vst.msk [vmem:[#allocation2 + $0x14] sm:$0x1] %vm417_vm8, %v4486_v42 }
  0x75   : > { %1563 = vrot.lane.b32.xlu2 %v1520_v61, %s4485_s28  ;;  %423 = vst.msk [vmem:[#allocation2 + $0x18] sm:$0xf] %vm415_vm7, %v4486_v42 }
  0x76   : > { %1451 = vmatpush.bf16.msrb.mxu0 %v4302_v19  ;;  %424 = vst.msk [vmem:[#allocation2 + $0x1c] sm:$0x1] %vm417_vm8, %v4486_v42 }
  0x77   : > { %v4730_v8 = vpop.permute.xlu2 %586  ;;  %425 = vst.msk [vmem:[#allocation2 + $0x20] sm:$0xf] %vm415_vm7, %v4486_v42 }
  0x78   : > { %1565 = vrot.lane.b32.xlu0 %v1534_v60, %s4485_s28  ;;  %426 = vst.msk [vmem:[#allocation2 + $0x24] sm:$0x1] %vm417_vm8, %v4486_v42 }
  0x79   : > { %1485 = vrot.lane.b32.xlu1 %v3913_v2, %s4484_s27  ;;  %427 = vst.msk [vmem:[#allocation2 + $0x28] sm:$0xf] %vm415_vm7, %v4486_v42 }
  0x7a   : > { %428 = vst.msk [vmem:[#allocation2 + $0x2c] sm:$0x1] %vm417_vm8, %v4486_v42 }
  0x7b   : > { %429 = vst.msk [vmem:[#allocation2 + $0x30] sm:$0xf] %vm415_vm7, %v4486_v42 }
  0x7c   : > { %430 = vst.msk [vmem:[#allocation2 + $0x34] sm:$0x1] %vm417_vm8, %v4486_v42 }
  0x7d   : > { %1259 = vrot.lane.b32.xlu2 %v3849_v17, %s4484_s27  ;;  %431 = vst.msk [vmem:[#allocation2 + $0x38] sm:$0xf] %vm415_vm7, %v4486_v42 }
  0x7e   : > { %432 = vst.msk [vmem:[#allocation2 + $0x3c] sm:$0x1] %vm417_vm8, %v4486_v42 }
  0x7f   : > { %v460_v24 = vpop.permute.xlu2 %459  ;;  %433 = vst.msk [vmem:[#allocation2 + $0x40] sm:$0xf] %vm415_vm7, %v4486_v42 }
  0x80   : > { %1337 = vrot.lane.b32.xlu0 %v1318_v13, %s4485_s28  ;;  %470 = vst.msk [vmem:[#allocation3 + $0x8] sm:$0xf] %vm467_vm4, %v460_v24  ;;  %v3714_v13 = vld [vmem:[%s4567_s26 + $0xa0] sm:$0xf]  ;;  %v4301_v24 = vld [vmem:[%s5688_s1 + $0x8] sm:$0xff] }
  0x81   : > { %1257 = vrot.lane.b32.xlu1 %v3848_v12, %s4484_s27  ;;  %1452 = vmatpush.bf16.msrb.mxu0 %v4301_v24  ;;  %434 = vst.msk [vmem:[#allocation2 + $0x44] sm:$0x1] %vm417_vm8, %v4486_v42 }
  0x82   : > { %v456_v25 = vpop.permute.xlu0 %455  ;;  %435 = vst.msk [vmem:[#allocation2 + $0x48] sm:$0xf] %vm415_vm7, %v4486_v42 }
  0x83   : > { %468 = vst.msk [vmem:[#allocation3] sm:$0xf] %vm467_vm4, %v456_v25 }
  0x84   : > { %436 = vst.msk [vmem:[#allocation2 + $0x4c] sm:$0x1] %vm417_vm8, %v4486_v42 }
  0x85   : > { %1487 = vrot.lane.b32.xlu2 %v3914_v33, %s4484_s27  ;;  %1453 = vmatpush.bf16.msrb.mxu0 %v4300_v28 }
  0x87   : > { %v546_v43 = vpop.permute.xlu2 %545 }
  0x88   : > { %1489 = vrot.lane.b32.xlu0 %v3915_v32, %s4484_s27  ;;  %v4307_v32 = vld [vmem:[%s5688_s1 + $0x28] sm:$0xff] }
  0x89   : > { %1339 = vrot.lane.b32.xlu1 %v1332_v36, %s4485_s28  ;;  %1398 = vmatpush.bf16.msra.mxu3 %v4307_v32  ;;  %v3845_v32 = vld [vmem:[%s4567_s26 + $0xc8] sm:$0xf] }
  0x8a   : > { %v458_v46 = vpop.permute.xlu0 %457 }
  0x8b   : > { %v540_v49 = vpop.permute.xlu1 %539  ;;  %469 = vst.msk [vmem:[#allocation3 + $0x4] sm:$0xf] %vm467_vm4, %v458_v46 }
  0x8c   : > { %552 = vst.msk [vmem:[#allocation3] sm:$0xf] %vm551_vm5, %v540_v49  ;;  %v1779_v49 = vld [vmem:[#allocation2] sm:$0xf] }
  0x8d   : > { %1569 = vrot.lane.b32.xlu2 %v1562_v52, %s4485_s28  ;;  %1399 = vmatpush.bf16.msra.mxu3 %v4306_v38  ;;  %v1788_v52 = vshrl.u32 %v1779_v49, 16  ;;  %v1791_v53 = vshll.u32 %v1779_v49, 16 }
  0x8f   : > { %v897_v57 = vpop.permute.xlu2 %896  ;;  %v1793_v58 = vrot.slane %v1791_v53, 5 }
  0x91   : > { %1567 = vrot.lane.b32.xlu1 %v1548_v54, %s4485_s28  ;;  %1400 = vmatpush.bf16.msra.mxu3 %v4305_v39  ;;  %v3911_v39 = vld [vmem:[%s4567_s26 + $0x40] sm:$0xf] }
  0x92   : > { %v665_v59 = vpop.permute.xlu0 %664 }
  0x93   : > { %v3758_v60 = vld [vmem:[#allocation3] sm:$0xf]  ;;  %v542_v61 = vpop.permute.xlu1 %541 }
  0x94   : > { %571 = vst.msk [vmem:[#allocation3] sm:$0xf] %vm441_vm3, %v3712_v55  ;;  %v3842_v55 = vld [vmem:[%s4567_s26 + $0xb0] sm:$0xf] }
  0x95   : > { %596 = vst.msk [vmem:[#allocation3] sm:$0xf] %vm467_vm4, %v4712_v56  ;;  %v3778_v56 = vld [vmem:[%s4567_s26 + $0x8] sm:$0xf] }
  0x96   : > { %553 = vst.msk [vmem:[#allocation3 + $0x4] sm:$0xf] %vm551_vm5, %v542_v61 }
  0x97   : > { %676 = vst.msk [vmem:[#allocation3] sm:$0xf] %vm551_vm5, %v665_v59  ;;  %v591_v2 = vpop.permute.xlu2 %590 }
  0x9a   : > { %v462_v63 = vpop.permute.xlu0 %461 }
  0x9b   : > { %v667_v1 = vpop.permute.xlu1 %666  ;;  %471 = vst.msk [vmem:[#allocation3 + $0xc] sm:$0xf] %vm467_vm4, %v462_v63  ;;  %v1780_v63 = vld [vmem:[#allocation2 + $0x4] sm:$0x1] }
  0x9c   : > { %555 = vst.msk [vmem:[#allocation3 + $0xc] sm:$0xf] %vm551_vm5, %v546_v43 }
  0x9d   : > { %v4283_v3 = vld [vmem:[#allocation3] sm:$0xf0] }
  0x9e   : > { %572 = vst.msk [vmem:[#allocation3 + $0x4] sm:$0xf] %vm441_vm3, %v3713_v0  ;;  %v3759_v4 = vor.u32 %v4283_v3, %v3758_v60  ;;  %v3736_v5 = vld [vmem:[#allocation3] sm:$0xf] }
  0x9f   : > { %597 = vst.msk [vmem:[#allocation3 + $0x4] sm:$0xf] %vm467_vm4, %v4730_v8  ;;  %v821_v8 = vpop.permute.xlu2 %820  ;;  %v4310_v60 = vld [vmem:[%s5688_s1 + $0x30] sm:$0xff] }
  0xa0   : > { %803 = vst.msk [vmem:[#allocation3] sm:$0xf] %vm441_vm3, %v3778_v56  ;;  %3776 = vmatmul.msk.bf16.vlgmr.msra.gmra.mxu1 %vm719_vm6, %v3759_v4 }
  0xa1   : > { %677 = vst.msk [vmem:[#allocation3 + $0x4] sm:$0xf] %vm551_vm5, %v667_v1  ;;  %1630 = vmatpush.bf16.msrb.mxu1 %v4310_v60  ;;  %v1797_v1 = vshll.u32 %v1780_v63, 16  ;;  %v1771_v60 = vld [vmem:[#allocation2] sm:$0xf] }
  0xa2   : > { %v817_v7 = vpop.permute.xlu0 %816  ;;  %1775 = vst.msk [vmem:[#allocation4] sm:$0xf] %vm415_vm7, %v1771_v60  ;;  %v1096_v60 = vld [vmem:[#allocation2 + $0x14] sm:$0x1] }
  0xa3   : > { %v544_v9 = vpop.permute.xlu1 %543  ;;  %828 = vst.msk [vmem:[#allocation3] sm:$0xf] %vm467_vm4, %v817_v7  ;;  %v4284_v10 = vld [vmem:[#allocation3 + $0x8] sm:$0xf0]  ;;  %v1799_v56 = vrot.slane %v1797_v1, 5 }
  0xa4   : > { %554 = vst.msk [vmem:[#allocation3 + $0x8] sm:$0xf] %vm551_vm5, %v544_v9 }
  0xa5   : > { %574 = vst.msk [vmem:[#allocation3 + $0xc] sm:$0xf] %vm441_vm3, %v3715_v6  ;;  %v3843_v6 = vld [vmem:[%s4567_s26 + $0xb8] sm:$0xf] }
  0xa6   : > { %908 = vst.msk [vmem:[#allocation3] sm:$0xf] %vm551_vm5, %v897_v57  ;;  %v1790_v57 = vrot.slane %v1788_v52, 4 }
  0xa7   : > { %599 = vst.msk [vmem:[#allocation3 + $0xc] sm:$0xf] %vm467_vm4, %v591_v2  ;;  %v1132_v23 = vpop.permute.xlu2 %1131  ;;  %v3829_v2 = vld [vmem:[%s4567_s26 + $0x38] sm:$0xf] }
  0xa8   : > { %v4288_v12 = vld [vmem:[#allocation3] sm:$0xf0]  ;;  %v1794_v62 = vor.u32 %v1793_v58, %v1790_v57 }
  0xa9   : > { %804 = vst.msk [vmem:[#allocation3 + $0x4] sm:$0xf] %vm441_vm3, %v3779_v11  ;;  %v3737_v14 = vor.u32 %v4288_v12, %v3736_v5  ;;  %v3908_v11 = vld [vmem:[%s4567_s26 + $0x28] sm:$0xf] }
  0xaa   : > { %v899_v15 = vpop.permute.xlu0 %898  ;;  %v1795_v0 = vrot.slane %v1794_v62, 4 }
  0xab   : > { %v3762_v16 = vld [vmem:[#allocation3 + $0x8] sm:$0xf]  ;;  %3754 = vmatmul.msk.bf16.vlgmr.msra.gmra.mxu0 %vm719_vm6, %v3737_v14  ;;  %v819_v17 = vpop.permute.xlu1 %818 }
  0xac   : > { %573 = vst.msk [vmem:[#allocation3 + $0x8] sm:$0xf] %vm441_vm3, %v3714_v13  ;;  %v3763_v21 = vor.u32 %v4284_v10, %v3762_v16  ;;  %v1800_v10 = vsel %vm4580_vm2, %v1795_v0, %v1799_v56  ;;  %v3909_v16 = vld [vmem:[%s4567_s26 + $0x30] sm:$0xf] }
  0xad   : > { %829 = vst.msk [vmem:[#allocation3 + $0x4] sm:$0xf] %vm467_vm4, %v819_v17  ;;  %v3802_v22 = vld [vmem:[#allocation3] sm:$0xf]  ;;  %1843 = vrot.lane.b32.xlu0 %v1800_v10, %s4485_s28 }
  0xae   : > { %1116 = vst.msk [vmem:[#allocation3] sm:$0xf] %vm441_vm3, %v3826_v18 }
  0xaf   : > { %909 = vst.msk [vmem:[#allocation3 + $0x4] sm:$0xf] %vm551_vm5, %v899_v15  ;;  %v1210_v33 = vpop.permute.xlu2 %1209 }
  0xb0   : > { %3777 = vmatmul.msk.bf16.gmra.mxu1 %vm719_vm6, %v3763_v21  ;;  %v1860_v21 = vld [vmem:[#allocation2] sm:$0xe] }
  0xb2   : > { %v669_v25 = vpop.permute.xlu0 %668 }
  0xb3   : > { %v589_v26 = vpop.permute.xlu1 %588 }
  0xb4   : > { %598 = vst.msk [vmem:[#allocation3 + $0x8] sm:$0xf] %vm467_vm4, %v589_v26 }
  0xb5   : > { %678 = vst.msk [vmem:[#allocation3 + $0x8] sm:$0xf] %vm551_vm5, %v669_v25 }
  0xb6   : > { %v4293_v29 = vld [vmem:[#allocation3] sm:$0xf0] }
  0xb7   : > { %1117 = vst.msk [vmem:[#allocation3 + $0x4] sm:$0xf] %vm441_vm3, %v3827_v27  ;;  %v3803_v30 = vor.u32 %v4293_v29, %v3802_v22  ;;  %v1256_v45 = vpop.permute.xlu2 %1255  ;;  %v1861_v22 = vld [vmem:[#allocation2 + $0x4] sm:$0x1] }
  0xb8   : > { %1142 = vst.msk [vmem:[#allocation3 + $0x4] sm:$0xf] %vm467_vm4, %v1132_v23  ;;  %v3956_v23 = vrot.slane %v1860_v21, 9  ;;  %v1881_v24 = vrot.slane %v1861_v22, 5 }
  0xb9   : > { %3820 = vmatmul.msk.bf16.vlgmr.msra.gmra.mxu2 %vm719_vm6, %v3803_v30  ;;  %v3844_v30 = vld [vmem:[%s4567_s26 + $0xc0] sm:$0xf] }
  0xba   : > { %v823_v35 = vpop.permute.xlu0 %822  ;;  %v1882_v27 = vsel %vm4926_vm11, %v3956_v23, %v1881_v24 }
  0xbb   : > { %v671_v36 = vpop.permute.xlu1 %670  ;;  %1895 = vrot.lane.b32.xlu2 %v1882_v27, %s4487_s19 }
  0xbc   : > { %v3740_v37 = vld [vmem:[#allocation3 + $0x8] sm:$0xf]  ;;  %679 = vst.msk [vmem:[#allocation3 + $0xc] sm:$0xf] %vm551_vm5, %v671_v36 }
  0xbd   : > { %805 = vst.msk [vmem:[#allocation3 + $0x8] sm:$0xf] %vm441_vm3, %v3780_v34 }
  0xbe   : > { %830 = vst.msk [vmem:[#allocation3 + $0x8] sm:$0xf] %vm467_vm4, %v821_v8 }
  0xbf   : > { %v1134_v59 = vpop.permute.xlu2 %1133 }
  0xc2   : > { %v901_v41 = vpop.permute.xlu0 %900 }
  0xc3   : > { %v4289_v43 = vld [vmem:[#allocation3 + $0x8] sm:$0xf0]  ;;  %v1130_v44 = vpop.permute.xlu1 %1129  ;;  %910 = vst.msk [vmem:[#allocation3 + $0x8] sm:$0xf] %vm551_vm5, %v901_v41 }
  0xc4   : > { %806 = vst.msk [vmem:[#allocation3 + $0xc] sm:$0xf] %vm441_vm3, %v3781_v40  ;;  %v3741_v46 = vor.u32 %v4289_v43, %v3740_v37 }
  0xc5   : > { %831 = vst.msk [vmem:[#allocation3 + $0xc] sm:$0xf] %vm467_vm4, %v823_v35  ;;  %v3910_v35 = vld [vmem:[%s4567_s26 + $0x38] sm:$0xf] }
  0xc6   : > { %1141 = vst.msk [vmem:[#allocation3] sm:$0xf] %vm467_vm4, %v1130_v44  ;;  %3755 = vmatmul.msk.bf16.gmra.mxu0 %vm719_vm6, %v3741_v46 }
  0xc7   : > { %1221 = vst.msk [vmem:[#allocation3] sm:$0xf] %vm551_vm5, %v1210_v33  ;;  %v1216_v12 = vpop.permute.xlu2 %1215 }
  0xca   : > { %v3806_v50 = vld [vmem:[#allocation3 + $0x8] sm:$0xf]  ;;  %v1212_v51 = vpop.permute.xlu0 %1211 }
  0xcb   : > { %1118 = vst.msk [vmem:[#allocation3 + $0x8] sm:$0xf] %vm441_vm3, %v3828_v48  ;;  %v903_v54 = vpop.permute.xlu1 %902  ;;  %v4964_v48 = vld [vmem:[%s5689_s2] ss:$0 sm:$0xff] }
  0xcc   : > { %911 = vst.msk [vmem:[#allocation3 + $0xc] sm:$0xf] %vm551_vm5, %v903_v54 }
  0xcd   : > { %1222 = vst.msk [vmem:[#allocation3 + $0x4] sm:$0xf] %vm551_vm5, %v1212_v51  ;;  %v4969_v51 = vld [vmem:[%s5690_s3] ss:$0 sm:$0xff] }
  0xce   : > { %v3888_v61 = vld [vmem:[#allocation3] sm:$0xf]  ;;  %1143 = vst.msk [vmem:[#allocation3 + $0x8] sm:$0xf] %vm467_vm4, %v1134_v59 }
  0xcf   : > { %1240 = vst.msk [vmem:[#allocation3] sm:$0xf] %vm441_vm3, %v3842_v55  ;;  %v1564_v17 = vpop.permute.xlu2 %1563 }
  0xd2   : > { %v1334_v3 = vpop.permute.xlu0 %1333 }
  0xd3   : > { %v4294_v4 = vld [vmem:[#allocation3 + $0x8] sm:$0xf0]  ;;  %v1254_v5 = vpop.permute.xlu1 %1253 }
  0xd4   : > { %1119 = vst.msk [vmem:[#allocation3 + $0xc] sm:$0xf] %vm441_vm3, %v3829_v2  ;;  %v4298_v7 = vld [vmem:[#allocation3] sm:$0xf0]  ;;  %v3807_v9 = vor.u32 %v4294_v4, %v3806_v50 }
  0xd5   : > { %1265 = vst.msk [vmem:[#allocation3] sm:$0xf] %vm467_vm4, %v1254_v5  ;;  %v3889_v8 = vor.u32 %v4298_v7, %v3888_v61 }
  0xd6   : > { %1241 = vst.msk [vmem:[#allocation3 + $0x4] sm:$0xf] %vm441_vm3, %v3843_v6  ;;  %3821 = vmatmul.msk.bf16.gmra.mxu2 %vm719_vm6, %v3807_v9 }
  0xd7   : > { %1266 = vst.msk [vmem:[#allocation3 + $0x4] sm:$0xf] %vm467_vm4, %v1256_v45  ;;  %3906 = vmatmul.msk.bf16.vlgmr.msrb.gmra.mxu0 %vm719_vm6, %v3889_v8  ;;  %v1260_v31 = vpop.permute.xlu2 %1259 }
  0xd8   : > { %1345 = vst.msk [vmem:[#allocation3] sm:$0xf] %vm551_vm5, %v1334_v3 }
  0xd9   : > { %1470 = vst.msk [vmem:[#allocation3] sm:$0xf] %vm441_vm3, %v3908_v11 }
  0xda   : > { %v1136_v13 = vpop.permute.xlu0 %1135 }
  0xdb   : > { %v1336_v14 = vpop.permute.xlu1 %1335  ;;  %1144 = vst.msk [vmem:[#allocation3 + $0xc] sm:$0xf] %vm467_vm4, %v1136_v13 }
  0xdc   : > { %1346 = vst.msk [vmem:[#allocation3 + $0x4] sm:$0xf] %vm551_vm5, %v1336_v14 }
  0xdd   : > { %1224 = vst.msk [vmem:[#allocation3 + $0xc] sm:$0xf] %vm551_vm5, %v1216_v12 }
  0xdf   : > { %v1488_v37 = vpop.permute.xlu2 %1487 }
  0xe2   : > { %v1484_v15 = vpop.permute.xlu0 %1483 }
  0xe3   : > { %v1214_v18 = vpop.permute.xlu1 %1213  ;;  %v4303_v19 = vld [vmem:[#allocation3] sm:$0xff] }
  0xe4   : > { %1495 = vst.msk [vmem:[#allocation3] sm:$0xf] %vm467_vm4, %v1484_v15  ;;  %3884 = vmatmul.msk.bf16.vlgmr.msra.gmra.mxu3 %vm719_vm6, %v4303_v19 }
  0xe5   : > { %1223 = vst.msk [vmem:[#allocation3 + $0x8] sm:$0xf] %vm551_vm5, %v1214_v18 }
  0xe6   : > { %1471 = vst.msk [vmem:[#allocation3 + $0x4] sm:$0xf] %vm441_vm3, %v3909_v16 }
  0xe7   : > { %1575 = vst.msk [vmem:[#allocation3] sm:$0xf] %vm551_vm5, %v1564_v17  ;;  %v1570_v43 = vpop.permute.xlu2 %1569 }
  0xea   : > { %v1566_v26 = vpop.permute.xlu0 %1565 }
  0xeb   : > { %v1486_v28 = vpop.permute.xlu1 %1485 }
  0xec   : > { %v4299_v29 = vld [vmem:[#allocation3 + $0x8] sm:$0xff]  ;;  %1496 = vst.msk [vmem:[#allocation3 + $0x4] sm:$0xf] %vm467_vm4, %v1486_v28 }
  0xed   : > { %1576 = vst.msk [vmem:[#allocation3 + $0x4] sm:$0xf] %vm551_vm5, %v1566_v26  ;;  %3907 = vmatmul.msk.bf16.gmra.mxu0 %vm719_vm6, %v4299_v29 }
  0xee   : > { %1242 = vst.msk [vmem:[#allocation3 + $0x8] sm:$0xf] %vm441_vm3, %v3844_v30 }
  0xef   : > { %1243 = vst.msk [vmem:[#allocation3 + $0xc] sm:$0xf] %vm441_vm3, %v3845_v32 }
  0xf0   : > { %1268 = vst.msk [vmem:[#allocation3 + $0xc] sm:$0xf] %vm467_vm4, %v1260_v31 }
  0xf2   : > { %v1338_v33 = vpop.permute.xlu0 %1337 }
  0xf3   : > { %v1258_v34 = vpop.permute.xlu1 %1257 }
  0xf4   : > { %1267 = vst.msk [vmem:[#allocation3 + $0x8] sm:$0xf] %vm467_vm4, %v1258_v34  ;;  %v4308_v36 = vld [vmem:[#allocation3] sm:$0xff] }
  0xf5   : > { %1347 = vst.msk [vmem:[#allocation3 + $0x8] sm:$0xf] %vm551_vm5, %v1338_v33  ;;  %3950 = vmatmul.msk.bf16.vlgmr.msrb.gmra.mxu1 %vm719_vm6, %v4308_v36 }
  0xf6   : > { %1472 = vst.msk [vmem:[#allocation3 + $0x8] sm:$0xf] %vm441_vm3, %v3910_v35 }
  0xf7   : > { %1497 = vst.msk [vmem:[#allocation3 + $0x8] sm:$0xf] %vm467_vm4, %v1488_v37 }
  0xfa   : > { %v1490_v40 = vpop.permute.xlu0 %1489 }
  0xfb   : > { %v1340_v38 = vpop.permute.xlu1 %1339 }
  0xfc   : > { %1348 = vst.msk [vmem:[#allocation3 + $0xc] sm:$0xf] %vm551_vm5, %v1340_v38  ;;  %v1084_v38 = vld [vmem:[#allocation2 + $0x8] sm:$0xf] }
 0x103   : > { %v1568_v41 = vpop.permute.xlu1 %1567  ;;  %v4304_v42 = vld [vmem:[#allocation3 + $0x8] sm:$0xff] }
 0x104   : > { %1473 = vst.msk [vmem:[#allocation3 + $0xc] sm:$0xf] %vm441_vm3, %v3911_v39  ;;  %3885 = vmatmul.msk.bf16.gmra.mxu3 %vm719_vm6, %v4304_v42  ;;  %vm2127_vm3 = vcmask 785408  }
 0x105   : > { %1498 = vst.msk [vmem:[#allocation3 + $0xc] sm:$0xf] %vm467_vm4, %v1490_v40  ;;  %v1090_v40 = vld [vmem:[#allocation2 + $0xc] sm:$0x1]  ;;  %vm3254_vm4 = vcmask 1041408  }
 0x106   : > { %1577 = vst.msk [vmem:[#allocation3 + $0x8] sm:$0xf] %vm551_vm5, %v1568_v41 }
 0x107   : > { %1578 = vst.msk [vmem:[#allocation3 + $0xc] sm:$0xf] %vm551_vm5, %v1570_v43  ;;  %vm3327_vm5 = vcmask 130048  }
 0x10e   : > { %v4309_v44 = vld [vmem:[#allocation3 + $0x8] sm:$0xff] }
 0x10f   : > { %3951 = vmatmul.msk.bf16.gmra.mxu1 %vm719_vm6, %v4309_v44 }
 0x115   : > { %v1896_v63 = vpop.permute.xlu2 %1895 }
 0x11d   : > { %v788_v46 = vpop.f32.mrf.mxu1 }
 0x11f   : > { %v1844_v1 = vpop.permute.xlu0 %1843 }
 0x120   : > { %1856 = vst.msk [vmem:[#allocation4] sm:$0xf] %vm1855_vm12, %v1844_v1 }
 0x121   : > { %1908 = vst.msk [vmem:[#allocation4] sm:$0xf] %vm1907_vm13, %v1896_v63 }
 0x125   : > { %v790_v55 = vpop.f32.mrf.mxu1 }
 0x128   : > { %v735_v45 = vpop.f32.mrf.mxu0 }
 0x129   : > { %v789_v47 = vadd.f32 %v788_v46, %v735_v45 }
 0x12d   : > { %v793_v8 = vpop.f32.mrf.mxu1 }
 0x130   : > { %v737_v53 = vpop.f32.mrf.mxu0 }
 0x131   : > { %v791_v57 = vadd.f32 %v790_v55, %v737_v53 }
 0x135   : > { %v795_v28 = vpop.f32.mrf.mxu1 }
 0x13c   : > { %v966_v49 = vpop.f32.mrf.mxu2 }
 0x13d   : > { %v976_v50 = vadd.f32 %v966_v49, %v789_v47 }
 0x13f   : > { %v984_v52 = vmul.f32 %v4964_v48, %v976_v50 }
 0x141   : > { %v992_v54 = vadd.f32 %v4969_v51, %v984_v52 }
 0x143   : > { %v996_v58 = vmin.f32 %v992_v54, 20.0  ;;  %v740_v9 = vpop.f32.mrf.mxu0 }
 0x144   : > { %v968_v59 = vpop.f32.mrf.mxu2  ;;  %v794_v14 = vadd.f32 %v793_v8, %v740_v9 }
 0x145   : > { %v1000_v61 = vmul.f32 1.442695, %v996_v58  ;;  %v977_v62 = vadd.f32 %v968_v59, %v791_v57 }
 0x147   : > { %4404 = vpow2.f32 %v1000_v61  ;;  %v985_v0 = vmul.f32 %v4964_v48, %v977_v62 }
 0x149   : > { %v993_v2 = vadd.f32 %v4969_v51, %v985_v0 }
 0x14b   : > { %v997_v3 = vmin.f32 %v993_v2, 20.0  ;;  %v742_v26 = vpop.f32.mrf.mxu0 }
 0x14c   : > { %v796_v30 = vadd.f32 %v795_v28, %v742_v26 }
 0x14d   : > { %v4405_v56 = vpop.eup %4404  ;;  %v1002_v4 = vmul.f32 1.442695, %v997_v3 }
 0x14e   : > { %v1008_v5 = vadd.f32 1.0, %v4405_v56 }
 0x14f   : > { %4406 = vpow2.f32 %v1002_v4 }
 0x150   : > { %v1012_v6 = vmul.f32 %v1008_v5, %v1008_v5 }
 0x152   : > { %v1024_v7 = vadd.f32 1.0, %v1012_v6  ;;  %v3822_v11 = vadd.f32 -1.0, %v1012_v6 }
 0x154   : > { %4408 = vrcp.f32 %v1024_v7  ;;  %v1020_v15 = vmul.f32 %v3822_v11, %v992_v54  ;;  %v1455_v0 = vpop.f32.mrf.mxu0 }
 0x155   : > { %v4407_v10 = vpop.eup %4406 }
 0x156   : > { %v1009_v12 = vadd.f32 1.0, %v4407_v10 }
 0x158   : > { %v1013_v13 = vmul.f32 %v1009_v12, %v1009_v12 }
 0x159   : > { %v971_v16 = vpop.f32.mrf.mxu2 }
 0x15a   : > { %v4409_v17 = vpop.eup %4408  ;;  %v1025_v18 = vadd.f32 1.0, %v1013_v13  ;;  %v978_v19 = vadd.f32 %v971_v16, %v794_v14  ;;  %v3823_v24 = vadd.f32 -1.0, %v1013_v13 }
 0x15b   : > { %v1032_v21 = vmul.f32 %v4409_v17, %v1020_v15 }
 0x15c   : > { %4410 = vrcp.f32 %v1025_v18  ;;  %v986_v22 = vmul.f32 %v4964_v48, %v978_v19  ;;  %v1021_v35 = vmul.f32 %v3823_v24, %v993_v2  ;;  %v5002_v2 = vld [vmem:[#allocation4] sm:$0xf] }
 0x15d   : > { %v1036_v23 = vpack.c.bf16 %v1032_v21, %v1032_v21  ;;  %v5016_v24 = vld [vmem:[%s5689_s2] ss:$0 sm:$0xff] }
 0x15e   : > { %v4980_v27 = vadd.f32 %v4969_v51, %v986_v22 }
 0x15f   : > { %v1041_v29 = vshrl.u32 %v1036_v23, 16  ;;  %v1044_v33 = vshll.u32 %v1036_v23, 16 }
 0x160   : > { %v998_v31 = vmin.f32 %v4980_v27, 20.0 }
 0x161   : > { %v1043_v32 = vrot.slane %v1041_v29, 7  ;;  %v973_v36 = vpop.f32.mrf.mxu2 }
 0x162   : > { %v4411_v37 = vpop.eup %4410  ;;  %v1004_v41 = vmul.f32 1.442695, %v998_v31  ;;  %v979_v42 = vadd.f32 %v973_v36, %v796_v30 }
 0x163   : > { %v1046_v43 = vor.u32 %v1044_v33, %v1043_v32  ;;  %v1047_v44 = vrot.slane %v1043_v32, 4  ;;  %v1033_v45 = vmul.f32 %v4411_v37, %v1021_v35 }
 0x164   : > { %4412 = vpow2.f32 %v1004_v41  ;;  %v987_v46 = vmul.f32 %v4964_v48, %v979_v42  ;;  %v1093_v48 = vld [vmem:[#allocation2 + $0x10] sm:$0xf] }
 0x165   : > { %v1085_v47 = vsel %vm4984_vm0, %v1046_v43, %v1084_v38  ;;  %v1091_v49 = vsel %vm4989_vm1, %v1047_v44, %v1090_v40  ;;  %v1037_v50 = vpack.c.bf16 %v1033_v45, %v1033_v45  ;;  %v1457_v43 = vpop.f32.mrf.mxu0 }
 0x166   : > { %1086 = vst [vmem:[#allocation2 + $0x8] sm:$0xf] %v1085_v47  ;;  %v4999_v52 = vadd.f32 %v4969_v51, %v987_v46 }
 0x167   : > { %1092 = vst [vmem:[#allocation2 + $0xc] sm:$0x1] %v1091_v49  ;;  %v1049_v53 = vshrl.u32 %v1037_v50, 16  ;;  %v1052_v57 = vshll.u32 %v1037_v50, 16  ;;  %v1402_v58 = vpop.f32.mrf.mxu3 }
 0x168   : > { %v999_v54 = vmin.f32 %v4999_v52, 20.0  ;;  %v1456_v23 = vadd.f32 %v1455_v0, %v1402_v58 }
 0x169   : > { %v1051_v55 = vrot.slane %v1049_v53, 7 }
 0x16a   : > { %v4413_v59 = vpop.eup %4412  ;;  %v1006_v61 = vmul.f32 1.442695, %v999_v54 }
 0x16b   : > { %v1054_v62 = vor.u32 %v1052_v57, %v1051_v55  ;;  %v1055_v63 = vrot.slane %v1051_v55, 4  ;;  %v1010_v1 = vadd.f32 1.0, %v4413_v59 }
 0x16c   : > { %4414 = vpow2.f32 %v1006_v61 }
 0x16d   : > { %v1094_v51 = vsel %vm4984_vm0, %v1054_v62, %v1093_v48  ;;  %v1097_v3 = vsel %vm4989_vm1, %v1055_v63, %v1096_v60  ;;  %v1014_v56 = vmul.f32 %v1010_v1, %v1010_v1  ;;  %v1928_v4 = vld [vmem:[#allocation2 + $0x8] sm:$0xf] }
 0x16e   : > { %v1862_v5 = vld [vmem:[#allocation2 + $0x8] sm:$0xe]  ;;  %1095 = vst [vmem:[#allocation2 + $0x10] sm:$0xf] %v1094_v51  ;;  %v1863_v7 = vld [vmem:[#allocation2 + $0xc] sm:$0x1] }
 0x16f   : > { %v1781_v6 = vld [vmem:[#allocation2 + $0x8] sm:$0xf]  ;;  %v3957_v9 = vrot.slane %v1862_v5, 9  ;;  %1098 = vst [vmem:[#allocation2 + $0x14] sm:$0x1] %v1097_v3  ;;  %v3824_v8 = vadd.f32 -1.0, %v1014_v56  ;;  %v1404_v31 = vpop.f32.mrf.mxu3 }
 0x170   : > { %v1802_v10 = vshrl.u32 %v1781_v6, 16  ;;  %v1026_v11 = vadd.f32 1.0, %v1014_v56  ;;  %v1885_v12 = vrot.slane %v1863_v7, 5  ;;  %v1805_v13 = vshll.u32 %v1781_v6, 16  ;;  %1932 = vst.msk [vmem:[#allocation4] sm:$0xf] %vm415_vm7, %v1928_v4 }
 0x171   : > { %v1782_v14 = vld [vmem:[#allocation2 + $0xc] sm:$0x1]  ;;  %v2016_v17 = vld [vmem:[#allocation2 + $0x8] sm:$0xe]  ;;  %v1022_v22 = vmul.f32 %v3824_v8, %v4980_v27  ;;  %v5021_v27 = vld [vmem:[%s5690_s3] ss:$0 sm:$0xff]  ;;  %v1458_v50 = vadd.f32 %v1457_v43, %v1404_v31 }
 0x172   : > { %v1804_v15 = vrot.slane %v1802_v10, 4  ;;  %4416 = vrcp.f32 %v1026_v11  ;;  %v1886_v16 = vsel %vm4926_vm11, %v3957_v9, %v1885_v12  ;;  %v2017_v18 = vld [vmem:[#allocation2 + $0xc] sm:$0x1]  ;;  %v1936_v19 = vld [vmem:[#allocation2 + $0x8] sm:$0xf]  ;;  %v4415_v21 = vpop.eup %4414  ;;  %v1807_v26 = vrot.slane %v1805_v13, 5  ;;  %v1632_v32 = vpop.f32.mrf.mxu1 }
 0x173   : > { %1897 = vrot.lane.b32.xlu0 %v1886_v16, %s4487_s19  ;;  %v1811_v28 = vshll.u32 %v1782_v14, 16  ;;  %v1937_v29 = vld [vmem:[#allocation2 + $0xc] sm:$0x1]  ;;  %v1011_v30 = vadd.f32 1.0, %v4415_v21  ;;  %v3960_v33 = vrot.slane %v2016_v17, 9  ;;  %v1945_v35 = vshrl.u32 %v1936_v19, 16 }
 0x174   : > { %v1948_v36 = vshll.u32 %v1936_v19, 16  ;;  %v1772_v37 = vld [vmem:[#allocation2 + $0x8] sm:$0xf]  ;;  %v1642_v38 = vadd.f32 %v1632_v32, %v1456_v23  ;;  %v1808_v40 = vor.u32 %v1807_v26, %v1804_v15  ;;  %v2034_v41 = vrot.slane %v2017_v18, 5 }
 0x175   : > { %v1954_v42 = vshll.u32 %v1937_v29, 16  ;;  %1776 = vst.msk [vmem:[#allocation4 + $0x4] sm:$0xf] %vm415_vm7, %v1772_v37  ;;  %v1015_v44 = vmul.f32 %v1011_v30, %v1011_v30  ;;  %v1813_v45 = vrot.slane %v1811_v28, 5  ;;  %v2313_v46 = vld [vmem:[#allocation2 + $0x10] sm:$0xe] }
 0x176   : > { %v1947_v47 = vrot.slane %v1945_v35, 4  ;;  %v1950_v49 = vrot.slane %v1948_v36, 5  ;;  %v1650_v53 = vmul.f32 %v5016_v24, %v1642_v38  ;;  %v1809_v54 = vrot.slane %v1808_v40, 4  ;;  %v2314_v55 = vld [vmem:[#allocation2 + $0x14] sm:$0x1] }
 0x177   : > { %v4044_v57 = vrot.slane %v2313_v46, 9  ;;  %v2233_v58 = vld [vmem:[#allocation2 + $0x10] sm:$0xf]  ;;  %v3825_v48 = vadd.f32 -1.0, %v1015_v44  ;;  %v1027_v60 = vadd.f32 1.0, %v1015_v44  ;;  %v2331_v61 = vrot.slane %v2314_v55, 5 }
 0x178   : > { %v4417_v59 = vpop.eup %4416  ;;  %v1951_v62 = vor.u32 %v1950_v49, %v1947_v47  ;;  %v5026_v0 = vadd.f32 %v5021_v27, %v1650_v53  ;;  %v1814_v1 = vsel %vm4580_vm2, %v1809_v54, %v1813_v45  ;;  %v2234_v51 = vld [vmem:[#allocation2 + $0x14] sm:$0x1]  ;;  %v2242_v3 = vshrl.u32 %v2233_v58, 16  ;;  %v1938_v56 = vld [vmem:[#allocation2 + $0x10] sm:$0xf] }
 0x179   : > { %v1034_v63 = vmul.f32 %v4417_v59, %v1022_v22  ;;  %4418 = vrcp.f32 %v1027_v60  ;;  %1845 = vrot.lane.b32.xlu1 %v1814_v1, %s4485_s28  ;;  %v2035_v4 = vsel %vm4926_vm11, %v3960_v33, %v2034_v41  ;;  %v2332_v5 = vsel %vm4926_vm11, %v4044_v57, %v2331_v61  ;;  %v1939_v14 = vld [vmem:[#allocation2 + $0x14] sm:$0x1]  ;;  %v1099_v30 = vld [vmem:[#allocation2 + $0x18] sm:$0xf]  ;;  %v2018_v33 = vld [vmem:[#allocation2 + $0x10] sm:$0xe] }
 0x17a   : > { %v1956_v6 = vrot.slane %v1954_v42, 5  ;;  %v1662_v9 = vmin.f32 %v5026_v0, 20.0  ;;  %2345 = vrot.lane.b32.xlu2 %v2332_v5, %s4487_s19  ;;  %v1952_v10 = vrot.slane %v1951_v62, 4  ;;  %v2245_v8 = vshll.u32 %v2233_v58, 16  ;;  %v1634_v11 = vpop.f32.mrf.mxu1  ;;  %v1102_v36 = vld [vmem:[#allocation2 + $0x1c] sm:$0x1] }
 0x17b   : > { %v1038_v7 = vpack.c.bf16 %v1034_v63, %v1034_v63  ;;  %2048 = vrot.lane.b32.xlu0 %v2035_v4, %s4487_s19  ;;  %v2244_v12 = vrot.slane %v2242_v3, 4  ;;  %v2251_v13 = vshll.u32 %v2234_v51, 16  ;;  %v1959_v15 = vshrl.u32 %v1938_v56, 16  ;;  %v1773_v41 = vld [vmem:[#allocation2 + $0x10] sm:$0xf] }
 0x17c   : > { %v1962_v16 = vshll.u32 %v1938_v56, 16  ;;  %v1023_v18 = vmul.f32 %v3825_v48, %v4999_v52  ;;  %v1666_v19 = vmul.f32 1.442695, %v1662_v9  ;;  %v1643_v21 = vadd.f32 %v1634_v11, %v1458_v50  ;;  %v1783_v46 = vld [vmem:[#allocation2 + $0x10] sm:$0xf] }
 0x17d   : > { %v1057_v17 = vshrl.u32 %v1038_v7, 16  ;;  %v1060_v22 = vshll.u32 %v1038_v7, 16  ;;  %v2247_v23 = vrot.slane %v2245_v8, 5  ;;  %v1961_v26 = vrot.slane %v1959_v15, 4  ;;  %1777 = vst.msk [vmem:[#allocation4 + $0x8] sm:$0xf] %vm415_vm7, %v1773_v41 }
 0x17e   : > { %v1964_v28 = vrot.slane %v1962_v16, 5  ;;  %4420 = vpow2.f32 %v1666_v19  ;;  %v1651_v31 = vmul.f32 %v5016_v24, %v1643_v21  ;;  %v1968_v32 = vshll.u32 %v1939_v14, 16  ;;  %v2019_v53 = vld [vmem:[#allocation2 + $0x14] sm:$0x1]  ;;  %v1864_v9 = vld [vmem:[#allocation2 + $0x10] sm:$0xe] }
 0x17f   : > { %v1059_v29 = vrot.slane %v1057_v17, 7  ;;  %v4419_v35 = vpop.eup %4418  ;;  %v1957_v37 = vsel %vm4580_vm2, %v1952_v10, %v1956_v6  ;;  %v2248_v38 = vor.u32 %v2247_v23, %v2244_v12  ;;  %v2253_v52 = vrot.slane %v2251_v13, 5  ;;  %v1784_v48 = vld [vmem:[#allocation2 + $0x14] sm:$0x1]  ;;  %v1105_v12 = vld [vmem:[#allocation2 + $0x20] sm:$0xf] }
 0x180   : > { %v1965_v40 = vor.u32 %v1964_v28, %v1961_v26  ;;  %v1035_v44 = vmul.f32 %v4419_v35, %v1023_v18  ;;  %v5043_v45 = vadd.f32 %v5021_v27, %v1651_v31  ;;  %v1970_v50 = vrot.slane %v1968_v32, 5  ;;  %v1865_v11 = vld [vmem:[#allocation2 + $0x14] sm:$0x1]  ;;  %v1108_v13 = vld [vmem:[#allocation2 + $0x24] sm:$0x1]  ;;  %v1460_v18 = vpop.f32.mrf.mxu0 }
 0x181   : > { %v1062_v42 = vor.u32 %v1060_v22, %v1059_v29  ;;  %v1063_v43 = vrot.slane %v1059_v29, 4  ;;  %2000 = vrot.lane.b32.xlu1 %v1957_v37, %s4485_s28  ;;  %v2249_v47 = vrot.slane %v2248_v38, 4  ;;  %v3961_v54 = vrot.slane %v2018_v33, 9 }
 0x182   : > { %v1966_v49 = vrot.slane %v1965_v40, 4  ;;  %v1039_v58 = vpack.c.bf16 %v1035_v44, %v1035_v44  ;;  %v1663_v59 = vmin.f32 %v5043_v45, 20.0  ;;  %v1816_v62 = vshrl.u32 %v1783_v46, 16 }
 0x183   : > { %v1100_v55 = vsel %vm4984_vm0, %v1062_v42, %v1099_v30  ;;  %v1103_v57 = vsel %vm4989_vm1, %v1063_v43, %v1102_v36  ;;  %v2254_v60 = vsel %vm4580_vm2, %v2249_v47, %v2253_v52  ;;  %v1819_v63 = vshll.u32 %v1783_v46, 16 }
 0x184   : > { %1101 = vst [vmem:[#allocation2 + $0x18] sm:$0xf] %v1100_v55  ;;  %v1971_v61 = vsel %vm4580_vm2, %v1966_v49, %v1970_v50  ;;  %v4421_v1 = vpop.eup %4420  ;;  %v1065_v51 = vshrl.u32 %v1039_v58, 16  ;;  %v1668_v3 = vmul.f32 1.442695, %v1663_v59  ;;  %2297 = vrot.lane.b32.xlu0 %v2254_v60, %s4485_s28  ;;  %v2038_v56 = vrot.slane %v2019_v53, 5 }
 0x185   : > { %1104 = vst [vmem:[#allocation2 + $0x1c] sm:$0x1] %v1103_v57  ;;  %2002 = vrot.lane.b32.xlu2 %v1971_v61, %s4485_s28  ;;  %v1674_v4 = vadd.f32 1.0, %v4421_v1  ;;  %v1818_v5 = vrot.slane %v1816_v62, 4  ;;  %v1821_v6 = vrot.slane %v1819_v63, 5  ;;  %v1825_v7 = vshll.u32 %v1784_v48, 16 }
 0x186   : > { %v1067_v10 = vrot.slane %v1065_v51, 7  ;;  %v1068_v8 = vshll.u32 %v1039_v58, 16  ;;  %4422 = vpow2.f32 %v1668_v3  ;;  %v2039_v19 = vsel %vm4926_vm11, %v3961_v54, %v2038_v56 }
 0x187   : > { %v1678_v14 = vmul.f32 %v1674_v4, %v1674_v4  ;;  %v1822_v15 = vor.u32 %v1821_v6, %v1818_v5  ;;  %v1407_v21 = vpop.f32.mrf.mxu3  ;;  %v3958_v22 = vrot.slane %v1864_v9, 9  ;;  %v1827_v28 = vrot.slane %v1825_v7, 5 }
 0x188   : > { %v1070_v16 = vor.u32 %v1068_v8, %v1067_v10  ;;  %v1071_v17 = vrot.slane %v1067_v10, 4  ;;  %v1889_v29 = vrot.slane %v1865_v11, 5  ;;  %v1461_v41 = vadd.f32 %v1460_v18, %v1407_v21  ;;  %v1462_v11 = vpop.f32.mrf.mxu0 }
 0x189   : > { %v1690_v23 = vadd.f32 1.0, %v1678_v14  ;;  %2050 = vrot.lane.b32.xlu1 %v2039_v19, %s4487_s19  ;;  %v1823_v26 = vrot.slane %v1822_v15, 4  ;;  %v3952_v36 = vadd.f32 -1.0, %v1678_v14 }
 0x18a   : > { %v1106_v30 = vsel %vm4984_vm0, %v1070_v16, %v1105_v12  ;;  %v1109_v31 = vsel %vm4989_vm1, %v1071_v17, %v1108_v13  ;;  %v1890_v61 = vsel %vm4926_vm11, %v3958_v22, %v1889_v29 }
 0x18b   : > { %v2315_v32 = vld [vmem:[#allocation2 + $0x18] sm:$0xe]  ;;  %1107 = vst [vmem:[#allocation2 + $0x20] sm:$0xf] %v1106_v30  ;;  %4424 = vrcp.f32 %v1690_v23  ;;  %v1828_v37 = vsel %vm4580_vm2, %v1823_v26, %v1827_v28  ;;  %v1686_v51 = vmul.f32 %v3952_v36, %v5026_v0 }
 0x18c   : > { %v1866_v33 = vld [vmem:[#allocation2 + $0x18] sm:$0xe]  ;;  %v2316_v38 = vld [vmem:[#allocation2 + $0x1c] sm:$0x1]  ;;  %v4045_v52 = vrot.slane %v2315_v32, 9  ;;  %v4423_v40 = vpop.eup %4422  ;;  %v1637_v47 = vpop.f32.mrf.mxu1 }
 0x18d   : > { %v2235_v35 = vld [vmem:[#allocation2 + $0x18] sm:$0xf]  ;;  %1110 = vst [vmem:[#allocation2 + $0x24] sm:$0x1] %v1109_v31  ;;  %1847 = vrot.lane.b32.xlu2 %v1828_v37, %s4485_s28  ;;  %v2335_v42 = vrot.slane %v2316_v38, 5  ;;  %v3959_v44 = vrot.slane %v1866_v33, 9  ;;  %v1644_v55 = vadd.f32 %v1637_v47, %v1461_v41 }
 0x18e   : > { %v1867_v43 = vld [vmem:[#allocation2 + $0x1c] sm:$0x1]  ;;  %v1675_v46 = vadd.f32 1.0, %v4423_v40  ;;  %v2256_v53 = vshrl.u32 %v2235_v35, 16  ;;  %v2259_v54 = vshll.u32 %v2235_v35, 16 }
 0x18f   : > { %v1893_v49 = vrot.slane %v1867_v43, 5  ;;  %v2236_v50 = vld [vmem:[#allocation2 + $0x1c] sm:$0x1]  ;;  %v2336_v57 = vsel %vm4926_vm11, %v4045_v52, %v2335_v42  ;;  %v2020_v59 = vld [vmem:[#allocation2 + $0x18] sm:$0xe]  ;;  %v1652_v3 = vmul.f32 %v5016_v24, %v1644_v55  ;;  %v1409_v56 = vpop.f32.mrf.mxu3 }
 0x190   : > { %v2265_v58 = vshll.u32 %v2236_v50, 16  ;;  %v2021_v48 = vld [vmem:[#allocation2 + $0x1c] sm:$0x1]  ;;  %v1679_v60 = vmul.f32 %v1675_v46, %v1675_v46  ;;  %2347 = vrot.lane.b32.xlu0 %v2336_v57, %s4487_s19  ;;  %v2258_v62 = vrot.slane %v2256_v53, 4  ;;  %v2261_v63 = vrot.slane %v2259_v54, 5 }
 0x191   : > { %v1940_v1 = vld [vmem:[#allocation2 + $0x18] sm:$0xf]  ;;  %v3962_v4 = vrot.slane %v2020_v59, 9  ;;  %v2042_v5 = vrot.slane %v2021_v48, 5  ;;  %v4425_v6 = vpop.eup %4424  ;;  %1899 = vrot.lane.b32.xlu1 %v1890_v61, %s4487_s19  ;;  %v1894_v10 = vsel %vm4926_vm11, %v3959_v44, %v1893_v49  ;;  %v5079_v13 = vadd.f32 %v5021_v27, %v1652_v3  ;;  %v1786_v30 = vld [vmem:[#allocation2 + $0x1c] sm:$0x1] }
 0x192   : > { %v3953_v7 = vadd.f32 -1.0, %v1679_v60  ;;  %v1691_v9 = vadd.f32 1.0, %v1679_v60  ;;  %v2262_v8 = vor.u32 %v2261_v63, %v2258_v62  ;;  %v1698_v12 = vmul.f32 %v4425_v6, %v1686_v51  ;;  %v1785_v15 = vld [vmem:[#allocation2 + $0x18] sm:$0xf]  ;;  %v1941_v38 = vld [vmem:[#allocation2 + $0x1c] sm:$0x1] }
 0x193   : > { %v2267_v0 = vrot.slane %v2265_v58, 5  ;;  %v1973_v14 = vshrl.u32 %v1940_v1, 16  ;;  %v1463_v16 = vadd.f32 %v1462_v11, %v1409_v56  ;;  %v1976_v18 = vshll.u32 %v1940_v1, 16  ;;  %v1747_v47 = vld [vmem:[#allocation2 + $0x28] sm:$0xf] }
 0x194   : > { %4426 = vrcp.f32 %v1691_v9  ;;  %v2263_v17 = vrot.slane %v2262_v8, 4  ;;  %v1702_v19 = vpack.c.bf16 %v1698_v12, %v1698_v12  ;;  %v1664_v21 = vmin.f32 %v5079_v13, 20.0  ;;  %v1639_v28 = vpop.f32.mrf.mxu1  ;;  %v1750_v49 = vld [vmem:[#allocation2 + $0x2c] sm:$0x1]  ;;  %v2022_v1 = vld [vmem:[#allocation2 + $0x20] sm:$0xe] }
 0x195   : > { %1901 = vrot.lane.b32.xlu2 %v1894_v10, %s4487_s19  ;;  %v2043_v22 = vsel %vm4926_vm11, %v3962_v4, %v2042_v5  ;;  %v1975_v23 = vrot.slane %v1973_v14, 4  ;;  %v1687_v26 = vmul.f32 %v3953_v7, %v5043_v45  ;;  %v1978_v29 = vrot.slane %v1976_v18, 5  ;;  %v1774_v51 = vld [vmem:[#allocation2 + $0x18] sm:$0xf]  ;;  %v1753_v6 = vld [vmem:[#allocation2 + $0x30] sm:$0xf] }
 0x196   : > { %v1830_v31 = vshrl.u32 %v1785_v15, 16  ;;  %v1833_v32 = vshll.u32 %v1785_v15, 16  ;;  %v1707_v33 = vshrl.u32 %v1702_v19, 16  ;;  %v1670_v35 = vmul.f32 1.442695, %v1664_v21 }
 0x197   : > { %v1645_v36 = vadd.f32 %v1639_v28, %v1463_v16  ;;  %v2268_v37 = vsel %vm4580_vm2, %v2263_v17, %v2267_v0  ;;  %v1710_v52 = vshll.u32 %v1702_v19, 16  ;;  %v1979_v40 = vor.u32 %v1978_v29, %v1975_v23  ;;  %v2023_v9 = vld [vmem:[#allocation2 + $0x24] sm:$0x1]  ;;  %v5102_v10 = vld [vmem:[#allocation2 + $0x20] sm:$0xe] }
 0x198   : > { %2052 = vrot.lane.b32.xlu0 %v2043_v22, %s4487_s19  ;;  %v1832_v41 = vrot.slane %v1830_v31, 4  ;;  %v1835_v42 = vrot.slane %v1833_v32, 5  ;;  %v1709_v43 = vrot.slane %v1707_v33, 7  ;;  %4428 = vpow2.f32 %v1670_v35  ;;  %v1942_v0 = vld [vmem:[#allocation2 + $0x20] sm:$0xf] }
 0x199   : > { %v1653_v45 = vmul.f32 %v5016_v24, %v1645_v36  ;;  %v1839_v44 = vshll.u32 %v1786_v30, 16  ;;  %2299 = vrot.lane.b32.xlu1 %v2268_v37, %s4485_s28  ;;  %v1982_v50 = vshll.u32 %v1941_v38, 16  ;;  %v1980_v59 = vrot.slane %v1979_v40, 4  ;;  %1778 = vst.msk [vmem:[#allocation4 + $0xc] sm:$0xf] %vm415_vm7, %v1774_v51 }
 0x19a   : > { %v4427_v46 = vpop.eup %4426  ;;  %v1836_v53 = vor.u32 %v1835_v42, %v1832_v41  ;;  %v1712_v54 = vor.u32 %v1710_v52, %v1709_v43  ;;  %v1713_v55 = vrot.slane %v1709_v43, 4  ;;  %v1756_v14 = vld [vmem:[#allocation2 + $0x34] sm:$0x1]  ;;  %v5108_v16 = vld [vmem:[#allocation2 + $0x24] sm:$0x1]  ;;  %v3963_v21 = vrot.slane %v2022_v1, 9 }
 0x19b   : > { %v1699_v57 = vmul.f32 %v4427_v46, %v1687_v26  ;;  %v5092_v58 = vadd.f32 %v5021_v27, %v1653_v45  ;;  %v1841_v60 = vrot.slane %v1839_v44, 5  ;;  %v1984_v4 = vrot.slane %v1982_v50, 5  ;;  %v5110_v17 = vld [vmem:[#allocation2 + $0x20] sm:$0xe]  ;;  %v2318_v36 = vld [vmem:[#allocation2 + $0x24] sm:$0x1] }
 0x19c   : > { %v1837_v48 = vrot.slane %v1836_v53, 4  ;;  %v1748_v24 = vsel %vm4984_vm0, %v1712_v54, %v1747_v47  ;;  %v1751_v61 = vsel %vm4989_vm1, %v1713_v55, %v1750_v49  ;;  %v2046_v22 = vrot.slane %v2023_v9, 5  ;;  %v1943_v38 = vld [vmem:[#allocation2 + $0x24] sm:$0x1]  ;;  %v2237_v42 = vld [vmem:[#allocation2 + $0x20] sm:$0xf] }
 0x19d   : > { %v1703_v62 = vpack.c.bf16 %v1699_v57, %v1699_v57  ;;  %v1665_v63 = vmin.f32 %v5092_v58, 20.0  ;;  %1749 = vst [vmem:[#allocation2 + $0x28] sm:$0xf] %v1748_v24  ;;  %v1985_v12 = vsel %vm4580_vm2, %v1980_v59, %v1984_v4  ;;  %v4094_v26 = vrot.slane %v5102_v10, 9 }
 0x19e   : > { %v4429_v3 = vpop.eup %4428  ;;  %1752 = vst [vmem:[#allocation2 + $0x2c] sm:$0x1] %v1751_v61  ;;  %v1842_v5 = vsel %vm4580_vm2, %v1837_v48, %v1841_v60  ;;  %v1987_v28 = vshrl.u32 %v1942_v0, 16  ;;  %v1990_v29 = vshll.u32 %v1942_v0, 16  ;;  %v2581_v35 = vrot.slane %v5108_v16, 5 }
 0x19f   : > { %v1715_v56 = vshrl.u32 %v1703_v62, 16  ;;  %v1672_v27 = vmul.f32 1.442695, %v1665_v63  ;;  %v1676_v7 = vadd.f32 1.0, %v4429_v3  ;;  %v1718_v11 = vshll.u32 %v1703_v62, 16 }
 0x1a0   : > { %1849 = vrot.lane.b32.xlu0 %v1842_v5, %s4485_s28  ;;  %v4046_v37 = vrot.slane %v5110_v17, 9  ;;  %v1989_v53 = vrot.slane %v1987_v28, 4  ;;  %v1992_v54 = vrot.slane %v1990_v29, 5  ;;  %v2047_v55 = vsel %vm4926_vm11, %v3963_v21, %v2046_v22 }
 0x1a1   : > { %v1717_v8 = vrot.slane %v1715_v56, 7  ;;  %4430 = vpow2.f32 %v1672_v27  ;;  %v1680_v15 = vmul.f32 %v1676_v7, %v1676_v7  ;;  %2004 = vrot.lane.b32.xlu1 %v1985_v12, %s4485_s28  ;;  %v2339_v63 = vrot.slane %v2318_v36, 5 }
 0x1a2   : > { %v1996_v51 = vshll.u32 %v1943_v38, 16  ;;  %v2270_v27 = vshrl.u32 %v2237_v42, 16  ;;  %v2273_v4 = vshll.u32 %v2237_v42, 16  ;;  %v1759_v42 = vld [vmem:[#allocation2 + $0x38] sm:$0xf] }
 0x1a3   : > { %v1720_v18 = vor.u32 %v1718_v11, %v1717_v8  ;;  %v1721_v19 = vrot.slane %v1717_v8, 4  ;;  %v1692_v23 = vadd.f32 1.0, %v1680_v15  ;;  %v3954_v45 = vadd.f32 -1.0, %v1680_v15 }
 0x1a4   : > { %v2565_v32 = vld [vmem:[#allocation2 + $0x28] sm:$0xe]  ;;  %v2340_v21 = vsel %vm4926_vm11, %v4046_v37, %v2339_v63  ;;  %v2272_v38 = vrot.slane %v2270_v27, 4  ;;  %v2275_v37 = vrot.slane %v2273_v4, 5  ;;  %v2484_v27 = vld [vmem:[#allocation2 + $0x24] sm:$0x1] }
 0x1a5   : > { %v1754_v30 = vsel %vm4984_vm0, %v1720_v18, %v1753_v6  ;;  %v1757_v31 = vsel %vm4989_vm1, %v1721_v19, %v1756_v14  ;;  %v2319_v33 = vld [vmem:[#allocation2 + $0x28] sm:$0xe]  ;;  %4432 = vrcp.f32 %v1692_v23  ;;  %v2566_v52 = vld [vmem:[#allocation2 + $0x2c] sm:$0x1]  ;;  %v4095_v40 = vrot.slane %v2565_v32, 9 }
 0x1a6   : > { %1755 = vst [vmem:[#allocation2 + $0x30] sm:$0xf] %v1754_v30  ;;  %v4047_v41 = vrot.slane %v2319_v33, 9  ;;  %v2585_v44 = vrot.slane %v2566_v52, 5  ;;  %v2320_v46 = vld [vmem:[#allocation2 + $0x2c] sm:$0x1]  ;;  %v1688_v3 = vmul.f32 %v3954_v45, %v5079_v13  ;;  %v1993_v14 = vor.u32 %v1992_v54, %v1989_v53 }
 0x1a7   : > { %v4431_v43 = vpop.eup %4430  ;;  %1758 = vst [vmem:[#allocation2 + $0x34] sm:$0x1] %v1757_v31  ;;  %v2343_v49 = vrot.slane %v2320_v46, 5  ;;  %v2239_v50 = vld [vmem:[#allocation2 + $0x28] sm:$0xf]  ;;  %v2582_v19 = vsel %vm4926_vm11, %v4094_v26, %v2581_v35  ;;  %v1998_v23 = vrot.slane %v1996_v51, 5 }
 0x1a8   : > { %v1677_v47 = vadd.f32 1.0, %v4431_v43  ;;  %v2586_v57 = vsel %vm4926_vm11, %v4095_v40, %v2585_v44  ;;  %v2715_v59 = vld [vmem:[#allocation2 + $0x28] sm:$0xe]  ;;  %v2716_v48 = vld [vmem:[#allocation2 + $0x2c] sm:$0x1]  ;;  %v2284_v60 = vshrl.u32 %v2239_v50, 16 }
 0x1a9   : > { %v2287_v24 = vshll.u32 %v2239_v50, 16  ;;  %2054 = vrot.lane.b32.xlu1 %v2047_v55, %s4487_s19  ;;  %2597 = vrot.lane.b32.xlu2 %v2586_v57, %s4487_s19  ;;  %v2344_v62 = vsel %vm4926_vm11, %v4047_v41, %v2343_v49  ;;  %v2485_v1 = vld [vmem:[#allocation2 + $0x28] sm:$0xf]  ;;  %v4098_v7 = vrot.slane %v2715_v59, 9  ;;  %v2733_v9 = vrot.slane %v2716_v48, 5 }
 0x1aa   : > { %v1681_v61 = vmul.f32 %v1677_v47, %v1677_v47  ;;  %2351 = vrot.lane.b32.xlu0 %v2344_v62, %s4487_s19  ;;  %v2506_v56 = vshrl.u32 %v2485_v1, 16  ;;  %v2509_v10 = vshll.u32 %v2485_v1, 16  ;;  %v2240_v11 = vld [vmem:[#allocation2 + $0x2c] sm:$0x1]  ;;  %v2286_v12 = vrot.slane %v2284_v60, 4 }
 0x1ab   : > { %v4433_v5 = vpop.eup %4432  ;;  %v2289_v0 = vrot.slane %v2287_v24, 5  ;;  %v2635_v15 = vld [vmem:[#allocation2 + $0x28] sm:$0xf]  ;;  %v2293_v22 = vshll.u32 %v2240_v11, 16  ;;  %v2483_v30 = vld [vmem:[#allocation2 + $0x20] sm:$0xf]  ;;  %v2734_v26 = vsel %vm4926_vm11, %v4098_v7, %v2733_v9 }
 0x1ac   : > { %v1693_v6 = vadd.f32 1.0, %v1681_v61  ;;  %v1700_v8 = vmul.f32 %v4433_v5, %v1688_v3  ;;  %v3955_v16 = vadd.f32 -1.0, %v1681_v61  ;;  %v2508_v17 = vrot.slane %v2506_v56, 4  ;;  %v2486_v33 = vld [vmem:[#allocation2 + $0x2c] sm:$0x1] }
 0x1ad   : > { %v2511_v13 = vrot.slane %v2509_v10, 5  ;;  %v2644_v28 = vshrl.u32 %v2635_v15, 16  ;;  %v2647_v29 = vshll.u32 %v2635_v15, 16  ;;  %v2290_v32 = vor.u32 %v2289_v0, %v2286_v12  ;;  %v1762_v46 = vld [vmem:[#allocation2 + $0x3c] sm:$0x1] }
 0x1ae   : > { %4434 = vrcp.f32 %v1693_v6  ;;  %v1704_v18 = vpack.c.bf16 %v1700_v8, %v1700_v8  ;;  %v1994_v36 = vrot.slane %v1993_v14, 4  ;;  %v1689_v52 = vmul.f32 %v3955_v16, %v5092_v58  ;;  %v2238_v59 = vld [vmem:[#allocation2 + $0x24] sm:$0x1]  ;;  %v2637_v62 = vld [vmem:[#allocation2 + $0x30] sm:$0xf] }
 0x1af   : > { %v2512_v35 = vor.u32 %v2511_v13, %v2508_v17  ;;  %v2492_v43 = vshrl.u32 %v2483_v30, 16  ;;  %v2495_v45 = vshll.u32 %v2483_v30, 16  ;;  %v2295_v47 = vrot.slane %v2293_v22, 5  ;;  %v2636_v3 = vld [vmem:[#allocation2 + $0x2c] sm:$0x1] }
 0x1b0   : > { %v1723_v31 = vshrl.u32 %v1704_v18, 16  ;;  %v1726_v41 = vshll.u32 %v1704_v18, 16  ;;  %v2515_v58 = vshll.u32 %v2486_v33, 16  ;;  %v2646_v49 = vrot.slane %v2644_v28, 4  ;;  %v1765_v17 = vld [vmem:[#allocation2 + $0x40] sm:$0xf] }
 0x1b1   : > { %2595 = vrot.lane.b32.xlu1 %v2582_v19, %s4487_s19  ;;  %2349 = vrot.lane.b32.xlu2 %v2340_v21, %s4487_s19  ;;  %v2649_v50 = vrot.slane %v2647_v29, 5  ;;  %v2291_v57 = vrot.slane %v2290_v32, 4  ;;  %v2513_v48 = vrot.slane %v2512_v35, 4  ;;  %v1999_v60 = vsel %vm4580_vm2, %v1994_v36, %v1998_v23  ;;  %v1768_v18 = vld [vmem:[#allocation2 + $0x44] sm:$0x1] }
 0x1b2   : > { %v1725_v40 = vrot.slane %v1723_v31, 7  ;;  %2747 = vrot.lane.b32.xlu0 %v2734_v26, %s4487_s19  ;;  %v2494_v24 = vrot.slane %v2492_v43, 4  ;;  %v2497_v61 = vrot.slane %v2495_v45, 5  ;;  %v2276_v56 = vor.u32 %v2275_v37, %v2272_v38  ;;  %v2638_v33 = vld [vmem:[#allocation2 + $0x34] sm:$0x1] }
 0x1b3   : > { %v2517_v4 = vrot.slane %v2515_v58, 5  ;;  %v2650_v5 = vor.u32 %v2649_v50, %v2646_v49  ;;  %v2279_v6 = vshll.u32 %v2238_v59, 16  ;;  %v2296_v10 = vsel %vm4580_vm2, %v2291_v57, %v2295_v47  ;;  %v2487_v36 = vld [vmem:[#allocation2 + $0x30] sm:$0xf]  ;;  %v2718_v37 = vld [vmem:[#allocation2 + $0x34] sm:$0x1] }
 0x1b4   : > { %v4435_v44 = vpop.eup %4434  ;;  %v1728_v53 = vor.u32 %v1726_v41, %v1725_v40  ;;  %v1729_v54 = vrot.slane %v1725_v40, 4  ;;  %v2498_v7 = vor.u32 %v2497_v61, %v2494_v24  ;;  %v2658_v8 = vshrl.u32 %v2637_v62, 16  ;;  %v2717_v35 = vld [vmem:[#allocation2 + $0x30] sm:$0xe]  ;;  %v4319_v24 = vld [vmem:[%s5691_s4 + $0x20] sm:$0xff] }
 0x1b5   : > { %v1701_v55 = vmul.f32 %v4435_v44, %v1689_v52  ;;  %v2661_v11 = vshll.u32 %v2637_v62, 16  ;;  %v2518_v12 = vsel %vm4580_vm2, %v2513_v48, %v2517_v4  ;;  %v2653_v0 = vshll.u32 %v2636_v3, 16 }
 0x1b6   : > { %v1760_v63 = vsel %vm4984_vm0, %v1728_v53, %v1759_v42  ;;  %v1763_v1 = vsel %vm4989_vm1, %v1729_v54, %v1762_v46  ;;  %v2501_v14 = vshll.u32 %v2484_v27, 16  ;;  %v2277_v13 = vrot.slane %v2276_v56, 4  ;;  %v4320_v42 = vld [vmem:[%s5691_s4 + $0x28] sm:$0xff] }
 0x1b7   : > { %v1705_v51 = vpack.c.bf16 %v1701_v55, %v1701_v55  ;;  %1761 = vst [vmem:[#allocation2 + $0x38] sm:$0xf] %v1760_v63  ;;  %v2651_v19 = vrot.slane %v2650_v5, 4  ;;  %v2281_v21 = vrot.slane %v2279_v6, 5  ;;  %v2499_v22 = vrot.slane %v2498_v7, 4  ;;  %2207 = vmatpush.bf16.msrb.mxu3 %v4320_v42 }
 0x1b8   : > { %1764 = vst [vmem:[#allocation2 + $0x3c] sm:$0x1] %v1763_v1  ;;  %v2660_v29 = vrot.slane %v2658_v8, 4  ;;  %v2663_v30 = vrot.slane %v2661_v11, 5  ;;  %v2655_v31 = vrot.slane %v2653_v0, 5  ;;  %v2503_v32 = vrot.slane %v2501_v14, 5 }
 0x1b9   : > { %v1731_v9 = vshrl.u32 %v1705_v51, 16  ;;  %2303 = vrot.lane.b32.xlu1 %v2296_v10, %s4485_s28  ;;  %2006 = vrot.lane.b32.xlu2 %v1999_v60, %s4485_s28  ;;  %v1734_v16 = vshll.u32 %v1705_v51, 16  ;;  %v2282_v26 = vsel %vm4580_vm2, %v2277_v13, %v2281_v21  ;;  %v2520_v58 = vshrl.u32 %v2487_v36, 16  ;;  %v2488_v7 = vld [vmem:[#allocation2 + $0x34] sm:$0x1] }
 0x1ba   : > { %2549 = vrot.lane.b32.xlu0 %v2518_v12, %s4485_s28  ;;  %v2656_v43 = vsel %vm4580_vm2, %v2651_v19, %v2655_v31  ;;  %v2504_v34 = vsel %vm4580_vm2, %v2499_v22, %v2503_v32  ;;  %v2664_v47 = vor.u32 %v2663_v30, %v2660_v29  ;;  %v2523_v49 = vshll.u32 %v2487_v36, 16  ;;  %v2567_v8 = vld [vmem:[#allocation2 + $0x30] sm:$0xe]  ;;  %v2936_v19 = vld [vmem:[#allocation2 + $0x48] sm:$0xf] }
 0x1bb   : > { %v1733_v15 = vrot.slane %v1731_v9, 7  ;;  %v2667_v57 = vshll.u32 %v2638_v33, 16  ;;  %v4099_v59 = vrot.slane %v2717_v35, 9  ;;  %v2737_v48 = vrot.slane %v2718_v37, 5  ;;  %2208 = vmatpush.bf16.msrb.mxu3 %v4319_v24  ;;  %v4318_v9 = vld [vmem:[%s5691_s4 + $0x18] sm:$0xff] }
 0x1bc   : > { %v2665_v61 = vrot.slane %v2664_v47, 4  ;;  %v2522_v62 = vrot.slane %v2520_v58, 4  ;;  %v2525_v63 = vrot.slane %v2523_v49, 5  ;;  %v4096_v13 = vrot.slane %v2567_v8, 9  ;;  %v3016_v49 = vld [vmem:[#allocation2 + $0x48] sm:$0xe] }
 0x1bd   : > { %v1736_v23 = vor.u32 %v1734_v16, %v1733_v15  ;;  %v1737_v28 = vrot.slane %v1733_v15, 4  ;;  %v2669_v27 = vrot.slane %v2667_v57, 5  ;;  %v2738_v5 = vsel %vm4926_vm11, %v4099_v59, %v2737_v48  ;;  %v2568_v15 = vld [vmem:[#allocation2 + $0x34] sm:$0x1] }
 0x1be   : > { %v2489_v40 = vld [vmem:[#allocation2 + $0x38] sm:$0xf]  ;;  %v2526_v12 = vor.u32 %v2525_v63, %v2522_v62  ;;  %v2589_v21 = vrot.slane %v2568_v15, 5  ;;  %v2981_v31 = vshrl.u32 %v2936_v19, 16  ;;  %v2984_v32 = vshll.u32 %v2936_v19, 16 }
 0x1bf   : > { %v1766_v38 = vsel %vm4984_vm0, %v1736_v23, %v1765_v17  ;;  %v1769_v52 = vsel %vm4989_vm1, %v1737_v28, %v1768_v18  ;;  %v2639_v41 = vld [vmem:[#allocation2 + $0x38] sm:$0xf]  ;;  %v2490_v39 = vld [vmem:[#allocation2 + $0x3c] sm:$0x1]  ;;  %v2534_v45 = vshrl.u32 %v2489_v40, 16  ;;  %v2537_v44 = vshll.u32 %v2489_v40, 16  ;;  %2209 = vmatpush.bf16.msrb.mxu3 %v4318_v9 }
 0x1c0   : > { %1767 = vst [vmem:[#allocation2 + $0x40] sm:$0xf] %v1766_v38  ;;  %v2543_v46 = vshll.u32 %v2490_v39, 16  ;;  %v2672_v54 = vshrl.u32 %v2639_v41, 16  ;;  %v2675_v55 = vshll.u32 %v2639_v41, 16  ;;  %v2670_v10 = vsel %vm4580_vm2, %v2665_v61, %v2669_v27  ;;  %v4328_v61 = vld [vmem:[%s5691_s4 + $0x58] sm:$0xff] }
 0x1c1   : > { %1770 = vst [vmem:[#allocation2 + $0x44] sm:$0x1] %v1769_v52  ;;  %2699 = vrot.lane.b32.xlu1 %v2656_v43, %s4485_s28  ;;  %2547 = vrot.lane.b32.xlu2 %v2504_v34, %s4485_s28  ;;  %v2536_v50 = vrot.slane %v2534_v45, 4  ;;  %v2539_v53 = vrot.slane %v2537_v44, 5  ;;  %v2640_v11 = vld [vmem:[#allocation2 + $0x3c] sm:$0x1]  ;;  %v2590_v38 = vsel %vm4926_vm11, %v4096_v13, %v2589_v21 }
 0x1c2   : > { %2301 = vrot.lane.b32.xlu0 %v2282_v26, %s4485_s28  ;;  %v2545_v51 = vrot.slane %v2543_v46, 5  ;;  %v2674_v3 = vrot.slane %v2672_v54, 4  ;;  %v2677_v56 = vrot.slane %v2675_v55, 5  ;;  %v2529_v17 = vshll.u32 %v2488_v7, 16  ;;  %v2569_v40 = vld [vmem:[#allocation2 + $0x38] sm:$0xe]  ;;  %2136 = vmatpush.bf16.msrb.mxu2 %v4328_v61 }
 0x1c3   : > { %v2540_v60 = vor.u32 %v2539_v53, %v2536_v50  ;;  %v2681_v18 = vshll.u32 %v2640_v11, 16  ;;  %v2527_v22 = vrot.slane %v2526_v12, 4  ;;  %v2570_v41 = vld [vmem:[#allocation2 + $0x3c] sm:$0x1]  ;;  %v2983_v34 = vrot.slane %v2981_v31, 4  ;;  %v4327_v27 = vld [vmem:[%s5691_s4 + $0x50] sm:$0xff] }
 0x1c4   : > { %v2678_v16 = vor.u32 %v2677_v56, %v2674_v3  ;;  %v2531_v30 = vrot.slane %v2529_v17, 5  ;;  %v2986_v39 = vrot.slane %v2984_v32, 5  ;;  %v2937_v45 = vld [vmem:[#allocation2 + $0x4c] sm:$0x1]  ;;  %v4097_v47 = vrot.slane %v2569_v40, 9  ;;  %v4325_v40 = vld [vmem:[%s5691_s4 + $0x40] sm:$0xff] }
 0x1c5   : > { %v2541_v1 = vrot.slane %v2540_v60, 4  ;;  %v2683_v33 = vrot.slane %v2681_v18, 5  ;;  %v2593_v58 = vrot.slane %v2570_v41, 5  ;;  %v3017_v54 = vld [vmem:[#allocation2 + $0x4c] sm:$0x1]  ;;  %v2990_v48 = vshll.u32 %v2937_v45, 16 }
 0x1c6   : > { %v2679_v29 = vrot.slane %v2678_v16, 4  ;;  %v2532_v52 = vsel %vm4580_vm2, %v2527_v22, %v2531_v30  ;;  %v2987_v59 = vor.u32 %v2986_v39, %v2983_v34  ;;  %v4317_v60 = vld [vmem:[%s5691_s4 + $0x10] sm:$0xff]  ;;  %v2932_v24 = vld [vmem:[#allocation2 + $0x38] sm:$0xf]  ;;  %v4185_v62 = vrot.slane %v3016_v49, 9  ;;  %v4316_v56 = vld [vmem:[%s5691_s4 + $0x8] sm:$0xff]  ;;  %2137 = vmatpush.bf16.msrb.mxu2 %v4327_v27 }
 0x1c7   : > { %v2641_v4 = vld [vmem:[#allocation2 + $0x40] sm:$0xf]  ;;  %v2546_v6 = vsel %vm4580_vm2, %v2541_v1, %v2545_v51  ;;  %v2594_v1 = vsel %vm4926_vm11, %v4097_v47, %v2593_v58  ;;  %2210 = vmatpush.bf16.msrb.mxu3 %v4317_v60  ;;  %v2956_v7 = vshll.u32 %v2932_v24, 16  ;;  %v2992_v11 = vrot.slane %v2990_v48, 5  ;;  %v2930_v13 = vld [vmem:[#allocation2 + $0x30] sm:$0xf] }
 0x1c8   : > { %v2686_v0 = vshrl.u32 %v2641_v4, 16  ;;  %v2689_v14 = vshll.u32 %v2641_v4, 16  ;;  %v2642_v36 = vld [vmem:[#allocation2 + $0x44] sm:$0x1]  ;;  %v2684_v35 = vsel %vm4580_vm2, %v2679_v29, %v2683_v33  ;;  %v2721_v37 = vld [vmem:[#allocation2 + $0x40] sm:$0xe] }
 0x1c9   : > { %2749 = vrot.lane.b32.xlu1 %v2738_v5, %s4487_s19  ;;  %2701 = vrot.lane.b32.xlu2 %v2670_v10, %s4485_s28  ;;  %v2695_v42 = vshll.u32 %v2642_v36, 16  ;;  %v2722_v43 = vld [vmem:[#allocation2 + $0x44] sm:$0x1]  ;;  %v4101_v50 = vrot.slane %v2721_v37, 9  ;;  %v2934_v55 = vld [vmem:[#allocation2 + $0x40] sm:$0xf] }
 0x1ca   : > { %2553 = vrot.lane.b32.xlu0 %v2546_v6, %s4485_s28  ;;  %v2688_v23 = vrot.slane %v2686_v0, 4  ;;  %v2691_v28 = vrot.slane %v2689_v14, 5  ;;  %v2745_v53 = vrot.slane %v2722_v43, 5  ;;  %v2967_v51 = vshrl.u32 %v2934_v55, 16  ;;  %v3014_v9 = vld [vmem:[#allocation2 + $0x40] sm:$0xe] }
 0x1cb   : > { %v2697_v57 = vrot.slane %v2695_v42, 5  ;;  %v2970_v3 = vshll.u32 %v2934_v55, 16  ;;  %v3040_v5 = vrot.slane %v3017_v54, 5  ;;  %v2953_v6 = vshrl.u32 %v2932_v24, 16  ;;  %v3015_v10 = vld [vmem:[#allocation2 + $0x44] sm:$0x1]  ;;  %2211 = vmatpush.bf16.msrb.mxu3 %v4316_v56 }
 0x1cc   : > { %v2692_v26 = vor.u32 %v2691_v28, %v2688_v23  ;;  %v2746_v4 = vsel %vm4926_vm11, %v4101_v50, %v2745_v53  ;;  %v2988_v8 = vrot.slane %v2987_v59, 4  ;;  %v2969_v12 = vrot.slane %v2967_v51, 4  ;;  %v4315_v22 = vld [vmem:[%s5691_s4] sm:$0xff]  ;;  %v2933_v29 = vld [vmem:[#allocation2 + $0x3c] sm:$0x1]  ;;  %v4336_v39 = vld [vmem:[%s5691_s4 + $0x88] sm:$0xff] }
 0x1cd   : > { %v2972_v0 = vrot.slane %v2970_v3, 5  ;;  %v4184_v14 = vrot.slane %v3014_v9, 9  ;;  %v3036_v15 = vrot.slane %v3015_v10, 5  ;;  %v2955_v16 = vrot.slane %v2953_v6, 4  ;;  %v2935_v23 = vld [vmem:[#allocation2 + $0x44] sm:$0x1]  ;;  %2432 = vmatpush.bf16.msra.mxu0 %v4336_v39 }
 0x1ce   : > { %v2693_v46 = vrot.slane %v2692_v26, 4  ;;  %v2958_v17 = vrot.slane %v2956_v7, 5  ;;  %v3041_v19 = vsel %vm4926_vm11, %v4185_v62, %v3040_v5  ;;  %v2993_v21 = vsel %vm4580_vm2, %v2988_v8, %v2992_v11  ;;  %v2719_v30 = vld [vmem:[#allocation2 + $0x38] sm:$0xe]  ;;  %v2931_v50 = vld [vmem:[#allocation2 + $0x34] sm:$0x1] }
 0x1cf   : > { %v2973_v28 = vor.u32 %v2972_v0, %v2969_v12  ;;  %2212 = vmatpush.bf16.msrb.mxu3 %v4315_v22  ;;  %v2939_v31 = vshrl.u32 %v2930_v13, 16  ;;  %v2942_v32 = vshll.u32 %v2930_v13, 16  ;;  %v3037_v33 = vsel %vm4926_vm11, %v4184_v14, %v3036_v15  ;;  %v4324_v53 = vld [vmem:[%s5691_s4 + $0x38] sm:$0xff]  ;;  %v3010_v48 = vld [vmem:[#allocation2 + $0x30] sm:$0xe]  ;;  %v4335_v3 = vld [vmem:[%s5691_s4 + $0x80] sm:$0xff] }
 0x1d0   : > { %v2698_v63 = vsel %vm4580_vm2, %v2693_v46, %v2697_v57  ;;  %v2959_v36 = vor.u32 %v2958_v17, %v2955_v16  ;;  %v2976_v26 = vshll.u32 %v2935_v23, 16  ;;  %v4100_v37 = vrot.slane %v2719_v30, 9  ;;  %v3011_v60 = vld [vmem:[#allocation2 + $0x34] sm:$0x1]  ;;  %v3012_v7 = vld [vmem:[#allocation2 + $0x38] sm:$0xe] }
 0x1d1   : > { %2599 = vrot.lane.b32.xlu1 %v2590_v38, %s4487_s19  ;;  %2551 = vrot.lane.b32.xlu2 %v2532_v52, %s4485_s28  ;;  %v2720_v38 = vld [vmem:[#allocation2 + $0x3c] sm:$0x1]  ;;  %v4326_v52 = vld [vmem:[%s5691_s4 + $0x48] sm:$0xff]  ;;  %v2974_v41 = vrot.slane %v2973_v28, 4  ;;  %v2941_v43 = vrot.slane %v2939_v31, 4  ;;  %v2944_v34 = vrot.slane %v2942_v32, 5 }
 0x1d2   : > { %2703 = vrot.lane.b32.xlu0 %v2684_v35, %s4485_s28  ;;  %v2962_v35 = vshll.u32 %v2933_v29, 16  ;;  %2138 = vmatpush.bf16.msrb.mxu2 %v4326_v52  ;;  %v2741_v42 = vrot.slane %v2720_v38, 5  ;;  %v2960_v46 = vrot.slane %v2959_v36, 4  ;;  %v2978_v58 = vrot.slane %v2976_v26, 5  ;;  %v4323_v62 = vld [vmem:[%s5691_s4 + $0x30] sm:$0xff]  ;;  %v4332_v15 = vld [vmem:[%s5691_s4 + $0x68] sm:$0xff] }
 0x1d3   : > { %v2945_v57 = vor.u32 %v2944_v34, %v2941_v43  ;;  %v2948_v24 = vshll.u32 %v2931_v50, 16  ;;  %2433 = vmatpush.bf16.msra.mxu0 %v4335_v3  ;;  %v3013_v9 = vld [vmem:[#allocation2 + $0x3c] sm:$0x1]  ;;  %v1929_v10 = vld [vmem:[#allocation2 + $0x10] sm:$0xf]  ;;  %v4183_v11 = vrot.slane %v3012_v7, 9 }
 0x1d4   : > { %v5192_v44 = vpop.permute.xlu2 %2345  ;;  %v2964_v49 = vrot.slane %v2962_v35, 5  ;;  %v2979_v54 = vsel %vm4580_vm2, %v2974_v41, %v2978_v58  ;;  %v2742_v55 = vsel %vm4926_vm11, %v4100_v37, %v2741_v42  ;;  %v4333_v12 = vld [vmem:[%s5691_s4 + $0x70] sm:$0xff]  ;;  %v3032_v20 = vrot.slane %v3013_v9, 5  ;;  %v2475_v22 = vld [vmem:[#allocation2 + $0x20] sm:$0xf]  ;;  %v4352_v52 = vld [vmem:[%s5691_s4 + $0x58] sm:$0xff] }
 0x1d5   : > { %v2946_v51 = vrot.slane %v2945_v57, 4  ;;  %v2950_v56 = vrot.slane %v2948_v24, 5  ;;  %v2226_v28 = vld [vmem:[#allocation2 + $0x18] sm:$0xf]  ;;  %2833 = vmatpush.bf16.msra.mxu1 %v4352_v52  ;;  %v4351_v26 = vld [vmem:[%s5691_s4 + $0x50] sm:$0xff]  ;;  %v4350_v43 = vld [vmem:[%s5691_s4 + $0x48] sm:$0xff] }
 0x1d6   : > { %2139 = vmatpush.bf16.msrb.mxu2 %v4325_v40  ;;  %v2965_v59 = vsel %vm4580_vm2, %v2960_v46, %v2964_v49  ;;  %v3033_v16 = vsel %vm4926_vm11, %v4183_v11, %v3032_v20  ;;  %v1930_v38 = vld [vmem:[#allocation2 + $0x18] sm:$0xf]  ;;  %v2476_v41 = vld [vmem:[#allocation2 + $0x28] sm:$0xf]  ;;  %v4339_v7 = vld [vmem:[%s5691_s4] sm:$0xff] }
 0x1d7   : > { %v2951_v6 = vsel %vm4580_vm2, %v2946_v51, %v2950_v56  ;;  %v4344_v34 = vld [vmem:[%s5691_s4 + $0x28] sm:$0xff]  ;;  %v4348_v57 = vld [vmem:[%s5691_s4 + $0x38] sm:$0xff]  ;;  %v4341_v51 = vld [vmem:[%s5691_s4 + $0x10] sm:$0xff]  ;;  %vm2469_vm2 = vcmask 261120  }
 0x1d8   : > { %v2228_v24 = vld [vmem:[#allocation2 + $0x28] sm:$0xf]  ;;  %v2628_v20 = vld [vmem:[#allocation2 + $0x30] sm:$0xf] }
 0x1d9   : > { %2705 = vrot.lane.b32.xlu1 %v2698_v63, %s4485_s28  ;;  %2601 = vrot.lane.b32.xlu2 %v2594_v1, %s4487_s19  ;;  %v4182_v63 = vrot.slane %v3010_v48, 9  ;;  %v3028_v1 = vrot.slane %v3011_v60, 5  ;;  %v2627_v3 = vld [vmem:[#allocation2 + $0x28] sm:$0xf] }
 0x1da   : > { %2753 = vrot.lane.b32.xlu0 %v2746_v4, %s4487_s19  ;;  %2140 = vmatpush.bf16.msrb.mxu2 %v4324_v53  ;;  %v4334_v4 = vld [vmem:[%s5691_s4 + $0x78] sm:$0xff]  ;;  %v2227_v53 = vld [vmem:[#allocation2 + $0x20] sm:$0xf]  ;;  %v4360_v9 = vld [vmem:[%s5691_s4 + $0x88] sm:$0xff] }
 0x1db   : > { %v3029_v5 = vsel %vm4926_vm11, %v4182_v63, %v3028_v1  ;;  %2434 = vmatpush.bf16.msra.mxu0 %v4334_v4  ;;  %2834 = vmatpush.bf16.msra.mxu1 %v4351_v26  ;;  %v4347_v1 = vld [vmem:[%s5691_s4 + $0x30] sm:$0xff] }
 0x1dc   : > { %4373 = vmatpush.bf16.msra.mxu3 %v4360_v9 }
 0x1de   : > { %2141 = vmatpush.bf16.msrb.mxu2 %v4323_v62 }
 0x1df   : > { %v5215_v18 = vpop.permute.xlu2 %2002  ;;  %2435 = vmatpush.bf16.msra.mxu0 %v4333_v12  ;;  %2835 = vmatpush.bf16.msra.mxu1 %v4350_v43 }
 0x1e1   : > { %3048 = vrot.lane.b32.xlu1 %v3041_v19, %s4487_s19  ;;  %3000 = vrot.lane.b32.xlu2 %v2993_v21, %s4485_s28  ;;  %v2225_v21 = vld [vmem:[#allocation2 + $0x10] sm:$0xf] }
 0x1e2   : > { %3046 = vrot.lane.b32.xlu0 %v3037_v33, %s4487_s19  ;;  %4367 = vmatpush.bf16.msra.mxu2 %v4344_v34 }
 0x1e3   : > { %2436 = vmatpush.bf16.msra.mxu0 %v4332_v15 }
 0x1e5   : > { %v1898_v45 = vpop.permute.xlu0 %1897 }
 0x1e7   : > { %v1848_v47 = vpop.permute.xlu2 %1847 }
 0x1e8   : > { %1858 = vst.msk [vmem:[#allocation4 + $0x8] sm:$0xf] %vm1855_vm12, %v1848_v47 }
 0x1e9   : > { %2998 = vrot.lane.b32.xlu1 %v2979_v54, %s4485_s28  ;;  %2751 = vrot.lane.b32.xlu2 %v2742_v55, %s4487_s19  ;;  %v4349_v54 = vld [vmem:[%s5691_s4 + $0x40] sm:$0xff] }
 0x1ea   : > { %2996 = vrot.lane.b32.xlu0 %v2965_v59, %s4485_s28  ;;  %v4343_v55 = vld [vmem:[%s5691_s4 + $0x20] sm:$0xff]  ;;  %2836 = vmatpush.bf16.msra.mxu1 %v4349_v54  ;;  %v4342_v59 = vld [vmem:[%s5691_s4 + $0x18] sm:$0xff] }
 0x1eb   : > { %v1846_v61 = vpop.permute.xlu1 %1845  ;;  %4368 = vmatpush.bf16.msra.mxu2 %v4343_v55 }
 0x1ec   : > { %1857 = vst.msk [vmem:[#allocation4 + $0x4] sm:$0xf] %vm1855_vm12, %v1846_v61 }
 0x1ed   : > { %1909 = vst.msk [vmem:[#allocation4 + $0x4] sm:$0xf] %vm1907_vm13, %v1898_v45  ;;  %v2049_v27 = vpop.permute.xlu0 %2048  ;;  %v1931_v45 = vld [vmem:[#allocation2 + $0x20] sm:$0xf] }
 0x1ee   : > { %2837 = vmatpush.bf16.msra.mxu1 %v4348_v57 }
 0x1ef   : > { %v1902_v13 = vpop.permute.xlu2 %1901  ;;  %4369 = vmatpush.bf16.msra.mxu2 %v4342_v59 }
 0x1f1   : > { %3042 = vrot.lane.b32.xlu1 %v3029_v5, %s4487_s19  ;;  %2994 = vrot.lane.b32.xlu2 %v2951_v6, %s4485_s28  ;;  %v4340_v6 = vld [vmem:[%s5691_s4 + $0x8] sm:$0xff] }
 0x1f2   : > { %2838 = vmatpush.bf16.msra.mxu1 %v4347_v1 }
 0x1f3   : > { %v2001_v8 = vpop.permute.xlu1 %2000  ;;  %4370 = vmatpush.bf16.msra.mxu2 %v4341_v51 }
 0x1f4   : > { %v4313_v0 = vld [vmem:[#allocation4] sm:$0xf0]  ;;  %2012 = vst.msk [vmem:[#allocation4] sm:$0xf] %vm1855_vm12, %v2001_v8 }
 0x1f5   : > { %1933 = vst.msk [vmem:[#allocation4 + $0x4] sm:$0xf] %vm415_vm7, %v1929_v10  ;;  %v4013_v14 = vor.u32 %v4313_v0, %v5002_v2  ;;  %v4359_v10 = vld [vmem:[%s5691_s4 + $0x80] sm:$0xff]  ;;  %v4358_v0 = vld [vmem:[%s5691_s4 + $0x78] sm:$0xff] }
 0x1f6   : > { %2013 = vst.msk [vmem:[#allocation4 + $0x4] sm:$0xf] %vm1855_vm12, %v5215_v18  ;;  %v2298_v17 = vpop.permute.xlu0 %2297  ;;  %v4331_v18 = vld [vmem:[%s5691_s4 + $0x60] sm:$0xff]  ;;  %3128 = vmatpush.bf16.msrb.mxu1 %v4360_v9  ;;  %4374 = vmatpush.bf16.msra.mxu3 %v4359_v10 }
 0x1f7   : > { %2060 = vst.msk [vmem:[#allocation4] sm:$0xf] %vm1907_vm13, %v2049_v27  ;;  %4042 = vmatmul.msk.bf16.vlgmr.msrb.gmra.mxu3 %vm2127_vm3, %v4013_v14  ;;  %2437 = vmatpush.bf16.msra.mxu0 %v4331_v18 }
 0x1f8   : > { %4371 = vmatpush.bf16.msra.mxu2 %v4340_v6 }
 0x1f9   : > { %3044 = vrot.lane.b32.xlu2 %v3033_v16, %s4487_s19  ;;  %v2478_v16 = vld [vmem:[#allocation2 + $0x38] sm:$0xf] }
 0x1fa   : > { %3129 = vmatpush.bf16.msrb.mxu1 %v4359_v10  ;;  %4375 = vmatpush.bf16.msra.mxu3 %v4358_v0 }
 0x1fb   : > { %v2051_v2 = vpop.permute.xlu1 %2050  ;;  %2904 = vmatpush.bf16.msrb.mxu0 %v4344_v34 }
 0x1fc   : > { %2061 = vst.msk [vmem:[#allocation4 + $0x4] sm:$0xf] %vm1907_vm13, %v2051_v2  ;;  %4372 = vmatpush.bf16.msra.mxu2 %v4339_v7 }
 0x1fe   : > { %v3978_v19 = vld [vmem:[#allocation4] sm:$0xf]  ;;  %3130 = vmatpush.bf16.msrb.mxu1 %v4358_v0 }
 0x1ff   : > { %2229 = vst.msk [vmem:[#allocation4] sm:$0xf] %vm415_vm7, %v2225_v21  ;;  %2905 = vmatpush.bf16.msrb.mxu0 %v4343_v55  ;;  %v2477_v21 = vld [vmem:[#allocation2 + $0x30] sm:$0xf] }
 0x200   : > { %2309 = vst.msk [vmem:[#allocation4] sm:$0xf] %vm1855_vm12, %v2298_v17  ;;  %v2922_v17 = vld [vmem:[#allocation2 + $0x30] sm:$0xf] }
 0x201   : > { %2357 = vst.msk [vmem:[#allocation4] sm:$0xf] %vm1907_vm13, %v5192_v44 }
 0x202   : > { %v2348_v25 = vpop.permute.xlu0 %2347  ;;  %2479 = vst.msk [vmem:[#allocation4] sm:$0xf] %vm415_vm7, %v2475_v22 }
 0x203   : > { %v4321_v23 = vld [vmem:[#allocation4] sm:$0xf0]  ;;  %v1900_v29 = vpop.permute.xlu1 %1899  ;;  %v5293_v30 = vpop.permute.xlu2 %2597  ;;  %2906 = vmatpush.bf16.msrb.mxu0 %v4342_v59  ;;  %v4396_v59 = vld [vmem:[%s5692_s5] ss:$0 sm:$0xff] }
 0x204   : > { %2230 = vst.msk [vmem:[#allocation4 + $0x4] sm:$0xf] %vm415_vm7, %v2226_v28  ;;  %v3979_v31 = vor.u32 %v4321_v23, %v3978_v19  ;;  %v4357_v19 = vld [vmem:[%s5691_s4 + $0x70] sm:$0xff]  ;;  %v4356_v23 = vld [vmem:[%s5691_s4 + $0x68] sm:$0xff] }
 0x205   : > { %1910 = vst.msk [vmem:[#allocation4 + $0x8] sm:$0xf] %vm1907_vm13, %v1900_v29  ;;  %4376 = vmatpush.bf16.msra.mxu3 %v4357_v19  ;;  %3131 = vmatpush.bf16.msrb.mxu1 %v4357_v19  ;;  %v3202_v19 = vld [vmem:[%s5694_s7 + $0x18] sm:$0xff] }
 0x206   : > { %4008 = vmatmul.msk.bf16.vlgmr.msrb.gmra.mxu2 %vm2127_vm3, %v3979_v31 }
 0x207   : > { %2907 = vmatpush.bf16.msrb.mxu0 %v4341_v51 }
 0x209   : > { %4377 = vmatpush.bf16.msra.mxu3 %v4356_v23  ;;  %3132 = vmatpush.bf16.msrb.mxu1 %v4356_v23 }
 0x20a   : > { %v2053_v32 = vpop.permute.xlu0 %2052 }
 0x20b   : > { %v2300_v33 = vpop.permute.xlu1 %2299  ;;  %v5298_v36 = vpop.permute.xlu2 %2349  ;;  %2908 = vmatpush.bf16.msrb.mxu0 %v4340_v6 }
 0x20c   : > { %v4016_v44 = vld [vmem:[#allocation4 + $0x8] sm:$0xf]  ;;  %2310 = vst.msk [vmem:[#allocation4 + $0x4] sm:$0xf] %vm1855_vm12, %v2300_v33  ;;  %v4355_v33 = vld [vmem:[%s5691_s4 + $0x60] sm:$0xff] }
 0x20d   : > { %1934 = vst.msk [vmem:[#allocation4 + $0x8] sm:$0xf] %vm415_vm7, %v1930_v38  ;;  %4378 = vmatpush.bf16.msra.mxu3 %v4355_v33  ;;  %3133 = vmatpush.bf16.msrb.mxu1 %v4355_v33  ;;  %v2629_v38 = vld [vmem:[#allocation2 + $0x38] sm:$0xf] }
 0x20e   : > { %2358 = vst.msk [vmem:[#allocation4 + $0x4] sm:$0xf] %vm1907_vm13, %v2348_v25 }
 0x20f   : > { %2909 = vmatpush.bf16.msrb.mxu0 %v4339_v7 }
 0x212   : > { %v1850_v35 = vpop.permute.xlu0 %1849 }
 0x213   : > { %1859 = vst.msk [vmem:[#allocation4 + $0xc] sm:$0xf] %vm1855_vm12, %v1850_v35  ;;  %v2005_v37 = vpop.permute.xlu1 %2004  ;;  %v2007_v40 = vpop.permute.xlu2 %2006 }
 0x214   : > { %1911 = vst.msk [vmem:[#allocation4 + $0xc] sm:$0xf] %vm1907_vm13, %v1902_v13 }
 0x215   : > { %2014 = vst.msk [vmem:[#allocation4 + $0x8] sm:$0xf] %vm1855_vm12, %v2005_v37  ;;  %v4329_v42 = vld [vmem:[#allocation4] sm:$0xff] }
 0x216   : > { %2062 = vst.msk [vmem:[#allocation4 + $0x8] sm:$0xf] %vm1907_vm13, %v2053_v32  ;;  %4092 = vmatmul.msk.bf16.vlgmr.msra.gmra.mxu0 %vm2127_vm3, %v4329_v42  ;;  %v2923_v32 = vld [vmem:[#allocation2 + $0x38] sm:$0xf]  ;;  %v2924_v42 = vld [vmem:[#allocation2 + $0x40] sm:$0xf] }
 0x217   : > { %2480 = vst.msk [vmem:[#allocation4 + $0x4] sm:$0xf] %vm415_vm7, %v2476_v41  ;;  %3218 = vmatpush.msra.mxu0 %v3202_v19  ;;  %v3249_v19 = vld [vmem:[%s5695_s8] sm:$0x3] }
 0x21b   : > { %v4314_v39 = vld [vmem:[#allocation4 + $0x8] sm:$0xf0]  ;;  %v2055_v46 = vpop.permute.xlu1 %2054  ;;  %v2548_v47 = vpop.permute.xlu2 %2547 }
 0x21c   : > { %1935 = vst.msk [vmem:[#allocation4 + $0xc] sm:$0xf] %vm415_vm7, %v1931_v45  ;;  %v4017_v58 = vor.u32 %v4314_v39, %v4016_v44  ;;  %v2352_v50 = vpop.permute.xlu0 %2351  ;;  %v2925_v39 = vld [vmem:[#allocation2 + $0x48] sm:$0xf] }
 0x21d   : > { %v3982_v49 = vld [vmem:[#allocation4 + $0x8] sm:$0xf]  ;;  %2015 = vst.msk [vmem:[#allocation4 + $0xc] sm:$0xf] %vm1855_vm12, %v2007_v40 }
 0x21e   : > { %2063 = vst.msk [vmem:[#allocation4 + $0xc] sm:$0xf] %vm1907_vm13, %v2055_v46  ;;  %4043 = vmatmul.msk.bf16.gmra.mxu3 %vm2127_vm3, %v4017_v58 }
 0x21f   : > { %2559 = vst.msk [vmem:[#allocation4] sm:$0xf] %vm1855_vm12, %v2548_v47 }
 0x220   : > { %2231 = vst.msk [vmem:[#allocation4 + $0x8] sm:$0xf] %vm415_vm7, %v2227_v53 }
 0x223   : > { %v2596_v48 = vpop.permute.xlu1 %2595  ;;  %v2702_v60 = vpop.permute.xlu2 %2701 }
 0x224   : > { %2607 = vst.msk [vmem:[#allocation4] sm:$0xf] %vm1907_vm13, %v2596_v48  ;;  %v2748_v62 = vpop.permute.xlu0 %2747 }
 0x225   : > { %v4322_v61 = vld [vmem:[#allocation4 + $0x8] sm:$0xf0] }
 0x226   : > { %2232 = vst.msk [vmem:[#allocation4 + $0xc] sm:$0xf] %vm415_vm7, %v2228_v24  ;;  %v3983_v63 = vor.u32 %v4322_v61, %v3982_v49  ;;  %v4397_v24 = vld [vmem:[%s5693_s6] ss:$0 sm:$0xff] }
 0x228   : > { %4009 = vmatmul.msk.bf16.gmra.mxu2 %vm2127_vm3, %v3983_v63 }
 0x22b   : > { %v5348_v56 = vld [vmem:[#allocation4] sm:$0xf]  ;;  %v2304_v27 = vpop.permute.xlu1 %2303  ;;  %v2552_v4 = vpop.permute.xlu2 %2551 }
 0x22c   : > { %2631 = vst.msk [vmem:[#allocation4] sm:$0xf] %vm415_vm7, %v2627_v3  ;;  %v2550_v5 = vpop.permute.xlu0 %2549 }
 0x22d   : > { %2312 = vst.msk [vmem:[#allocation4 + $0xc] sm:$0xf] %vm1855_vm12, %v2304_v27 }
 0x22e   : > { %2360 = vst.msk [vmem:[#allocation4 + $0xc] sm:$0xf] %vm1907_vm13, %v2352_v50 }
 0x22f   : > { %2560 = vst.msk [vmem:[#allocation4 + $0x4] sm:$0xf] %vm1855_vm12, %v2550_v5 }
 0x230   : > { %2608 = vst.msk [vmem:[#allocation4 + $0x4] sm:$0xf] %vm1907_vm13, %v5293_v30 }
 0x233   : > { %v2700_v8 = vpop.permute.xlu1 %2699  ;;  %v2602_v11 = vpop.permute.xlu2 %2601 }
 0x234   : > { %2711 = vst.msk [vmem:[#allocation4] sm:$0xf] %vm1855_vm12, %v2700_v8  ;;  %v2302_v12 = vpop.permute.xlu0 %2301 }
 0x235   : > { %2759 = vst.msk [vmem:[#allocation4] sm:$0xf] %vm1907_vm13, %v2748_v62  ;;  %v4330_v15 = vld [vmem:[#allocation4 + $0x8] sm:$0xf0] }
 0x236   : > { %2311 = vst.msk [vmem:[#allocation4 + $0x8] sm:$0xf] %vm1855_vm12, %v2302_v12 }
 0x237   : > { %2359 = vst.msk [vmem:[#allocation4 + $0x8] sm:$0xf] %vm1907_vm13, %v5298_v36  ;;  %v4337_v14 = vld [vmem:[#allocation4] sm:$0xf0]  ;;  %v2630_v36 = vld [vmem:[#allocation2 + $0x40] sm:$0xf] }
 0x238   : > { %2632 = vst.msk [vmem:[#allocation4 + $0x4] sm:$0xf] %vm415_vm7, %v2628_v20  ;;  %v4151_v41 = vor.u32 %v4337_v14, %v5348_v56 }
 0x239   : > { %2712 = vst.msk [vmem:[#allocation4 + $0x4] sm:$0xf] %vm1855_vm12, %v2702_v60 }
 0x23a   : > { %2482 = vst.msk [vmem:[#allocation4 + $0xc] sm:$0xf] %vm415_vm7, %v2478_v16 }
 0x23b   : > { %v2750_v13 = vpop.permute.xlu1 %2749  ;;  %v3001_v2 = vpop.permute.xlu2 %3000  ;;  %2926 = vst.msk [vmem:[#allocation4] sm:$0xf] %vm415_vm7, %v2922_v17 }
 0x23c   : > { %2760 = vst.msk [vmem:[#allocation4 + $0x4] sm:$0xf] %vm1907_vm13, %v2750_v13  ;;  %v2554_v18 = vpop.permute.xlu0 %2553 }
 0x23d   : > { %2562 = vst.msk [vmem:[#allocation4 + $0xc] sm:$0xf] %vm1855_vm12, %v2554_v18 }
 0x23e   : > { %v4066_v25 = vld [vmem:[#allocation4 + $0x8] sm:$0xf]  ;;  %2610 = vst.msk [vmem:[#allocation4 + $0xc] sm:$0xf] %vm1907_vm13, %v2602_v11 }
 0x23f   : > { %2481 = vst.msk [vmem:[#allocation4 + $0x8] sm:$0xf] %vm415_vm7, %v2477_v21  ;;  %v4067_v22 = vor.u32 %v4330_v15, %v4066_v25  ;;  %v3201_v21 = vld [vmem:[%s5694_s7 + $0x10] sm:$0xff]  ;;  %v3200_v25 = vld [vmem:[%s5694_s7 + $0x8] sm:$0xff] }
 0x240   : > { %2561 = vst.msk [vmem:[#allocation4 + $0x8] sm:$0xf] %vm1855_vm12, %v2552_v4  ;;  %3219 = vmatpush.msra.mxu0 %v3201_v21  ;;  %v4363_v21 = vld [vmem:[%s5696_s9] sm:$0xff] }
 0x241   : > { %4093 = vmatmul.msk.bf16.gmra.mxu0 %vm2127_vm3, %v4067_v22  ;;  %v3199_v22 = vld [vmem:[%s5694_s7] sm:$0xff]  ;;  %3341 = vmatpush.bf16.msrb.mxu2 %v4363_v21 }
 0x242   : > { %3220 = vmatpush.msra.mxu0 %v3200_v25  ;;  %v4366_v25 = vld [vmem:[%s5696_s9] sm:$0xff] }
 0x243   : > { %v2600_v28 = vpop.permute.xlu1 %2599  ;;  %v4345_v29 = vld [vmem:[#allocation4] sm:$0xff]  ;;  %v2752_v31 = vpop.permute.xlu2 %2751  ;;  %3513 = vmatpush.bf16.msrb.mxu3 %v4366_v25 }
 0x244   : > { %2609 = vst.msk [vmem:[#allocation4 + $0x8] sm:$0xf] %vm1907_vm13, %v2600_v28  ;;  %v2704_v30 = vpop.permute.xlu0 %2703  ;;  %4146 = vmatmul.msk.bf16.vlgmr.msra.gmra.mxu1 %vm2127_vm3, %v4345_v29  ;;  %3221 = vmatpush.msra.mxu0 %v3199_v22  ;;  %v4242_v22 = vld [vmem:[%s4567_s26 + $0xd8] sm:$0xf]  ;;  %v4401_v25 = vld [vmem:[%s5698_s11] ss:$0 sm:$0xff] }
 0x245   : > { %v4338_v44 = vld [vmem:[#allocation4 + $0x8] sm:$0xf0]  ;;  %2927 = vst.msk [vmem:[#allocation4 + $0x4] sm:$0xf] %vm415_vm7, %v2923_v32  ;;  %4234 = vmatpush.msk.msra.mxu1 %vm3254_vm4, %v3249_v19 }
 0x246   : > { %2634 = vst.msk [vmem:[#allocation4 + $0xc] sm:$0xf] %vm415_vm7, %v2630_v36 }
 0x24b   : > { %v4154_v52 = vld [vmem:[#allocation4 + $0x8] sm:$0xf]  ;;  %v2706_v26 = vpop.permute.xlu1 %2705  ;;  %v2995_v40 = vpop.permute.xlu2 %2994 }
 0x24c   : > { %2633 = vst.msk [vmem:[#allocation4 + $0x8] sm:$0xf] %vm415_vm7, %v2629_v38  ;;  %v4155_v35 = vor.u32 %v4338_v44, %v4154_v52  ;;  %v2754_v37 = vpop.permute.xlu0 %2753  ;;  %v4399_v44 = vld [vmem:[%s5693_s6] ss:$0 sm:$0xff] }
 0x24d   : > { %2713 = vst.msk [vmem:[#allocation4 + $0x8] sm:$0xf] %vm1855_vm12, %v2704_v30 }
 0x24e   : > { %2761 = vst.msk [vmem:[#allocation4 + $0x8] sm:$0xf] %vm1907_vm13, %v2752_v31  ;;  %4181 = vmatmul.msk.bf16.vlgmr.msra.gmra.mxu2 %vm2127_vm3, %v4155_v35  ;;  %v4398_v31 = vld [vmem:[%s5692_s5] ss:$0 sm:$0xff] }
 0x24f   : > { %2714 = vst.msk [vmem:[#allocation4 + $0xc] sm:$0xf] %vm1855_vm12, %v2706_v26 }
 0x250   : > { %2762 = vst.msk [vmem:[#allocation4 + $0xc] sm:$0xf] %vm1907_vm13, %v2754_v37 }
 0x251   : > { %3006 = vst.msk [vmem:[#allocation4] sm:$0xf] %vm1855_vm12, %v2995_v40  ;;  %4180 = vmatmul.msk.bf16.vlgmr.msrb.gmra.mxu0 %vm2127_vm3, %v4151_v41 }
 0x252   : > { %2928 = vst.msk [vmem:[#allocation4 + $0x8] sm:$0xf] %vm415_vm7, %v2924_v42 }
 0x253   : > { %v3049_v43 = vpop.permute.xlu1 %3048  ;;  %v3045_v58 = vpop.permute.xlu2 %3044 }
 0x254   : > { %v3047_v34 = vpop.permute.xlu0 %3046 }
 0x259   : > { %v4346_v45 = vld [vmem:[#allocation4 + $0x8] sm:$0xff] }
 0x25a   : > { %2929 = vst.msk [vmem:[#allocation4 + $0xc] sm:$0xf] %vm415_vm7, %v2925_v39  ;;  %4147 = vmatmul.msk.bf16.gmra.mxu1 %vm2127_vm3, %v4346_v45 }
 0x25b   : > { %3009 = vst.msk [vmem:[#allocation4 + $0xc] sm:$0xf] %vm1855_vm12, %v3001_v2  ;;  %v2999_v46 = vpop.permute.xlu1 %2998 }
 0x25c   : > { %3057 = vst.msk [vmem:[#allocation4 + $0xc] sm:$0xf] %vm1907_vm13, %v3049_v43  ;;  %v2997_v47 = vpop.permute.xlu0 %2996 }
 0x25d   : > { %3008 = vst.msk [vmem:[#allocation4 + $0x8] sm:$0xf] %vm1855_vm12, %v2999_v46 }
 0x25e   : > { %3056 = vst.msk [vmem:[#allocation4 + $0x8] sm:$0xf] %vm1907_vm13, %v3047_v34 }
 0x25f   : > { %3007 = vst.msk [vmem:[#allocation4 + $0x4] sm:$0xf] %vm1855_vm12, %v2997_v47 }
 0x260   : > { %3055 = vst.msk [vmem:[#allocation4 + $0x4] sm:$0xf] %vm1907_vm13, %v3045_v58 }
 0x263   : > { %v3043_v49 = vpop.permute.xlu1 %3042 }
 0x264   : > { %3054 = vst.msk [vmem:[#allocation4] sm:$0xf] %vm1907_vm13, %v3043_v49 }
 0x265   : > { %v4354_v50 = vld [vmem:[#allocation4 + $0x8] sm:$0xff] }
 0x266   : > { %4231 = vmatmul.msk.bf16.vlgmr.msra.gmra.mxu3 %vm2127_vm3, %v4354_v50 }
 0x26b   : > { %v4353_v53 = vld [vmem:[#allocation4] sm:$0xff] }
 0x26c   : > { %4230 = vmatmul.msk.bf16.vlgmr.msrb.gmra.mxu1 %vm2127_vm3, %v4353_v53 }
 0x27a   : > { %v2214_v55 = vpop.f32.mrf.mxu3 }
 0x282   : > { %v2216_v1 = vpop.f32.mrf.mxu3 }
 0x289   : > { %v2143_v54 = vpop.f32.mrf.mxu2 }
 0x28a   : > { %v2215_v57 = vadd.f32 %v2214_v55, %v2143_v54 }
 0x291   : > { %v2145_v62 = vpop.f32.mrf.mxu2 }
 0x292   : > { %v2217_v51 = vadd.f32 %v2216_v1, %v2145_v62 }
 0x293   : > { %v2439_v48 = vpop.f32.mrf.mxu0 }
 0x294   : > { %v2449_v60 = vadd.f32 %v2439_v48, %v2215_v57 }
 0x296   : > { %v2457_v61 = vmul.f32 %v4396_v59, %v2449_v60 }
 0x298   : > { %v2465_v63 = vadd.f32 %v4397_v24, %v2457_v61 }
 0x29a   : > { %2470 = vst.msk [vmem:[%s5430_s24] sm:$0xff] %vm2469_vm2, %v2465_v63 }
 0x29b   : > { %v2441_v3 = vpop.f32.mrf.mxu0 }
 0x29c   : > { %v2450_v56 = vadd.f32 %v2441_v3, %v2217_v51 }
 0x29e   : > { %v2458_v27 = vmul.f32 %v4396_v59, %v2450_v56 }
 0x2a0   : > { %v2466_v4 = vadd.f32 %v4397_v24, %v2458_v27 }
 0x2a1   : > { %v2219_v6 = vpop.f32.mrf.mxu3  ;;  %v5466_v54 = vld [vmem:[%s5430_s24] sm:$0xff] }
 0x2a2   : > { %2471 = vst.msk [vmem:[%s5430_s24 + $0x8] sm:$0xff] %vm2469_vm2, %v2466_v4  ;;  %v3177_v60 = vsel %vm2469_vm2, %v5466_v54, 0.0 }
 0x2a9   : > { %v2221_v0 = vpop.f32.mrf.mxu3  ;;  %v5463_v49 = vld [vmem:[%s5430_s24 + $0x8] sm:$0xff] }
 0x2ab   : > { %v2148_v5 = vpop.f32.mrf.mxu2 }
 0x2ac   : > { %v2220_v7 = vadd.f32 %v2219_v6, %v2148_v5 }
 0x2b3   : > { %v2150_v11 = vpop.f32.mrf.mxu2 }
 0x2b4   : > { %v2222_v20 = vadd.f32 %v2221_v0, %v2150_v11 }
 0x2be   : > { %v2444_v9 = vpop.f32.mrf.mxu0 }
 0x2bf   : > { %v2451_v10 = vadd.f32 %v2444_v9, %v2220_v7 }
 0x2c1   : > { %v2459_v8 = vmul.f32 %v4396_v59, %v2451_v10  ;;  %v2840_v14 = vpop.f32.mrf.mxu1 }
 0x2c3   : > { %v2467_v12 = vadd.f32 %v4397_v24, %v2459_v8 }
 0x2c5   : > { %2472 = vst.msk [vmem:[%s5430_s24 + $0x10] sm:$0xff] %vm2469_vm2, %v2467_v12 }
 0x2c6   : > { %v2446_v15 = vpop.f32.mrf.mxu0 }
 0x2c7   : > { %v2452_v16 = vadd.f32 %v2446_v15, %v2222_v20 }
 0x2c9   : > { %v2460_v17 = vmul.f32 %v4396_v59, %v2452_v16  ;;  %v2842_v2 = vpop.f32.mrf.mxu1  ;;  %v3178_v59 = vsel %vm2469_vm2, %v5463_v49, 0.0 }
 0x2ca   : > { %v3179_v62 = vadd.f32 %v3178_v59, %v3177_v60 }
 0x2cb   : > { %v2468_v13 = vadd.f32 %v4397_v24, %v2460_v17 }
 0x2cc   : > { %v5469_v55 = vld [vmem:[%s5430_s24 + $0x10] sm:$0xff] }
 0x2cd   : > { %2473 = vst.msk [vmem:[%s5430_s24 + $0x18] sm:$0xff] %vm2469_vm2, %v2468_v13  ;;  %v3180_v24 = vsel %vm2469_vm2, %v5469_v55, 0.0 }
 0x2ce   : > { %v2911_v28 = vpop.f32.mrf.mxu0  ;;  %v3181_v1 = vadd.f32 %v3180_v24, %v3179_v62 }
 0x2cf   : > { %v2912_v32 = vadd.f32 %v2911_v28, %v2840_v14 }
 0x2d1   : > { %v2916_v29 = vpop.f32.mrf.mxu2 }
 0x2d4   : > { %v5476_v48 = vld [vmem:[%s5430_s24 + $0x18] sm:$0xff] }
 0x2d5   : > { %v3182_v63 = vsel %vm2469_vm2, %v5476_v48, 0.0 }
 0x2d6   : > { %v2913_v37 = vpop.f32.mrf.mxu0  ;;  %v3183_v3 = vadd.f32 %v3182_v63, %v3181_v1 }
 0x2d7   : > { %v2845_v18 = vpop.f32.mrf.mxu1  ;;  %v2914_v34 = vadd.f32 %v2913_v37, %v2842_v2 }
 0x2d8   : > { %v2917_v30 = vadd.f32 %v2916_v29, %v2845_v18  ;;  %v4264_v29 = vld [vmem:[%s4567_s26 + $0xf8] sm:$0xf] }
 0x2d9   : > { %v2918_v41 = vpop.f32.mrf.mxu2 }
 0x2df   : > { %v2847_v23 = vpop.f32.mrf.mxu1 }
 0x2e0   : > { %v2919_v43 = vadd.f32 %v2918_v41, %v2847_v23  ;;  %v4361_v23 = vld [vmem:[%s4567_s26 + $0xdc] sm:$0xf0] }
 0x2e1   : > { %v4243_v28 = vor.u32 %v4361_v23, %v4242_v22 }
 0x2e3   : > { %4252 = vmatmul.msk.bf16.vlgmr.msrb.gmra.mxu2 %vm3327_vm5, %v4243_v28  ;;  %v4403_v28 = vld [vmem:[%s5698_s11] ss:$0 sm:$0xff] }
 0x2e9   : > { %v3140_v33 = vpop.f32.mrf.mxu3  ;;  %v3135_v38 = vpop.f32.mrf.mxu1 }
 0x2ea   : > { %v3147_v36 = vadd.f32 %v3140_v33, %v2917_v30  ;;  %v3145_v52 = vadd.f32 %v3135_v38, %v2912_v32  ;;  %v4364_v30 = vld [vmem:[%s4567_s26 + $0xfc] sm:$0xf0]  ;;  %v4246_v38 = vld [vmem:[%s4567_s26 + $0xe8] sm:$0xf] }
 0x2ec   : > { %v3155_v26 = vmul.f32 %v4398_v31, %v3147_v36  ;;  %v3153_v35 = vmul.f32 %v4398_v31, %v3145_v52  ;;  %v4362_v52 = vld [vmem:[%s4567_s26 + $0xec] sm:$0xf0] }
 0x2ed   : > { %v4247_v37 = vor.u32 %v4362_v52, %v4246_v38 }
 0x2ee   : > { %v3163_v40 = vadd.f32 %v4399_v44, %v3155_v26  ;;  %v3161_v42 = vadd.f32 %v4399_v44, %v3153_v35  ;;  %v4268_v26 = vld [vmem:[%s4567_s26 + $0x108] sm:$0xf]  ;;  %v4365_v35 = vld [vmem:[%s4567_s26 + $0x10c] sm:$0xf0] }
 0x2f0   : > { %3167 = vst.msk [vmem:[%s5430_s24 + $0x30] sm:$0xff] %vm2469_vm2, %v3163_v40  ;;  %v4269_v40 = vor.u32 %v4365_v35, %v4268_v26 }
 0x2f1   : > { %3165 = vst.msk [vmem:[%s5430_s24 + $0x20] sm:$0xff] %vm2469_vm2, %v3161_v42  ;;  %v3142_v39 = vpop.f32.mrf.mxu3  ;;  %v3137_v46 = vpop.f32.mrf.mxu1 }
 0x2f2   : > { %v3148_v45 = vadd.f32 %v3142_v39, %v2919_v43  ;;  %v3146_v47 = vadd.f32 %v3137_v46, %v2914_v34 }
 0x2f3   : > { %4253 = vmatmul.msk.bf16.gmra.mxu2 %vm3327_vm5, %v4247_v37 }
 0x2f4   : > { %v3156_v58 = vmul.f32 %v4398_v31, %v3148_v45  ;;  %v3154_v50 = vmul.f32 %v4398_v31, %v3146_v47  ;;  %v4265_v31 = vor.u32 %v4364_v30, %v4264_v29 }
 0x2f6   : > { %v3164_v53 = vadd.f32 %v4399_v44, %v3156_v58  ;;  %v3162_v57 = vadd.f32 %v4399_v44, %v3154_v50  ;;  %4274 = vmatmul.msk.bf16.vlgmr.msrb.gmra.mxu3 %vm3327_vm5, %v4265_v31 }
 0x2f7   : > { %v5495_v27 = vld [vmem:[%s5430_s24 + $0x30] sm:$0xff] }
 0x2f8   : > { %3168 = vst.msk [vmem:[%s5430_s24 + $0x38] sm:$0xff] %vm2469_vm2, %v3164_v53  ;;  %v5485_v61 = vld [vmem:[%s5430_s24 + $0x20] sm:$0xff]  ;;  %v3188_v9 = vsel %vm2469_vm2, %v5495_v27, 0.0 }
 0x2f9   : > { %3166 = vst.msk [vmem:[%s5430_s24 + $0x28] sm:$0xff] %vm2469_vm2, %v3162_v57  ;;  %v3184_v51 = vsel %vm2469_vm2, %v5485_v61, 0.0 }
 0x2fa   : > { %v3185_v4 = vadd.f32 %v3184_v51, %v3183_v3 }
 0x2ff   : > { %v5500_v6 = vld [vmem:[%s5430_s24 + $0x38] sm:$0xff] }
 0x300   : > { %v5492_v56 = vld [vmem:[%s5430_s24 + $0x28] sm:$0xff]  ;;  %v3190_v8 = vsel %vm2469_vm2, %v5500_v6, 0.0 }
 0x301   : > { %v3186_v5 = vsel %vm2469_vm2, %v5492_v56, 0.0 }
 0x302   : > { %v3187_v7 = vadd.f32 %v3186_v5, %v3185_v4 }
 0x304   : > { %v3189_v10 = vadd.f32 %v3188_v9, %v3187_v7 }
 0x306   : > { %v3191_v11 = vadd.f32 %v3190_v8, %v3189_v10  ;;  %4275 = vmatmul.msk.bf16.gmra.mxu3 %vm3327_vm5, %v4269_v40 }
 0x308   : > { %v3192_v12 = vrot.slane %v3191_v11, 4 }
 0x30a   : > { %v3193_v0 = vadd.f32 %v3192_v12, %v3191_v11 }
 0x30c   : > { %v3194_v20 = vrot.slane %v3193_v0, 2 }
 0x30e   : > { %v3195_v14 = vadd.f32 %v3194_v20, %v3193_v0 }
 0x310   : > { %v3196_v15 = vrot.slane %v3195_v14, 1 }
 0x312   : > { %v3197_v16 = vadd.f32 %v3196_v15, %v3195_v14  ;;  %v4400_v15 = vld [vmem:[%s5697_s10] ss:$0 sm:$0xff] }
 0x314   : > { %v3198_v17 = vmul.f32 0.015625, %v3197_v16 }
 0x316   : > { %4232 = vmatmul.msk.f32.vlgmr.msra.gmra.mxu0 %vm2469_vm2, %v3198_v17 }
 0x366   : > { %v3343_v1 = vpop.f32.mrf.mxu2 }
 0x367   : > { %v3357_v21 = vmul.f32 %v4400_v15, %v3343_v1 }
 0x36e   : > { %v3345_v5 = vpop.f32.mrf.mxu2 }
 0x36f   : > { %v3358_v29 = vmul.f32 %v4400_v15, %v3345_v5 }
 0x371   : > { %v3366_v38 = vadd.f32 %v4401_v25, %v3358_v29 }
 0x376   : > { %v3348_v16 = vpop.f32.mrf.mxu2 }
 0x379   : > { %v3515_v51 = vpop.f32.mrf.mxu3 }
 0x381   : > { %v3517_v9 = vpop.f32.mrf.mxu3 }
 0x393   : > { %v3223_v13 = vpop.f32.mrf.mxu0 }
 0x394   : > { %v3226_v2 = vmin.f32 %v3223_v13, 20.0 }
 0x396   : > { %v3227_v18 = vmul.f32 1.442695, %v3226_v2 }
 0x398   : > { %4436 = vpow2.f32 %v3227_v18  ;;  %v3520_v18 = vpop.f32.mrf.mxu3 }
 0x39e   : > { %v4437_v32 = vpop.eup %4436 }
 0x39f   : > { %v3229_v33 = vadd.f32 1.0, %v4437_v32  ;;  %v3359_v32 = vmul.f32 %v4400_v15, %v3348_v16 }
 0x3a1   : > { %v3230_v36 = vmul.f32 %v3229_v33, %v3229_v33  ;;  %v3365_v33 = vadd.f32 %v4401_v25, %v3357_v21 }
 0x3a3   : > { %v3233_v44 = vadd.f32 1.0, %v3230_v36  ;;  %v4233_v39 = vadd.f32 -1.0, %v3230_v36 }
 0x3a5   : > { %4438 = vrcp.f32 %v3233_v44  ;;  %v3245_v34 = vand.u32 2147483648, %v3233_v44  ;;  %v3243_v46 = vand.u32 2147483647, %v3233_v44  ;;  %vm3239_vm7 = vweird.f32 %v3233_v44 }
 0x3a6   : > { %v3232_v50 = vmul.f32 %v4233_v39, %v3223_v13  ;;  %v4402_v13 = vld [vmem:[%s5697_s10] ss:$0 sm:$0xff] }
 0x3a7   : > { %v3246_v58 = vor.u32 1.1754944e-38, %v3245_v34  ;;  %vm3244_vm9 = vcmp.eq.f32.partialorder %v3243_v46, 8.507059e+37  ;;  %v3529_v23 = vmul.f32 %v4402_v13, %v3515_v51  ;;  %v3530_v30 = vmul.f32 %v4402_v13, %v3517_v9 }
 0x3a8   : > { %v3531_v34 = vmul.f32 %v4402_v13, %v3520_v18 }
 0x3a9   : > { %v3538_v52 = vadd.f32 %v4403_v28, %v3530_v30 }
 0x3ab   : > { %v4439_v41 = vpop.eup %4438 }
 0x3ac   : > { %v3235_v42 = vmul.f32 %v4439_v41, %v3233_v44  ;;  %vm3240_vm6 = vweird.f32 %v4439_v41  ;;  %v3537_v44 = vadd.f32 %v4403_v28, %v3529_v23 }
 0x3ad   : > { %vm3241_vm8 = vmor %vm3239_vm7, %vm3240_vm6 }
 0x3ae   : > { %v3236_v43 = vsub.f32 1.0, %v3235_v42  ;;  %v3367_v42 = vadd.f32 %v4401_v25, %v3359_v32 }
 0x3b0   : > { %v3237_v45 = vmul.f32 %v4439_v41, %v3236_v43 }
 0x3b2   : > { %v3238_v47 = vadd.f32 %v4439_v41, %v3237_v45 }
 0x3b4   : > { %v3242_v53 = vsel %vm3241_vm8, %v4439_v41, %v3238_v47  ;;  %v3350_v41 = vpop.f32.mrf.mxu2  ;;  %v3522_v47 = vpop.f32.mrf.mxu3 }
 0x3b5   : > { %v3247_v57 = vsel %vm3244_vm9, %v3246_v58, %v3242_v53 }
 0x3b6   : > { %v3248_v59 = vmul.f32 %v3247_v57, %v3232_v50 }
 0x3b8   : > { %4235 = vmatmul.msk.f32.vlgmr.msra.gmra.mxu1 %vm3250_vm10, %v3248_v59  ;;  %v3539_v59 = vadd.f32 %v4403_v28, %v3531_v34 }
 0x435   : > { %v3275_v60 = vpop.f32.mrf.mxu1 }
 0x436   : > { %v3278_v24 = vand.u32 2147483647, %v3275_v60  ;;  %vm3298_vm15 = vcmp.ge.f32.partialorder %v3275_v60, 0.0 }
 0x438   : > { %v3279_v62 = vsub.f32 0.0, %v3278_v24  ;;  %v3532_v24 = vmul.f32 %v4402_v13, %v3522_v47 }
 0x43a   : > { %v3280_v63 = vmul.f32 1.442695, %v3279_v62 }
 0x43c   : > { %4440 = vpow2.f32 %v3280_v63 }
 0x442   : > { %v4441_v3 = vpop.eup %4440 }
 0x443   : > { %v3282_v4 = vadd.f32 1.0, %v4441_v3 }
 0x445   : > { %4442 = vrcp.f32 %v3282_v4  ;;  %v3294_v11 = vand.u32 2147483648, %v3282_v4  ;;  %v3292_v0 = vand.u32 2147483647, %v3282_v4  ;;  %vm3288_vm12 = vweird.f32 %v3282_v4 }
 0x447   : > { %v3295_v14 = vor.u32 1.1754944e-38, %v3294_v11  ;;  %vm3293_vm14 = vcmp.eq.f32.partialorder %v3292_v0, 8.507059e+37 }
 0x44b   : > { %v4443_v7 = vpop.eup %4442 }
 0x44c   : > { %v3284_v10 = vmul.f32 %v4443_v7, %v3282_v4  ;;  %vm3289_vm11 = vweird.f32 %v4443_v7 }
 0x44d   : > { %vm3290_vm13 = vmor %vm3288_vm12, %vm3289_vm11 }
 0x44e   : > { %v3285_v8 = vsub.f32 1.0, %v3284_v10 }
 0x450   : > { %v3286_v12 = vmul.f32 %v4443_v7, %v3285_v8 }
 0x452   : > { %v3287_v20 = vadd.f32 %v4443_v7, %v3286_v12 }
 0x454   : > { %v3291_v17 = vsel %vm3290_vm13, %v4443_v7, %v3287_v20  ;;  %v3540_v7 = vadd.f32 %v4403_v28, %v3532_v24 }
 0x455   : > { %v3296_v2 = vsel %vm3293_vm14, %v3295_v14, %v3291_v17 }
 0x456   : > { %v3299_v19 = vsub.f32 1.0, %v3296_v2 }
 0x458   : > { %v3300_v22 = vsel %vm3298_vm15, %v3296_v2, %v3299_v19 }
 0x459   : > { %v3369_v31 = vperm.slane %v3300_v22, 0 }
 0x45b   : > { %v3370_v36 = vmul.f32 %v3369_v31, %v5466_v54  ;;  %v3541_v35 = vmul.f32 %v3369_v31, %v5485_v61  ;;  %v3371_v37 = vmul.f32 %v3369_v31, %v5463_v49  ;;  %v3542_v40 = vmul.f32 %v3369_v31, %v5492_v56 }
 0x45c   : > { %v3372_v43 = vmul.f32 %v3369_v31, %v5469_v55  ;;  %v3543_v49 = vmul.f32 %v3369_v31, %v5495_v27  ;;  %v3360_v61 = vmul.f32 %v4400_v15, %v3350_v41  ;;  %v3373_v60 = vmul.f32 %v3369_v31, %v5476_v48 }
 0x45d   : > { %v5541_v26 = vadd.f32 %v3370_v36, %v3365_v33  ;;  %v5548_v45 = vadd.f32 %v3541_v35, %v3537_v44  ;;  %v5550_v54 = vadd.f32 %v3371_v37, %v3366_v38  ;;  %v5552_v46 = vadd.f32 %v3542_v40, %v3538_v52 }
 0x45e   : > { %v5554_v58 = vadd.f32 %v3372_v43, %v3367_v42  ;;  %v3368_v27 = vadd.f32 %v4401_v25, %v3360_v61  ;;  %v3544_v3 = vmul.f32 %v3369_v31, %v5500_v6  ;;  %v5563_v4 = vadd.f32 %v3543_v49, %v3539_v59 }
 0x45f   : > { %v3378_v39 = vmin.f32 %v5541_v26, 20.0  ;;  %v3549_v50 = vmin.f32 %v5548_v45, 20.0  ;;  %v3379_v55 = vmin.f32 %v5550_v54, 20.0  ;;  %v3550_v53 = vmin.f32 %v5552_v46, 20.0 }
 0x460   : > { %v3380_v57 = vmin.f32 %v5554_v58, 20.0  ;;  %v5565_v5 = vadd.f32 %v3373_v60, %v3368_v27  ;;  %v5567_v9 = vadd.f32 %v3544_v3, %v3540_v7  ;;  %v3551_v10 = vmin.f32 %v5563_v4, 20.0 }
 0x461   : > { %v3382_v56 = vmul.f32 1.442695, %v3378_v39  ;;  %v3553_v62 = vmul.f32 1.442695, %v3549_v50  ;;  %v3384_v63 = vmul.f32 1.442695, %v3379_v55 }
 0x462   : > { %v3555_v1 = vmul.f32 1.442695, %v3550_v53  ;;  %v3386_v51 = vmul.f32 1.442695, %v3380_v57  ;;  %v3381_v11 = vmin.f32 %v5565_v5, 20.0  ;;  %v3552_v14 = vmin.f32 %v5567_v9, 20.0 }
 0x463   : > { %4444 = vpow2.f32 %v3382_v56  ;;  %v3557_v17 = vmul.f32 1.442695, %v3551_v10 }
 0x464   : > { %4446 = vpow2.f32 %v3553_v62  ;;  %v3388_v21 = vmul.f32 1.442695, %v3381_v11  ;;  %v3559_v22 = vmul.f32 1.442695, %v3552_v14 }
 0x465   : > { %4448 = vpow2.f32 %v3384_v63 }
 0x466   : > { %4450 = vpow2.f32 %v3555_v1 }
 0x467   : > { %4452 = vpow2.f32 %v3386_v51 }
 0x469   : > { %v4445_v48 = vpop.eup %4444 }
 0x46a   : > { %v3390_v8 = vadd.f32 1.0, %v4445_v48  ;;  %v4447_v12 = vpop.eup %4446 }
 0x46b   : > { %v4449_v0 = vpop.eup %4448  ;;  %v3561_v20 = vadd.f32 1.0, %v4447_v12 }
 0x46c   : > { %v3394_v6 = vmul.f32 %v3390_v8, %v3390_v8  ;;  %v4451_v15 = vpop.eup %4450  ;;  %v3391_v16 = vadd.f32 1.0, %v4449_v0 }
 0x46d   : > { %v4453_v13 = vpop.eup %4452  ;;  %v3565_v18 = vmul.f32 %v3561_v20, %v3561_v20  ;;  %v3562_v19 = vadd.f32 1.0, %v4451_v15 }
 0x46e   : > { %v5572_v2 = vadd.f32 1.0, %v3394_v6  ;;  %v3395_v25 = vmul.f32 %v3391_v16, %v3391_v16  ;;  %v4254_v23 = vadd.f32 -1.0, %v3394_v6  ;;  %v3392_v29 = vadd.f32 1.0, %v4453_v13 }
 0x46f   : > { %v5575_v28 = vadd.f32 1.0, %v3565_v18  ;;  %v3566_v31 = vmul.f32 %v3562_v19, %v3562_v19  ;;  %v4276_v36 = vadd.f32 -1.0, %v3565_v18 }
 0x470   : > { %4454 = vrcp.f32 %v5572_v2  ;;  %v5577_v30 = vadd.f32 1.0, %v3395_v25  ;;  %v3419_v32 = vand.u32 2147483647, %v5572_v2  ;;  %v3421_v33 = vand.u32 2147483648, %v5572_v2 }
 0x471   : > { %4456 = vpow2.f32 %v3557_v17  ;;  %v4255_v44 = vadd.f32 -1.0, %v3395_v25  ;;  %v3402_v38 = vmul.f32 %v4254_v23, %v5541_v26  ;;  %v3396_v52 = vmul.f32 %v3392_v29, %v3392_v29 }
 0x472   : > { %4458 = vpow2.f32 %v3388_v21  ;;  %vm3415_vm0 = vweird.f32 %v5572_v2  ;;  %v3590_v37 = vand.u32 2147483647, %v5575_v28  ;;  %v3592_v40 = vand.u32 2147483648, %v5575_v28 }
 0x473   : > { %4460 = vrcp.f32 %v5575_v28  ;;  %v5587_v41 = vadd.f32 1.0, %v3566_v31  ;;  %vm5590_vm1 = vcmp.eq.f32.partialorder %v3419_v32, 8.507059e+37  ;;  %v3422_v39 = vor.u32 1.1754944e-38, %v3421_v33 }
 0x474   : > { %4462 = vrcp.f32 %v5577_v30  ;;  %v3573_v26 = vmul.f32 %v4276_v36, %v5548_v45  ;;  %vm3586_vm3 = vweird.f32 %v5575_v28  ;;  %v3403_v49 = vmul.f32 %v4255_v44, %v5550_v54 }
 0x475   : > { %4464 = vpow2.f32 %v3559_v22  ;;  %v3434_v61 = vand.u32 2147483647, %v5577_v30  ;;  %v3436_v56 = vand.u32 2147483648, %v5577_v30  ;;  %vm3430_vm4 = vweird.f32 %v5577_v30 }
 0x476   : > { %v4455_v35 = vpop.eup %4454  ;;  %4466 = vrcp.f32 %v5587_v41  ;;  %v4277_v53 = vadd.f32 -1.0, %v3566_v31  ;;  %v5601_v57 = vadd.f32 1.0, %v3396_v52  ;;  %vm5604_vm5 = vcmp.eq.f32.partialorder %v3590_v37, 8.507059e+37 }
 0x477   : > { %v4457_v42 = vpop.eup %4456  ;;  %v3411_v43 = vmul.f32 %v4455_v35, %v5572_v2  ;;  %v3593_v54 = vor.u32 1.1754944e-38, %v3592_v40  ;;  %vm3416_vm6 = vweird.f32 %v4455_v35  ;;  %v5609_v51 = vadd.f32 -1.0, %v3396_v52 }
 0x478   : > { %v4459_v47 = vpop.eup %4458  ;;  %v3563_v24 = vadd.f32 1.0, %v4457_v42  ;;  %vm5611_vm7 = vcmp.eq.f32.partialorder %v3434_v61, 8.507059e+37  ;;  %v3437_v7 = vor.u32 1.1754944e-38, %v3436_v56  ;;  %4468 = vrcp.f32 %v5601_v57  ;;  %vm3417_vm8 = vmor %vm3415_vm0, %vm3416_vm6 }
 0x479   : > { %v4461_v50 = vpop.eup %4460  ;;  %v3412_v55 = vsub.f32 1.0, %v3411_v43  ;;  %v3574_v8 = vmul.f32 %v4277_v53, %v5552_v46  ;;  %v3393_v6 = vadd.f32 1.0, %v4459_v47  ;;  %v3605_v13 = vand.u32 2147483647, %v5587_v41 }
 0x47a   : > { %v4463_v59 = vpop.eup %4462  ;;  %v3582_v45 = vmul.f32 %v4461_v50, %v5575_v28  ;;  %v5617_v11 = vmul.f32 %v3563_v24, %v3563_v24  ;;  %vm3587_vm9 = vweird.f32 %v4461_v50  ;;  %v3607_v18 = vand.u32 2147483648, %v5587_v41 }
 0x47b   : > { %v4465_v62 = vpop.eup %4464  ;;  %v3413_v63 = vmul.f32 %v4455_v35, %v3412_v55  ;;  %v3426_v1 = vmul.f32 %v4463_v59, %v5577_v30  ;;  %vm3431_vm10 = vweird.f32 %v4463_v59  ;;  %vm3588_vm11 = vmor %vm3586_vm3, %vm3587_vm9  ;;  %v3397_v29 = vmul.f32 %v3393_v6, %v3393_v6 }
 0x47c   : > { %v3583_v27 = vsub.f32 1.0, %v3582_v45  ;;  %v4467_v12 = vpop.eup %4466  ;;  %v3564_v20 = vadd.f32 1.0, %v4465_v62  ;;  %v5629_v25 = vadd.f32 1.0, %v5617_v11  ;;  %vm3432_vm12 = vmor %vm3430_vm4, %vm3431_vm10  ;;  %vm3601_vm14 = vweird.f32 %v5587_v41 }
 0x47d   : > { %v3414_v48 = vadd.f32 %v4455_v35, %v3413_v63  ;;  %v3427_v10 = vsub.f32 1.0, %v3426_v1  ;;  %v3597_v16 = vmul.f32 %v4467_v12, %v5587_v41  ;;  %vm3602_vm13 = vweird.f32 %v4467_v12 }
 0x47e   : > { %v3584_v0 = vmul.f32 %v4461_v50, %v3583_v27  ;;  %v4469_v22 = vpop.eup %4468  ;;  %v3568_v31 = vmul.f32 %v3564_v20, %v3564_v20  ;;  %4470 = vrcp.f32 %v5629_v25  ;;  %vm3606_vm15 = vcmp.eq.f32.partialorder %v3605_v13, 8.507059e+37  ;;  %vm3603_vm0 = vmor %vm3601_vm14, %vm3602_vm13 }
 0x47f   : > { %v3418_v14 = vsel %vm3417_vm8, %v4455_v35, %v3414_v48  ;;  %v3428_v15 = vmul.f32 %v4463_v59, %v3427_v10  ;;  %v3598_v21 = vsub.f32 1.0, %v3597_v16  ;;  %v3441_v36 = vmul.f32 %v4469_v22, %v5601_v57 }
 0x480   : > { %v3423_v17 = vsel %vm5590_vm1, %v3422_v39, %v3418_v14  ;;  %v3585_v46 = vadd.f32 %v4461_v50, %v3584_v0  ;;  %v3608_v37 = vor.u32 1.1754944e-38, %v3607_v18  ;;  %v3449_v40 = vand.u32 2147483647, %v5601_v57 }
 0x481   : > { %v3424_v2 = vmul.f32 %v3423_v17, %v3402_v38  ;;  %v3429_v19 = vadd.f32 %v4463_v59, %v3428_v15  ;;  %v3599_v33 = vmul.f32 %v4467_v12, %v3598_v21  ;;  %v3442_v35 = vsub.f32 1.0, %v3441_v36 }
 0x482   : > { %v3589_v23 = vsel %vm3588_vm11, %v4461_v50, %v3585_v46  ;;  %v3451_v42 = vand.u32 2147483648, %v5601_v57  ;;  %v5647_v43 = vadd.f32 1.0, %v3397_v29  ;;  %vm3446_vm1 = vweird.f32 %v4469_v22 }
 0x483   : > { %3470 = vst.msk [vmem:[%s5430_s24] sm:$0xff] %vm2469_vm2, %v3424_v2  ;;  %v3594_v28 = vsel %vm5604_vm5, %v3593_v54, %v3589_v23  ;;  %v3433_v32 = vsel %vm3432_vm12, %v4463_v59, %v3429_v19  ;;  %v3600_v52 = vadd.f32 %v4467_v12, %v3599_v33  ;;  %v3443_v34 = vmul.f32 %v4469_v22, %v3442_v35 }
 0x484   : > { %v3595_v44 = vmul.f32 %v3594_v28, %v3573_v26  ;;  %v3438_v38 = vsel %vm5611_vm7, %v3437_v7, %v3433_v32  ;;  %v5651_v39 = vadd.f32 1.0, %v3568_v31  ;;  %vm3445_vm3 = vweird.f32 %v5601_v57  ;;  %v4471_v61 = vpop.eup %4470 }
 0x485   : > { %v3439_v30 = vmul.f32 %v3438_v38, %v3403_v49  ;;  %v3604_v41 = vsel %vm3603_vm0, %v4467_v12, %v3600_v52  ;;  %v3444_v49 = vadd.f32 %v4469_v22, %v3443_v34  ;;  %4472 = vrcp.f32 %v5647_v43  ;;  %vm3447_vm4 = vmor %vm3445_vm3, %vm3446_vm1 }
 0x486   : > { %3641 = vst.msk [vmem:[%s5430_s24 + $0x20] sm:$0xff] %vm2469_vm2, %v3595_v44  ;;  %v3609_v26 = vsel %vm3606_vm15, %v3608_v37, %v3604_v41  ;;  %v3452_v56 = vor.u32 1.1754944e-38, %v3451_v42  ;;  %4474 = vrcp.f32 %v5651_v39  ;;  %v3404_v50 = vmul.f32 %v5609_v51, %v5554_v58 }
 0x487   : > { %3471 = vst.msk [vmem:[%s5430_s24 + $0x8] sm:$0xff] %vm2469_vm2, %v3439_v30  ;;  %v3610_v47 = vmul.f32 %v3609_v26, %v3574_v8  ;;  %v3448_v55 = vsel %vm3447_vm4, %v4469_v22, %v3444_v49  ;;  %vm3450_vm5 = vcmp.eq.f32.partialorder %v3449_v40, 8.507059e+37  ;;  %v3612_v53 = vmul.f32 %v4471_v61, %v5629_v25 }
 0x488   : > { %v3453_v59 = vsel %vm3450_vm5, %v3452_v56, %v3448_v55  ;;  %v4278_v57 = vadd.f32 -1.0, %v5617_v11  ;;  %v3620_v54 = vand.u32 2147483647, %v5629_v25  ;;  %v3622_v24 = vand.u32 2147483648, %v5629_v25 }
 0x489   : > { %3642 = vst.msk [vmem:[%s5430_s24 + $0x28] sm:$0xff] %vm2469_vm2, %v3610_v47  ;;  %v3454_v45 = vmul.f32 %v3453_v59, %v3404_v50  ;;  %v3613_v60 = vsub.f32 1.0, %v3612_v53  ;;  %vm3617_vm6 = vweird.f32 %v4471_v61  ;;  %vm3616_vm7 = vweird.f32 %v5629_v25 }
 0x48a   : > { %v3575_v58 = vmul.f32 %v4278_v57, %v5563_v4  ;;  %v4257_v3 = vadd.f32 -1.0, %v3397_v29  ;;  %vm3618_vm8 = vmor %vm3616_vm7, %vm3617_vm6  ;;  %vm3621_vm9 = vcmp.eq.f32.partialorder %v3620_v54, 8.507059e+37  ;;  %v3623_v48 = vor.u32 1.1754944e-38, %v3622_v24 }
 0x48b   : > { %v4473_v62 = vpop.eup %4472  ;;  %3472 = vst.msk [vmem:[%s5430_s24 + $0x10] sm:$0xff] %vm2469_vm2, %v3454_v45  ;;  %v3614_v63 = vmul.f32 %v4471_v61, %v3613_v60  ;;  %v4279_v8 = vadd.f32 -1.0, %v3568_v31  ;;  %v3464_v12 = vand.u32 2147483647, %v5647_v43  ;;  %v3466_v0 = vand.u32 2147483648, %v5647_v43 }
 0x48c   : > { %v4475_v1 = vpop.eup %4474  ;;  %v3456_v51 = vmul.f32 %v4473_v62, %v5647_v43  ;;  %vm3461_vm10 = vweird.f32 %v4473_v62  ;;  %v3637_v14 = vand.u32 2147483648, %v5651_v39  ;;  %v3635_v17 = vand.u32 2147483647, %v5651_v39 }
 0x48d   : > { %v3615_v27 = vadd.f32 %v4471_v61, %v3614_v63  ;;  %v3627_v7 = vmul.f32 %v4475_v1, %v5651_v39  ;;  %vm3632_vm11 = vweird.f32 %v4475_v1  ;;  %vm3460_vm12 = vweird.f32 %v5647_v43 }
 0x48e   : > { %v3457_v10 = vsub.f32 1.0, %v3456_v51  ;;  %vm3462_vm13 = vmor %vm3460_vm12, %vm3461_vm10  ;;  %v3467_v13 = vor.u32 1.1754944e-38, %v3466_v0  ;;  %vm3631_vm14 = vweird.f32 %v5651_v39  ;;  %v3405_v2 = vmul.f32 %v4257_v3, %v5565_v5 }
 0x48f   : > { %v3619_v11 = vsel %vm3618_vm8, %v4471_v61, %v3615_v27  ;;  %v3628_v4 = vsub.f32 1.0, %v3627_v7  ;;  %vm3465_vm15 = vcmp.eq.f32.partialorder %v3464_v12, 8.507059e+37  ;;  %vm3633_vm0 = vmor %vm3631_vm14, %vm3632_vm11  ;;  %v3638_v21 = vor.u32 1.1754944e-38, %v3637_v14 }
 0x490   : > { %v3624_v6 = vsel %vm3621_vm9, %v3623_v48, %v3619_v11  ;;  %v3458_v20 = vmul.f32 %v4473_v62, %v3457_v10  ;;  %v3576_v22 = vmul.f32 %v4279_v8, %v5567_v9  ;;  %vm3636_vm1 = vcmp.eq.f32.partialorder %v3635_v17, 8.507059e+37 }
 0x491   : > { %v3625_v15 = vmul.f32 %v3624_v6, %v3575_v58  ;;  %v3629_v16 = vmul.f32 %v4475_v1, %v3628_v4 }
 0x492   : > { %v3459_v46 = vadd.f32 %v4473_v62, %v3458_v20 }
 0x493   : > { %3643 = vst.msk [vmem:[%s5430_s24 + $0x30] sm:$0xff] %vm2469_vm2, %v3625_v15  ;;  %v3630_v18 = vadd.f32 %v4475_v1, %v3629_v16 }
 0x494   : > { %v3463_v19 = vsel %vm3462_vm13, %v4473_v62, %v3459_v46 }
 0x495   : > { %v3468_v25 = vsel %vm3465_vm15, %v3467_v13, %v3463_v19  ;;  %v3634_v23 = vsel %vm3633_vm0, %v4475_v1, %v3630_v18 }
 0x496   : > { %v3469_v29 = vmul.f32 %v3468_v25, %v3405_v2  ;;  %v3639_v31 = vsel %vm3636_vm1, %v3638_v21, %v3634_v23 }
 0x497   : > { %v3640_v28 = vmul.f32 %v3639_v31, %v3576_v22 }
 0x498   : > { %3473 = vst.msk [vmem:[%s5430_s24 + $0x18] sm:$0xff] %vm2469_vm2, %v3469_v29 }
 0x499   : > { %3644 = vst.msk [vmem:[%s5430_s24 + $0x38] sm:$0xff] %vm2469_vm2, %v3640_v28 }
 0x49a PF: > { %s22_s21 = sadd.s32 1, %s4482_s21  }
 0x49b   : > { %p19_p4 = scmp.ge.s32.totalorder %s22_s21, 4  }
 0x49d   :  { %21 = sbr.rel (!%p19_p4) target bundleno = 1 (0x1), region = 118 }

</bundles_post_ra>
